<compile_context>
chip_gen: v7x
topology: tpu7x:2x2x1
jax: 0.10.0
libtpu: 0.0.40
codegen_flags: <defaults>
</compile_context>

<pallas_src>
import jax
import jax.numpy as jnp
from jax.experimental import pallas as pl
from jax.experimental.pallas import tpu as pltpu

NEG_SLOPE = 0.01   # nn.LeakyReLU default
BN_EPS = 1e-5      # nn.BatchNorm1d default
LANE = 128


def _round_up(n, m=LANE):
    return ((n + m - 1) // m) * m


def _mlp_kernel(x_ref, w_ref, gb_ref, o_ref):
    """Fused 8-layer MLP on a packed slab of G instances.

    x_ref : (G, batch, D) f32   G instances' padded inputs (one grid step)
    w_ref : (L, D, D)     bf16  stacked, pre-transposed, zero-padded weights
    gb_ref: (2, L, D)     f32   [0]=gamma (pad=1), [1]=beta (pad=0)
    o_ref : (G, batch, D) f32   lane-dense padded output (real result = lane 0)
    """
    g, b, d = x_ref.shape
    n_layers = w_ref.shape[0]
    inv_b = jnp.float32(1.0 / b)

    gb = gb_ref[...]                               # tiny (2,L,D) load, reused all layers
    h = x_ref[...].reshape(g * b, d)               # (M, D) f32, M = g*b (MXU-sized)

    for l in range(n_layers):                      # unrolled static layer loop
        # Linear (bias folded out: cancelled exactly by training-mode BN mean subtraction)
        z = jnp.dot(h.astype(jnp.bfloat16), w_ref[l],
                    preferred_element_type=jnp.float32)            # (M, D) on the MXU
        # BatchNorm1d, training-mode batch stats computed PER INSTANCE (two-pass var).
        # (If this ever becomes XLU-bound on v6e/v7x, these two batch-sum reductions
        #  can be moved onto the MXU via a constant 0/1 segment matrix.)
        z3 = z.reshape(g, b, d)
        mean = jnp.sum(z3, axis=1, keepdims=True) * inv_b          # (g,1,d)
        c = z3 - mean
        var = jnp.sum(c * c, axis=1, keepdims=True) * inv_b        # (g,1,d)
        scale = gb[0, l] * jax.lax.rsqrt(var + BN_EPS)             # (g,1,d)
        zh = c * scale + gb[1, l]
        # LeakyReLU(0.01), f32 elementwise (v5e has no bf16 VPU path)
        h = jnp.where(zh >= 0, zh, NEG_SLOPE * zh).reshape(g * b, d)

    o_ref[...] = h.reshape(g, b, d)                # lane-dense (8,128)-tile store


def init_params(key, features):
    """PyTorch-layout parameters: (W (out,in), b (out,), gamma (out,), beta (out,))."""
    dims = [features, 2 * features, 3 * features, 4 * features,
            3 * features, 2 * features, features, features // 2, 1]
    params = []
    for fin, fout in zip(dims[:-1], dims[1:]):
        key, kw, kb, kg, kbe = jax.random.split(key, 5)
        bound = 1.0 / (fin ** 0.5)
        w = jax.random.uniform(kw, (fout, fin), jnp.float32, -bound, bound)
        b = jax.random.uniform(kb, (fout,), jnp.float32, -bound, bound)
        gamma = jax.random.uniform(kg, (fout,), jnp.float32, 0.5, 1.5)   # BN weight
        beta = jax.random.normal(kbe, (fout,), jnp.float32) * 0.1        # BN bias
        params.append((w, b, gamma, beta))
    return params


def net_forward(x, params, *, target_m=128):
    """x: (n_instances, batch, features) or (batch, features).

    Each instance is one independent Net.forward() call (its own BN batch stats).
    target_m: matmul rows per grid step; 128 fills a v5e MXU pass, 256 is better on
    v6e/v7x when n_instances allows keeping >= 2 grid steps.
    """
    squeeze = (x.ndim == 2)
    if squeeze:
        x = x[None]
    n_inst, batch, features = x.shape
    assert batch % 8 == 0 and batch > 1, "batch must be a multiple of 8 (f32 sublane)"
    assert features >= 2
    x = x.astype(jnp.float32)                      # x = x.float()

    # ---- wrapper-side folding / padding (layout plumbing, not compute) ----
    n_layers = len(params)
    # One common padded width D covering every layer's fan-in/out keeps the whole
    # network at a single lane-aligned activation width and lets the weights stack.
    D = _round_up(max([features] + [w.shape[0] for (w, _, _, _) in params]))

    w_stack = jnp.zeros((n_layers, D, D), jnp.float32)
    gammas = jnp.ones((n_layers, D), jnp.float32)      # pad gamma=1
    betas = jnp.zeros((n_layers, D), jnp.float32)      # pad beta=0
    for l, (w, b, g, be) in enumerate(params):
        fout, fin = w.shape
        w_stack = w_stack.at[l, :fin, :fout].set(w.T)  # (in, out), zero-padded
        gammas = gammas.at[l, :fout].set(g)
        betas = betas.at[l, :fout].set(be)
        # linear bias b intentionally dropped (cancelled by training-mode BN).
    w_stack = w_stack.astype(jnp.bfloat16)             # halve weight DMA, native MXU dtype
    gb = jnp.stack([gammas, betas], axis=0)            # (2, L, D) f32

    # ---- instance packing: G instances per grid step so M = G*batch feeds the MXU ----
    g_inst = max(1, min(target_m // batch, n_inst))
    if 2 <= n_inst < 2 * g_inst:
        g_inst = (n_inst + 1) // 2                     # keep >= 2 grid steps (v7x, 2 TCs)
    n_steps = pl.cdiv(n_inst, g_inst)
    n_pad = n_steps * g_inst

    xp = jnp.zeros((n_pad, batch, D), jnp.float32).at[:n_inst, :, :features].set(x)

    out = pl.pallas_call(
        _mlp_kernel,
        out_shape=jax.ShapeDtypeStruct((n_pad, batch, D), jnp.float32),
        grid=(n_steps,),
        in_specs=[
            pl.BlockSpec((g_inst, batch, D), lambda i: (i, 0, 0)),   # packed instances
            pl.BlockSpec((n_layers, D, D), lambda i: (0, 0, 0)),     # weights: grid-invariant
            pl.BlockSpec((2, n_layers, D), lambda i: (0, 0, 0)),     # gamma/beta: grid-invariant
        ],
        out_specs=pl.BlockSpec((g_inst, batch, D), lambda i: (i, 0, 0)),
        compiler_params=pltpu.CompilerParams(
            dimension_semantics=("parallel",),          # shards grid steps across TCs (v7x)
        ),
    )(xp, w_stack, gb)

    out = out[:n_inst, :, :1]                           # un-pad: real output is lane 0
    return out[0] if squeeze else out


def _reference_single(x, params):
    """Pure-JAX reference for one forward pass (PyTorch training-mode semantics).

    Matches the kernel's matmul precision (bf16 operands, f32 accumulate) so the
    check isolates kernel mechanics (packing/padding/BN) from the accepted bf16
    quantization; BN / LeakyReLU are plain f32, bias is kept (BN cancels it).
    """
    h = x.astype(jnp.float32)
    for (w, b, g, be) in params:
        z = jnp.dot(h.astype(jnp.bfloat16), w.T.astype(jnp.bfloat16),
                    preferred_element_type=jnp.float32) + b
        mean = jnp.mean(z, axis=0, keepdims=True)
        var = jnp.mean((z - mean) ** 2, axis=0, keepdims=True)
        zh = (z - mean) * jax.lax.rsqrt(var + BN_EPS) * g + be
        h = jnp.where(zh >= 0, zh, NEG_SLOPE * zh)
    return h                                            # (batch, 1) == x.view(batch, -1)


if __name__ == "__main__":
    key = jax.random.PRNGKey(0)
    features = 16        # number of TF columns in the GRN table (small synthetic size)
    batch = 8            # multiple of 8; >1 so BN batch statistics are defined
    n_instances = 64     # independent forward evaluations; packed 16-per-step -> 4 grid steps

    k_x, k_p = jax.random.split(key)
    x = jax.random.normal(k_x, (n_instances, batch, features), dtype=jnp.float32)
    params = init_params(k_p, features)

    y = net_forward(x, params)
    y = jax.block_until_ready(y)
    assert y.shape == (n_instances, batch, 1) and y.dtype == jnp.float32

    y_ref = jax.vmap(_reference_single, in_axes=(0, None))(x, params)
    max_err = float(jnp.max(jnp.abs(y - y_ref)))
    assert max_err < 2e-2, f"kernel/reference mismatch: max abs err = {max_err}"

    print("KERNEL_OK")
</pallas_src>

<mosaic_0001>
module attributes {stable_mosaic.version = 11 : i64} {
  func.func @_mlp_kernel(%arg0: i32, %arg1: memref<16x8x128xf32, #tpu.memory_space<vmem>>, %arg2: memref<8x128x128xbf16, #tpu.memory_space<vmem>>, %arg3: memref<2x8x128xf32, #tpu.memory_space<vmem>>, %arg4: memref<16x8x128xf32, #tpu.memory_space<vmem>>) attributes {dimension_semantics = [#tpu.dimension_semantics<parallel>], iteration_bounds = array<i64: 4>, scalar_prefetch = 0 : i64, scratch_operands = 0 : i64, tpu.core_type = #tpu.core_type<tc>, window_params = [{transform_indices = @transform_0, window_bounds = array<i64: 16, 8, 128>}, {pipeline_mode = #tpu.pipeline_mode<synchronous>, transform_indices = @transform_1, window_bounds = array<i64: 8, 128, 128>}, {pipeline_mode = #tpu.pipeline_mode<synchronous>, transform_indices = @transform_2, window_bounds = array<i64: 2, 8, 128>}, {transform_indices = @transform_3, window_bounds = array<i64: 16, 8, 128>}]} {
    %c0 = arith.constant 0 : index
    %c0_0 = arith.constant 0 : index
    %c0_1 = arith.constant 0 : index
    %0 = vector.load %arg3[%c0, %c0_0, %c0_1] : memref<2x8x128xf32, #tpu.memory_space<vmem>>, vector<2x8x128xf32>
    %c0_2 = arith.constant 0 : index
    %c0_3 = arith.constant 0 : index
    %c0_4 = arith.constant 0 : index
    %1 = vector.load %arg1[%c0_2, %c0_3, %c0_4] : memref<16x8x128xf32, #tpu.memory_space<vmem>>, vector<16x8x128xf32>
    %2 = vector.shape_cast %1 : vector<16x8x128xf32> to vector<128x128xf32>
    %3 = arith.truncf %2 : vector<128x128xf32> to vector<128x128xbf16>
    %c0_5 = arith.constant 0 : index
    %c0_6 = arith.constant 0 : index
    %c0_7 = arith.constant 0 : index
    %4 = vector.load %arg2[%c0_5, %c0_6, %c0_7] : memref<8x128x128xbf16, #tpu.memory_space<vmem>>, vector<1x128x128xbf16>
    %5 = vector.shape_cast %4 : vector<1x128x128xbf16> to vector<128x128xbf16>
    %cst = arith.constant dense<0.000000e+00> : vector<128x128xf32>
    %6 = tpu.matmul %3, %5, %cst {dimension_numbers = #tpu.dot_dimension_numbers<[1], [0], [0], [1], [0, 0, 1, 1], [], []>} : vector<128x128xbf16>, vector<128x128xbf16>, vector<128x128xf32> -> vector<128x128xf32>
    %7 = vector.shape_cast %6 : vector<128x128xf32> to vector<16x8x128xf32>
    %cst_8 = arith.constant dense<0.000000e+00> : vector<16x128xf32>
    %8 = vector.multi_reduction <add>, %7, %cst_8 [1] : vector<16x8x128xf32> to vector<16x128xf32>
    %9 = vector.shape_cast %8 : vector<16x128xf32> to vector<16x1x128xf32>
    %cst_9 = arith.constant 1.250000e-01 : f32
    %10 = vector.broadcast %cst_9 : f32 to vector<16x1x128xf32>
    %11 = arith.mulf %9, %10 : vector<16x1x128xf32>
    %12 = vector.broadcast %11 : vector<16x1x128xf32> to vector<16x8x128xf32>
    %13 = arith.subf %7, %12 : vector<16x8x128xf32>
    %14 = arith.mulf %13, %13 : vector<16x8x128xf32>
    %cst_10 = arith.constant dense<0.000000e+00> : vector<16x128xf32>
    %15 = vector.multi_reduction <add>, %14, %cst_10 [1] : vector<16x8x128xf32> to vector<16x128xf32>
    %16 = vector.shape_cast %15 : vector<16x128xf32> to vector<16x1x128xf32>
    %cst_11 = arith.constant 1.250000e-01 : f32
    %17 = vector.broadcast %cst_11 : f32 to vector<16x1x128xf32>
    %18 = arith.mulf %16, %17 : vector<16x1x128xf32>
    %19 = vector.extract_strided_slice %0 {offsets = [0, 0, 0], sizes = [1, 1, 128], strides = [1, 1, 1]} : vector<2x8x128xf32> to vector<1x1x128xf32>
    %20 = vector.shape_cast %19 : vector<1x1x128xf32> to vector<128xf32>
    %cst_12 = arith.constant 9.99999974E-6 : f32
    %21 = vector.broadcast %cst_12 : f32 to vector<16x1x128xf32>
    %22 = arith.addf %18, %21 : vector<16x1x128xf32>
    %23 = math.rsqrt %22 : vector<16x1x128xf32>
    %24 = vector.shape_cast %20 : vector<128xf32> to vector<1x1x128xf32>
    %25 = vector.broadcast %24 : vector<1x1x128xf32> to vector<16x1x128xf32>
    %26 = arith.mulf %25, %23 : vector<16x1x128xf32>
    %27 = vector.broadcast %26 : vector<16x1x128xf32> to vector<16x8x128xf32>
    %28 = arith.mulf %13, %27 : vector<16x8x128xf32>
    %29 = vector.extract_strided_slice %0 {offsets = [1, 0, 0], sizes = [1, 1, 128], strides = [1, 1, 1]} : vector<2x8x128xf32> to vector<1x1x128xf32>
    %30 = vector.shape_cast %29 : vector<1x1x128xf32> to vector<128xf32>
    %31 = vector.shape_cast %30 : vector<128xf32> to vector<1x1x128xf32>
    %32 = vector.broadcast %31 : vector<1x1x128xf32> to vector<16x8x128xf32>
    %33 = arith.addf %28, %32 : vector<16x8x128xf32>
    %cst_13 = arith.constant 0.000000e+00 : f32
    %34 = vector.broadcast %cst_13 : f32 to vector<16x8x128xf32>
    %35 = arith.cmpf oge, %33, %34 : vector<16x8x128xf32>
    %cst_14 = arith.constant 0.00999999977 : f32
    %36 = vector.broadcast %cst_14 : f32 to vector<16x8x128xf32>
    %37 = arith.mulf %36, %33 : vector<16x8x128xf32>
    %38 = arith.select %35, %33, %37 : vector<16x8x128xi1>, vector<16x8x128xf32>
    %39 = vector.shape_cast %38 : vector<16x8x128xf32> to vector<128x128xf32>
    %40 = arith.truncf %39 : vector<128x128xf32> to vector<128x128xbf16>
    %c1 = arith.constant 1 : index
    %c0_15 = arith.constant 0 : index
    %c0_16 = arith.constant 0 : index
    %41 = vector.load %arg2[%c1, %c0_15, %c0_16] : memref<8x128x128xbf16, #tpu.memory_space<vmem>>, vector<1x128x128xbf16>
    %42 = vector.shape_cast %41 : vector<1x128x128xbf16> to vector<128x128xbf16>
    %cst_17 = arith.constant dense<0.000000e+00> : vector<128x128xf32>
    %43 = tpu.matmul %40, %42, %cst_17 {dimension_numbers = #tpu.dot_dimension_numbers<[1], [0], [0], [1], [0, 0, 1, 1], [], []>} : vector<128x128xbf16>, vector<128x128xbf16>, vector<128x128xf32> -> vector<128x128xf32>
    %44 = vector.shape_cast %43 : vector<128x128xf32> to vector<16x8x128xf32>
    %cst_18 = arith.constant dense<0.000000e+00> : vector<16x128xf32>
    %45 = vector.multi_reduction <add>, %44, %cst_18 [1] : vector<16x8x128xf32> to vector<16x128xf32>
    %46 = vector.shape_cast %45 : vector<16x128xf32> to vector<16x1x128xf32>
    %cst_19 = arith.constant 1.250000e-01 : f32
    %47 = vector.broadcast %cst_19 : f32 to vector<16x1x128xf32>
    %48 = arith.mulf %46, %47 : vector<16x1x128xf32>
    %49 = vector.broadcast %48 : vector<16x1x128xf32> to vector<16x8x128xf32>
    %50 = arith.subf %44, %49 : vector<16x8x128xf32>
    %51 = arith.mulf %50, %50 : vector<16x8x128xf32>
    %cst_20 = arith.constant dense<0.000000e+00> : vector<16x128xf32>
    %52 = vector.multi_reduction <add>, %51, %cst_20 [1] : vector<16x8x128xf32> to vector<16x128xf32>
    %53 = vector.shape_cast %52 : vector<16x128xf32> to vector<16x1x128xf32>
    %cst_21 = arith.constant 1.250000e-01 : f32
    %54 = vector.broadcast %cst_21 : f32 to vector<16x1x128xf32>
    %55 = arith.mulf %53, %54 : vector<16x1x128xf32>
    %56 = vector.extract_strided_slice %0 {offsets = [0, 1, 0], sizes = [1, 1, 128], strides = [1, 1, 1]} : vector<2x8x128xf32> to vector<1x1x128xf32>
    %57 = vector.shape_cast %56 : vector<1x1x128xf32> to vector<128xf32>
    %cst_22 = arith.constant 9.99999974E-6 : f32
    %58 = vector.broadcast %cst_22 : f32 to vector<16x1x128xf32>
    %59 = arith.addf %55, %58 : vector<16x1x128xf32>
    %60 = math.rsqrt %59 : vector<16x1x128xf32>
    %61 = vector.shape_cast %57 : vector<128xf32> to vector<1x1x128xf32>
    %62 = vector.broadcast %61 : vector<1x1x128xf32> to vector<16x1x128xf32>
    %63 = arith.mulf %62, %60 : vector<16x1x128xf32>
    %64 = vector.broadcast %63 : vector<16x1x128xf32> to vector<16x8x128xf32>
    %65 = arith.mulf %50, %64 : vector<16x8x128xf32>
    %66 = vector.extract_strided_slice %0 {offsets = [1, 1, 0], sizes = [1, 1, 128], strides = [1, 1, 1]} : vector<2x8x128xf32> to vector<1x1x128xf32>
    %67 = vector.shape_cast %66 : vector<1x1x128xf32> to vector<128xf32>
    %68 = vector.shape_cast %67 : vector<128xf32> to vector<1x1x128xf32>
    %69 = vector.broadcast %68 : vector<1x1x128xf32> to vector<16x8x128xf32>
    %70 = arith.addf %65, %69 : vector<16x8x128xf32>
    %cst_23 = arith.constant 0.000000e+00 : f32
    %71 = vector.broadcast %cst_23 : f32 to vector<16x8x128xf32>
    %72 = arith.cmpf oge, %70, %71 : vector<16x8x128xf32>
    %cst_24 = arith.constant 0.00999999977 : f32
    %73 = vector.broadcast %cst_24 : f32 to vector<16x8x128xf32>
    %74 = arith.mulf %73, %70 : vector<16x8x128xf32>
    %75 = arith.select %72, %70, %74 : vector<16x8x128xi1>, vector<16x8x128xf32>
    %76 = vector.shape_cast %75 : vector<16x8x128xf32> to vector<128x128xf32>
    %77 = arith.truncf %76 : vector<128x128xf32> to vector<128x128xbf16>
    %c2 = arith.constant 2 : index
    %c0_25 = arith.constant 0 : index
    %c0_26 = arith.constant 0 : index
    %78 = vector.load %arg2[%c2, %c0_25, %c0_26] : memref<8x128x128xbf16, #tpu.memory_space<vmem>>, vector<1x128x128xbf16>
    %79 = vector.shape_cast %78 : vector<1x128x128xbf16> to vector<128x128xbf16>
    %cst_27 = arith.constant dense<0.000000e+00> : vector<128x128xf32>
    %80 = tpu.matmul %77, %79, %cst_27 {dimension_numbers = #tpu.dot_dimension_numbers<[1], [0], [0], [1], [0, 0, 1, 1], [], []>} : vector<128x128xbf16>, vector<128x128xbf16>, vector<128x128xf32> -> vector<128x128xf32>
    %81 = vector.shape_cast %80 : vector<128x128xf32> to vector<16x8x128xf32>
    %cst_28 = arith.constant dense<0.000000e+00> : vector<16x128xf32>
    %82 = vector.multi_reduction <add>, %81, %cst_28 [1] : vector<16x8x128xf32> to vector<16x128xf32>
    %83 = vector.shape_cast %82 : vector<16x128xf32> to vector<16x1x128xf32>
    %cst_29 = arith.constant 1.250000e-01 : f32
    %84 = vector.broadcast %cst_29 : f32 to vector<16x1x128xf32>
    %85 = arith.mulf %83, %84 : vector<16x1x128xf32>
    %86 = vector.broadcast %85 : vector<16x1x128xf32> to vector<16x8x128xf32>
    %87 = arith.subf %81, %86 : vector<16x8x128xf32>
    %88 = arith.mulf %87, %87 : vector<16x8x128xf32>
    %cst_30 = arith.constant dense<0.000000e+00> : vector<16x128xf32>
    %89 = vector.multi_reduction <add>, %88, %cst_30 [1] : vector<16x8x128xf32> to vector<16x128xf32>
    %90 = vector.shape_cast %89 : vector<16x128xf32> to vector<16x1x128xf32>
    %cst_31 = arith.constant 1.250000e-01 : f32
    %91 = vector.broadcast %cst_31 : f32 to vector<16x1x128xf32>
    %92 = arith.mulf %90, %91 : vector<16x1x128xf32>
    %93 = vector.extract_strided_slice %0 {offsets = [0, 2, 0], sizes = [1, 1, 128], strides = [1, 1, 1]} : vector<2x8x128xf32> to vector<1x1x128xf32>
    %94 = vector.shape_cast %93 : vector<1x1x128xf32> to vector<128xf32>
    %cst_32 = arith.constant 9.99999974E-6 : f32
    %95 = vector.broadcast %cst_32 : f32 to vector<16x1x128xf32>
    %96 = arith.addf %92, %95 : vector<16x1x128xf32>
    %97 = math.rsqrt %96 : vector<16x1x128xf32>
    %98 = vector.shape_cast %94 : vector<128xf32> to vector<1x1x128xf32>
    %99 = vector.broadcast %98 : vector<1x1x128xf32> to vector<16x1x128xf32>
    %100 = arith.mulf %99, %97 : vector<16x1x128xf32>
    %101 = vector.broadcast %100 : vector<16x1x128xf32> to vector<16x8x128xf32>
    %102 = arith.mulf %87, %101 : vector<16x8x128xf32>
    %103 = vector.extract_strided_slice %0 {offsets = [1, 2, 0], sizes = [1, 1, 128], strides = [1, 1, 1]} : vector<2x8x128xf32> to vector<1x1x128xf32>
    %104 = vector.shape_cast %103 : vector<1x1x128xf32> to vector<128xf32>
    %105 = vector.shape_cast %104 : vector<128xf32> to vector<1x1x128xf32>
    %106 = vector.broadcast %105 : vector<1x1x128xf32> to vector<16x8x128xf32>
    %107 = arith.addf %102, %106 : vector<16x8x128xf32>
    %cst_33 = arith.constant 0.000000e+00 : f32
    %108 = vector.broadcast %cst_33 : f32 to vector<16x8x128xf32>
    %109 = arith.cmpf oge, %107, %108 : vector<16x8x128xf32>
    %cst_34 = arith.constant 0.00999999977 : f32
    %110 = vector.broadcast %cst_34 : f32 to vector<16x8x128xf32>
    %111 = arith.mulf %110, %107 : vector<16x8x128xf32>
    %112 = arith.select %109, %107, %111 : vector<16x8x128xi1>, vector<16x8x128xf32>
    %113 = vector.shape_cast %112 : vector<16x8x128xf32> to vector<128x128xf32>
    %114 = arith.truncf %113 : vector<128x128xf32> to vector<128x128xbf16>
    %c3 = arith.constant 3 : index
    %c0_35 = arith.constant 0 : index
    %c0_36 = arith.constant 0 : index
    %115 = vector.load %arg2[%c3, %c0_35, %c0_36] : memref<8x128x128xbf16, #tpu.memory_space<vmem>>, vector<1x128x128xbf16>
    %116 = vector.shape_cast %115 : vector<1x128x128xbf16> to vector<128x128xbf16>
    %cst_37 = arith.constant dense<0.000000e+00> : vector<128x128xf32>
    %117 = tpu.matmul %114, %116, %cst_37 {dimension_numbers = #tpu.dot_dimension_numbers<[1], [0], [0], [1], [0, 0, 1, 1], [], []>} : vector<128x128xbf16>, vector<128x128xbf16>, vector<128x128xf32> -> vector<128x128xf32>
    %118 = vector.shape_cast %117 : vector<128x128xf32> to vector<16x8x128xf32>
    %cst_38 = arith.constant dense<0.000000e+00> : vector<16x128xf32>
    %119 = vector.multi_reduction <add>, %118, %cst_38 [1] : vector<16x8x128xf32> to vector<16x128xf32>
    %120 = vector.shape_cast %119 : vector<16x128xf32> to vector<16x1x128xf32>
    %cst_39 = arith.constant 1.250000e-01 : f32
    %121 = vector.broadcast %cst_39 : f32 to vector<16x1x128xf32>
    %122 = arith.mulf %120, %121 : vector<16x1x128xf32>
    %123 = vector.broadcast %122 : vector<16x1x128xf32> to vector<16x8x128xf32>
    %124 = arith.subf %118, %123 : vector<16x8x128xf32>
    %125 = arith.mulf %124, %124 : vector<16x8x128xf32>
    %cst_40 = arith.constant dense<0.000000e+00> : vector<16x128xf32>
    %126 = vector.multi_reduction <add>, %125, %cst_40 [1] : vector<16x8x128xf32> to vector<16x128xf32>
    %127 = vector.shape_cast %126 : vector<16x128xf32> to vector<16x1x128xf32>
    %cst_41 = arith.constant 1.250000e-01 : f32
    %128 = vector.broadcast %cst_41 : f32 to vector<16x1x128xf32>
    %129 = arith.mulf %127, %128 : vector<16x1x128xf32>
    %130 = vector.extract_strided_slice %0 {offsets = [0, 3, 0], sizes = [1, 1, 128], strides = [1, 1, 1]} : vector<2x8x128xf32> to vector<1x1x128xf32>
    %131 = vector.shape_cast %130 : vector<1x1x128xf32> to vector<128xf32>
    %cst_42 = arith.constant 9.99999974E-6 : f32
    %132 = vector.broadcast %cst_42 : f32 to vector<16x1x128xf32>
    %133 = arith.addf %129, %132 : vector<16x1x128xf32>
    %134 = math.rsqrt %133 : vector<16x1x128xf32>
    %135 = vector.shape_cast %131 : vector<128xf32> to vector<1x1x128xf32>
    %136 = vector.broadcast %135 : vector<1x1x128xf32> to vector<16x1x128xf32>
    %137 = arith.mulf %136, %134 : vector<16x1x128xf32>
    %138 = vector.broadcast %137 : vector<16x1x128xf32> to vector<16x8x128xf32>
    %139 = arith.mulf %124, %138 : vector<16x8x128xf32>
    %140 = vector.extract_strided_slice %0 {offsets = [1, 3, 0], sizes = [1, 1, 128], strides = [1, 1, 1]} : vector<2x8x128xf32> to vector<1x1x128xf32>
    %141 = vector.shape_cast %140 : vector<1x1x128xf32> to vector<128xf32>
    %142 = vector.shape_cast %141 : vector<128xf32> to vector<1x1x128xf32>
    %143 = vector.broadcast %142 : vector<1x1x128xf32> to vector<16x8x128xf32>
    %144 = arith.addf %139, %143 : vector<16x8x128xf32>
    %cst_43 = arith.constant 0.000000e+00 : f32
    %145 = vector.broadcast %cst_43 : f32 to vector<16x8x128xf32>
    %146 = arith.cmpf oge, %144, %145 : vector<16x8x128xf32>
    %cst_44 = arith.constant 0.00999999977 : f32
    %147 = vector.broadcast %cst_44 : f32 to vector<16x8x128xf32>
    %148 = arith.mulf %147, %144 : vector<16x8x128xf32>
    %149 = arith.select %146, %144, %148 : vector<16x8x128xi1>, vector<16x8x128xf32>
    %150 = vector.shape_cast %149 : vector<16x8x128xf32> to vector<128x128xf32>
    %151 = arith.truncf %150 : vector<128x128xf32> to vector<128x128xbf16>
    %c4 = arith.constant 4 : index
    %c0_45 = arith.constant 0 : index
    %c0_46 = arith.constant 0 : index
    %152 = vector.load %arg2[%c4, %c0_45, %c0_46] : memref<8x128x128xbf16, #tpu.memory_space<vmem>>, vector<1x128x128xbf16>
    %153 = vector.shape_cast %152 : vector<1x128x128xbf16> to vector<128x128xbf16>
    %cst_47 = arith.constant dense<0.000000e+00> : vector<128x128xf32>
    %154 = tpu.matmul %151, %153, %cst_47 {dimension_numbers = #tpu.dot_dimension_numbers<[1], [0], [0], [1], [0, 0, 1, 1], [], []>} : vector<128x128xbf16>, vector<128x128xbf16>, vector<128x128xf32> -> vector<128x128xf32>
    %155 = vector.shape_cast %154 : vector<128x128xf32> to vector<16x8x128xf32>
    %cst_48 = arith.constant dense<0.000000e+00> : vector<16x128xf32>
    %156 = vector.multi_reduction <add>, %155, %cst_48 [1] : vector<16x8x128xf32> to vector<16x128xf32>
    %157 = vector.shape_cast %156 : vector<16x128xf32> to vector<16x1x128xf32>
    %cst_49 = arith.constant 1.250000e-01 : f32
    %158 = vector.broadcast %cst_49 : f32 to vector<16x1x128xf32>
    %159 = arith.mulf %157, %158 : vector<16x1x128xf32>
    %160 = vector.broadcast %159 : vector<16x1x128xf32> to vector<16x8x128xf32>
    %161 = arith.subf %155, %160 : vector<16x8x128xf32>
    %162 = arith.mulf %161, %161 : vector<16x8x128xf32>
    %cst_50 = arith.constant dense<0.000000e+00> : vector<16x128xf32>
    %163 = vector.multi_reduction <add>, %162, %cst_50 [1] : vector<16x8x128xf32> to vector<16x128xf32>
    %164 = vector.shape_cast %163 : vector<16x128xf32> to vector<16x1x128xf32>
    %cst_51 = arith.constant 1.250000e-01 : f32
    %165 = vector.broadcast %cst_51 : f32 to vector<16x1x128xf32>
    %166 = arith.mulf %164, %165 : vector<16x1x128xf32>
    %167 = vector.extract_strided_slice %0 {offsets = [0, 4, 0], sizes = [1, 1, 128], strides = [1, 1, 1]} : vector<2x8x128xf32> to vector<1x1x128xf32>
    %168 = vector.shape_cast %167 : vector<1x1x128xf32> to vector<128xf32>
    %cst_52 = arith.constant 9.99999974E-6 : f32
    %169 = vector.broadcast %cst_52 : f32 to vector<16x1x128xf32>
    %170 = arith.addf %166, %169 : vector<16x1x128xf32>
    %171 = math.rsqrt %170 : vector<16x1x128xf32>
    %172 = vector.shape_cast %168 : vector<128xf32> to vector<1x1x128xf32>
    %173 = vector.broadcast %172 : vector<1x1x128xf32> to vector<16x1x128xf32>
    %174 = arith.mulf %173, %171 : vector<16x1x128xf32>
    %175 = vector.broadcast %174 : vector<16x1x128xf32> to vector<16x8x128xf32>
    %176 = arith.mulf %161, %175 : vector<16x8x128xf32>
    %177 = vector.extract_strided_slice %0 {offsets = [1, 4, 0], sizes = [1, 1, 128], strides = [1, 1, 1]} : vector<2x8x128xf32> to vector<1x1x128xf32>
    %178 = vector.shape_cast %177 : vector<1x1x128xf32> to vector<128xf32>
    %179 = vector.shape_cast %178 : vector<128xf32> to vector<1x1x128xf32>
    %180 = vector.broadcast %179 : vector<1x1x128xf32> to vector<16x8x128xf32>
    %181 = arith.addf %176, %180 : vector<16x8x128xf32>
    %cst_53 = arith.constant 0.000000e+00 : f32
    %182 = vector.broadcast %cst_53 : f32 to vector<16x8x128xf32>
    %183 = arith.cmpf oge, %181, %182 : vector<16x8x128xf32>
    %cst_54 = arith.constant 0.00999999977 : f32
    %184 = vector.broadcast %cst_54 : f32 to vector<16x8x128xf32>
    %185 = arith.mulf %184, %181 : vector<16x8x128xf32>
    %186 = arith.select %183, %181, %185 : vector<16x8x128xi1>, vector<16x8x128xf32>
    %187 = vector.shape_cast %186 : vector<16x8x128xf32> to vector<128x128xf32>
    %188 = arith.truncf %187 : vector<128x128xf32> to vector<128x128xbf16>
    %c5 = arith.constant 5 : index
    %c0_55 = arith.constant 0 : index
    %c0_56 = arith.constant 0 : index
    %189 = vector.load %arg2[%c5, %c0_55, %c0_56] : memref<8x128x128xbf16, #tpu.memory_space<vmem>>, vector<1x128x128xbf16>
    %190 = vector.shape_cast %189 : vector<1x128x128xbf16> to vector<128x128xbf16>
    %cst_57 = arith.constant dense<0.000000e+00> : vector<128x128xf32>
    %191 = tpu.matmul %188, %190, %cst_57 {dimension_numbers = #tpu.dot_dimension_numbers<[1], [0], [0], [1], [0, 0, 1, 1], [], []>} : vector<128x128xbf16>, vector<128x128xbf16>, vector<128x128xf32> -> vector<128x128xf32>
    %192 = vector.shape_cast %191 : vector<128x128xf32> to vector<16x8x128xf32>
    %cst_58 = arith.constant dense<0.000000e+00> : vector<16x128xf32>
    %193 = vector.multi_reduction <add>, %192, %cst_58 [1] : vector<16x8x128xf32> to vector<16x128xf32>
    %194 = vector.shape_cast %193 : vector<16x128xf32> to vector<16x1x128xf32>
    %cst_59 = arith.constant 1.250000e-01 : f32
    %195 = vector.broadcast %cst_59 : f32 to vector<16x1x128xf32>
    %196 = arith.mulf %194, %195 : vector<16x1x128xf32>
    %197 = vector.broadcast %196 : vector<16x1x128xf32> to vector<16x8x128xf32>
    %198 = arith.subf %192, %197 : vector<16x8x128xf32>
    %199 = arith.mulf %198, %198 : vector<16x8x128xf32>
    %cst_60 = arith.constant dense<0.000000e+00> : vector<16x128xf32>
    %200 = vector.multi_reduction <add>, %199, %cst_60 [1] : vector<16x8x128xf32> to vector<16x128xf32>
    %201 = vector.shape_cast %200 : vector<16x128xf32> to vector<16x1x128xf32>
    %cst_61 = arith.constant 1.250000e-01 : f32
    %202 = vector.broadcast %cst_61 : f32 to vector<16x1x128xf32>
    %203 = arith.mulf %201, %202 : vector<16x1x128xf32>
    %204 = vector.extract_strided_slice %0 {offsets = [0, 5, 0], sizes = [1, 1, 128], strides = [1, 1, 1]} : vector<2x8x128xf32> to vector<1x1x128xf32>
    %205 = vector.shape_cast %204 : vector<1x1x128xf32> to vector<128xf32>
    %cst_62 = arith.constant 9.99999974E-6 : f32
    %206 = vector.broadcast %cst_62 : f32 to vector<16x1x128xf32>
    %207 = arith.addf %203, %206 : vector<16x1x128xf32>
    %208 = math.rsqrt %207 : vector<16x1x128xf32>
    %209 = vector.shape_cast %205 : vector<128xf32> to vector<1x1x128xf32>
    %210 = vector.broadcast %209 : vector<1x1x128xf32> to vector<16x1x128xf32>
    %211 = arith.mulf %210, %208 : vector<16x1x128xf32>
    %212 = vector.broadcast %211 : vector<16x1x128xf32> to vector<16x8x128xf32>
    %213 = arith.mulf %198, %212 : vector<16x8x128xf32>
    %214 = vector.extract_strided_slice %0 {offsets = [1, 5, 0], sizes = [1, 1, 128], strides = [1, 1, 1]} : vector<2x8x128xf32> to vector<1x1x128xf32>
    %215 = vector.shape_cast %214 : vector<1x1x128xf32> to vector<128xf32>
    %216 = vector.shape_cast %215 : vector<128xf32> to vector<1x1x128xf32>
    %217 = vector.broadcast %216 : vector<1x1x128xf32> to vector<16x8x128xf32>
    %218 = arith.addf %213, %217 : vector<16x8x128xf32>
    %cst_63 = arith.constant 0.000000e+00 : f32
    %219 = vector.broadcast %cst_63 : f32 to vector<16x8x128xf32>
    %220 = arith.cmpf oge, %218, %219 : vector<16x8x128xf32>
    %cst_64 = arith.constant 0.00999999977 : f32
    %221 = vector.broadcast %cst_64 : f32 to vector<16x8x128xf32>
    %222 = arith.mulf %221, %218 : vector<16x8x128xf32>
    %223 = arith.select %220, %218, %222 : vector<16x8x128xi1>, vector<16x8x128xf32>
    %224 = vector.shape_cast %223 : vector<16x8x128xf32> to vector<128x128xf32>
    %225 = arith.truncf %224 : vector<128x128xf32> to vector<128x128xbf16>
    %c6 = arith.constant 6 : index
    %c0_65 = arith.constant 0 : index
    %c0_66 = arith.constant 0 : index
    %226 = vector.load %arg2[%c6, %c0_65, %c0_66] : memref<8x128x128xbf16, #tpu.memory_space<vmem>>, vector<1x128x128xbf16>
    %227 = vector.shape_cast %226 : vector<1x128x128xbf16> to vector<128x128xbf16>
    %cst_67 = arith.constant dense<0.000000e+00> : vector<128x128xf32>
    %228 = tpu.matmul %225, %227, %cst_67 {dimension_numbers = #tpu.dot_dimension_numbers<[1], [0], [0], [1], [0, 0, 1, 1], [], []>} : vector<128x128xbf16>, vector<128x128xbf16>, vector<128x128xf32> -> vector<128x128xf32>
    %229 = vector.shape_cast %228 : vector<128x128xf32> to vector<16x8x128xf32>
    %cst_68 = arith.constant dense<0.000000e+00> : vector<16x128xf32>
    %230 = vector.multi_reduction <add>, %229, %cst_68 [1] : vector<16x8x128xf32> to vector<16x128xf32>
    %231 = vector.shape_cast %230 : vector<16x128xf32> to vector<16x1x128xf32>
    %cst_69 = arith.constant 1.250000e-01 : f32
    %232 = vector.broadcast %cst_69 : f32 to vector<16x1x128xf32>
    %233 = arith.mulf %231, %232 : vector<16x1x128xf32>
    %234 = vector.broadcast %233 : vector<16x1x128xf32> to vector<16x8x128xf32>
    %235 = arith.subf %229, %234 : vector<16x8x128xf32>
    %236 = arith.mulf %235, %235 : vector<16x8x128xf32>
    %cst_70 = arith.constant dense<0.000000e+00> : vector<16x128xf32>
    %237 = vector.multi_reduction <add>, %236, %cst_70 [1] : vector<16x8x128xf32> to vector<16x128xf32>
    %238 = vector.shape_cast %237 : vector<16x128xf32> to vector<16x1x128xf32>
    %cst_71 = arith.constant 1.250000e-01 : f32
    %239 = vector.broadcast %cst_71 : f32 to vector<16x1x128xf32>
    %240 = arith.mulf %238, %239 : vector<16x1x128xf32>
    %241 = vector.extract_strided_slice %0 {offsets = [0, 6, 0], sizes = [1, 1, 128], strides = [1, 1, 1]} : vector<2x8x128xf32> to vector<1x1x128xf32>
    %242 = vector.shape_cast %241 : vector<1x1x128xf32> to vector<128xf32>
    %cst_72 = arith.constant 9.99999974E-6 : f32
    %243 = vector.broadcast %cst_72 : f32 to vector<16x1x128xf32>
    %244 = arith.addf %240, %243 : vector<16x1x128xf32>
    %245 = math.rsqrt %244 : vector<16x1x128xf32>
    %246 = vector.shape_cast %242 : vector<128xf32> to vector<1x1x128xf32>
    %247 = vector.broadcast %246 : vector<1x1x128xf32> to vector<16x1x128xf32>
    %248 = arith.mulf %247, %245 : vector<16x1x128xf32>
    %249 = vector.broadcast %248 : vector<16x1x128xf32> to vector<16x8x128xf32>
    %250 = arith.mulf %235, %249 : vector<16x8x128xf32>
    %251 = vector.extract_strided_slice %0 {offsets = [1, 6, 0], sizes = [1, 1, 128], strides = [1, 1, 1]} : vector<2x8x128xf32> to vector<1x1x128xf32>
    %252 = vector.shape_cast %251 : vector<1x1x128xf32> to vector<128xf32>
    %253 = vector.shape_cast %252 : vector<128xf32> to vector<1x1x128xf32>
    %254 = vector.broadcast %253 : vector<1x1x128xf32> to vector<16x8x128xf32>
    %255 = arith.addf %250, %254 : vector<16x8x128xf32>
    %cst_73 = arith.constant 0.000000e+00 : f32
    %256 = vector.broadcast %cst_73 : f32 to vector<16x8x128xf32>
    %257 = arith.cmpf oge, %255, %256 : vector<16x8x128xf32>
    %cst_74 = arith.constant 0.00999999977 : f32
    %258 = vector.broadcast %cst_74 : f32 to vector<16x8x128xf32>
    %259 = arith.mulf %258, %255 : vector<16x8x128xf32>
    %260 = arith.select %257, %255, %259 : vector<16x8x128xi1>, vector<16x8x128xf32>
    %261 = vector.shape_cast %260 : vector<16x8x128xf32> to vector<128x128xf32>
    %262 = arith.truncf %261 : vector<128x128xf32> to vector<128x128xbf16>
    %c7 = arith.constant 7 : index
    %c0_75 = arith.constant 0 : index
    %c0_76 = arith.constant 0 : index
    %263 = vector.load %arg2[%c7, %c0_75, %c0_76] : memref<8x128x128xbf16, #tpu.memory_space<vmem>>, vector<1x128x128xbf16>
    %264 = vector.shape_cast %263 : vector<1x128x128xbf16> to vector<128x128xbf16>
    %cst_77 = arith.constant dense<0.000000e+00> : vector<128x128xf32>
    %265 = tpu.matmul %262, %264, %cst_77 {dimension_numbers = #tpu.dot_dimension_numbers<[1], [0], [0], [1], [0, 0, 1, 1], [], []>} : vector<128x128xbf16>, vector<128x128xbf16>, vector<128x128xf32> -> vector<128x128xf32>
    %266 = vector.shape_cast %265 : vector<128x128xf32> to vector<16x8x128xf32>
    %cst_78 = arith.constant dense<0.000000e+00> : vector<16x128xf32>
    %267 = vector.multi_reduction <add>, %266, %cst_78 [1] : vector<16x8x128xf32> to vector<16x128xf32>
    %268 = vector.shape_cast %267 : vector<16x128xf32> to vector<16x1x128xf32>
    %cst_79 = arith.constant 1.250000e-01 : f32
    %269 = vector.broadcast %cst_79 : f32 to vector<16x1x128xf32>
    %270 = arith.mulf %268, %269 : vector<16x1x128xf32>
    %271 = vector.broadcast %270 : vector<16x1x128xf32> to vector<16x8x128xf32>
    %272 = arith.subf %266, %271 : vector<16x8x128xf32>
    %273 = arith.mulf %272, %272 : vector<16x8x128xf32>
    %cst_80 = arith.constant dense<0.000000e+00> : vector<16x128xf32>
    %274 = vector.multi_reduction <add>, %273, %cst_80 [1] : vector<16x8x128xf32> to vector<16x128xf32>
    %275 = vector.shape_cast %274 : vector<16x128xf32> to vector<16x1x128xf32>
    %cst_81 = arith.constant 1.250000e-01 : f32
    %276 = vector.broadcast %cst_81 : f32 to vector<16x1x128xf32>
    %277 = arith.mulf %275, %276 : vector<16x1x128xf32>
    %278 = vector.extract_strided_slice %0 {offsets = [0, 7, 0], sizes = [1, 1, 128], strides = [1, 1, 1]} : vector<2x8x128xf32> to vector<1x1x128xf32>
    %279 = vector.shape_cast %278 : vector<1x1x128xf32> to vector<128xf32>
    %cst_82 = arith.constant 9.99999974E-6 : f32
    %280 = vector.broadcast %cst_82 : f32 to vector<16x1x128xf32>
    %281 = arith.addf %277, %280 : vector<16x1x128xf32>
    %282 = math.rsqrt %281 : vector<16x1x128xf32>
    %283 = vector.shape_cast %279 : vector<128xf32> to vector<1x1x128xf32>
    %284 = vector.broadcast %283 : vector<1x1x128xf32> to vector<16x1x128xf32>
    %285 = arith.mulf %284, %282 : vector<16x1x128xf32>
    %286 = vector.broadcast %285 : vector<16x1x128xf32> to vector<16x8x128xf32>
    %287 = arith.mulf %272, %286 : vector<16x8x128xf32>
    %288 = vector.extract_strided_slice %0 {offsets = [1, 7, 0], sizes = [1, 1, 128], strides = [1, 1, 1]} : vector<2x8x128xf32> to vector<1x1x128xf32>
    %289 = vector.shape_cast %288 : vector<1x1x128xf32> to vector<128xf32>
    %290 = vector.shape_cast %289 : vector<128xf32> to vector<1x1x128xf32>
    %291 = vector.broadcast %290 : vector<1x1x128xf32> to vector<16x8x128xf32>
    %292 = arith.addf %287, %291 : vector<16x8x128xf32>
    %cst_83 = arith.constant 0.000000e+00 : f32
    %293 = vector.broadcast %cst_83 : f32 to vector<16x8x128xf32>
    %294 = arith.cmpf oge, %292, %293 : vector<16x8x128xf32>
    %cst_84 = arith.constant 0.00999999977 : f32
    %295 = vector.broadcast %cst_84 : f32 to vector<16x8x128xf32>
    %296 = arith.mulf %295, %292 : vector<16x8x128xf32>
    %297 = arith.select %294, %292, %296 : vector<16x8x128xi1>, vector<16x8x128xf32>
    %298 = vector.shape_cast %297 : vector<16x8x128xf32> to vector<128x128xf32>
    %299 = vector.shape_cast %298 : vector<128x128xf32> to vector<16x8x128xf32>
    %c0_85 = arith.constant 0 : index
    %c0_86 = arith.constant 0 : index
    %c0_87 = arith.constant 0 : index
    %300 = vector.load %arg4[%c0_85, %c0_86, %c0_87] : memref<16x8x128xf32, #tpu.memory_space<vmem>>, vector<16x8x128xf32>
    tpu.vector_store %arg4[%c0_85, %c0_86, %c0_87], %299 {strides = array<i32>} : memref<16x8x128xf32, #tpu.memory_space<vmem>>, vector<16x8x128xf32>,
    return
  }
  func.func @transform_0(%arg0: i32) -> (i32, i32, i32) {
    %c0_i32 = arith.constant 0 : i32
    %c0_i32_0 = arith.constant 0 : i32
    %c0_i32_1 = arith.constant 0 : i32
    return %arg0, %c0_i32, %c0_i32_0 : i32, i32, i32
  }
  func.func @transform_1(%arg0: i32) -> (i32, i32, i32) {
    %c0_i32 = arith.constant 0 : i32
    %c0_i32_0 = arith.constant 0 : i32
    %c0_i32_1 = arith.constant 0 : i32
    %c0_i32_2 = arith.constant 0 : i32
    return %c0_i32, %c0_i32_0, %c0_i32_1 : i32, i32, i32
  }
  func.func @transform_2(%arg0: i32) -> (i32, i32, i32) {
    %c0_i32 = arith.constant 0 : i32
    %c0_i32_0 = arith.constant 0 : i32
    %c0_i32_1 = arith.constant 0 : i32
    %c0_i32_2 = arith.constant 0 : i32
    return %c0_i32, %c0_i32_0, %c0_i32_1 : i32, i32, i32
  }
  func.func @transform_3(%arg0: i32) -> (i32, i32, i32) {
    %c0_i32 = arith.constant 0 : i32
    %c0_i32_0 = arith.constant 0 : i32
    %c0_i32_1 = arith.constant 0 : i32
    return %arg0, %c0_i32, %c0_i32_0 : i32, i32, i32
  }
}

</mosaic_0001>

<bundles_post_ra>
// kernel: tpu_custom_call.1
= control target key start
LH: loop header
LB: loop body
LE: loop exit
PB: predicated region body
PF: predicated region fallthrough
CT: control target
= control target key end

     0   :  { %8 = vsyncpa [#allocation3], 0  ;;  %s8584_s0 = inlined_call_operand.hbm [shape: f32[64,8,128], index: 0, kind: input, shape index: {}]   ;;  %s8585_s1 = inlined_call_operand.hbm [shape: bf16[8,128,128], index: 1, kind: input, shape index: {}]   ;;  %s8586_s2 = inlined_call_operand.hbm [shape: f32[2,8,128], index: 2, kind: input, shape index: {}]   ;;  %s8587_s3 = inlined_call_operand.hbm [shape: f32[64,8,128], index: 3, kind: output, shape index: {}]  }
   0x1   :  { %10 = vsyncpa [#allocation3 + $0x1], 0 }
   0x2   :  { %11 = vsyncpa [#allocation6], 0 }
   0x3   :  { %12 = vsyncpa [#allocation4], 0 }
   0x4   :  { %14 = vsyncpa [#allocation4 + $0x1], 0  ;;  %s6394_s12 = smov 0   ;;  %s6396_s13 = smov 0  }
   0x5   :  { %s6398_s14 = smov 0   ;;  %s6400_s15 = smov 0  }
   0x6 LB: > { %s6415_s16 = sadd.s32 4294967295, %s6362_s15   ;;  %s5336_s17 = sadd.s32 4294967294, %s6362_s15   ;;  %s6362_s15 = sphi %s6400_s15, %s8606_s15   ;;  %s6358_s14 = sphi %s6398_s14, %s8605_s14   ;;  %s6354_s13 = sphi %s6396_s13, %s8604_s13   ;;  %s6350_s12 = sphi %s6394_s12, %s8603_s12  }
   0x7   : > { %p40_p0 = scmp.ne.s32.totalorder %s6354_s13, %s6350_s12  ;;  %p8588_p1 = scmp.eq.s32.totalorder %s6415_s16, 0 }
   0x8   : > { %p112_p3 = scmp.eq.s32.totalorder %s5336_s17, 3  ;;  %p5337_p5 = scmp.ge.s32.totalorder %s6362_s15, 1 }
   0x9   : > { %p6424_p4 = por %p8588_p1, %p40_p0  ;;  %p119_p7 = scmp.lt.s32.totalorder %s6362_s15, 5 }
   0xa   : > { %p6429_p6 = por %p112_p3, %p40_p0  ;;  %s6364_s21 = smov [#allocation5]  }
   0xb   : > { %s8591_s18 = scalar_select %p6424_p4, 1, 0 }
   0xc   : > { %s8592_s19 = scalar_select %p6429_p6, 1, 0 }
   0xd   : > { %p6434_p8 = pnand %p5337_p5, %p119_p7  ;;  %s131_s22 = sshll.u32 %s6364_s21, 4  ;;  %s132_s22 = int_to_ptr.vmem [resolvable:$true] %s131_s22 }
   0xe   : > { %s6365_s24 = smov [#allocation7]   ;;  %s6206_s28 = scalar_lea.hbm %s8585_s1, 8192 }
   0xf   : > { %s8593_s20 = scalar_select %p6434_p8, 1, 0 }
  0x10   : > { %p5816_p9 = pneg %p6434_p8  ;;  %s144_s25 = sshll.u32 %s6365_s24, 4  ;;  %s6446_s25 = int_to_ptr.vmem [resolvable:$true] %s144_s25 }
  0x11   : > { %p6207_p11 = scmp.ne.s32.totalorder %s8585_s1, %s6206_s28  ;;  %p6213_p3 = scmp.lt.u32.totalorder %s6206_s28, %s8585_s1 }
  0x12   : > { %p6442_p10 = pnand %p5816_p9, %p8588_p1 }
  0x14   : > { %p6208_p12 = pneg %p6442_p10 }
  0x16   : > { %p6209_p13 = pnand %p6208_p12, %p6207_p11 }
  0x18   : > { %p6210_p0 = pneg %p6209_p13 }
  0x1a   : > { %p6215_p5 = pnand %p6213_p3, %p6210_p0 }
  0x1c   : > { %6218 = shalt.err (!%p6215_p5)
}
  0x1d   : > { %s6219_s6 = scalar_lea.vmem %s132_s22, 8192  ;;  %p6227_p2 = scmp.lt.s32.totalorder %s132_s22, %s132_s22 }
  0x1e   : > { %p6220_p7 = scmp.ne.s32.totalorder %s132_s22, %s6219_s6  ;;  %p6228_p6 = scmp.lt.s32.totalorder %s6219_s6, %s6219_s6 }
  0x20   : > { %p6222_p9 = pnand %p6220_p7, %p6208_p12  ;;  %p6229_p4 = por %p6228_p6, %p6227_p2 }
  0x22   : > { %p6223_p1 = pneg %p6222_p9 }
  0x24   : > { %p6230_p8 = pnand %p6229_p4, %p6223_p1 }
  0x26   : > { %6233 = shalt.err (!%p6230_p8)
}
  0x27   : > { %s6366_s7 = smov 64   ;;  %s6367_s8 = smov 4  }
  0x28   : > { %5819 = dma.hbm_to_vmem [thread:$0]  (!%p6442_p10), %s8585_s1, 8192, %s132_s22, [#allocation6], %s6366_s7, %s6366_s7, %s6367_s8  }
  0x29   : > { %s6234_s21 = scalar_lea.hbm %s8586_s2, 256 }
  0x2a   : > { %p6235_p11 = scmp.ne.s32.totalorder %s8586_s2, %s6234_s21  ;;  %p6241_p4 = scmp.lt.u32.totalorder %s6234_s21, %s8586_s2 }
  0x2c   : > { %p6237_p1 = pnand %p6235_p11, %p6208_p12 }
  0x2e   : > { %p6238_p2 = pneg %p6237_p1 }
  0x30   : > { %p6243_p6 = pnand %p6241_p4, %p6238_p2 }
  0x32   : > { %6246 = shalt.err (!%p6243_p6)
}
  0x33   : > { %s6247_s22 = scalar_lea.vmem %s6446_s25, 256  ;;  %p6255_p3 = scmp.lt.s32.totalorder %s6446_s25, %s6446_s25 }
  0x34   : > { %p6248_p8 = scmp.ne.s32.totalorder %s6446_s25, %s6247_s22  ;;  %p6256_p5 = scmp.lt.s32.totalorder %s6247_s22, %s6247_s22 }
  0x36   : > { %p6250_p13 = pnand %p6248_p8, %p6208_p12  ;;  %p6257_p7 = por %p6256_p5, %p6255_p3 }
  0x38   : > { %p6251_p0 = pneg %p6250_p13 }
  0x3a   : > { %p6258_p9 = pnand %p6257_p7, %p6251_p0 }
  0x3c   : > { %6261 = shalt.err (!%p6258_p9)
}
  0x3d   : > { %s6368_s29 = smov 128   ;;  %s6369_s30 = smov 8  }
  0x3e   : > { %5822 = dma.hbm_to_vmem [thread:$0]  (!%p6442_p10), %s8586_s2, 256, %s6446_s25, [#allocation6], %s6368_s29, %s6368_s29, %s6369_s30  }
  0x3f   : > { %s6499_s6 = sadd.s32 1, %s6362_s15   ;;  %s27_s8 = sadd.s32 1, %s6358_s14 }
  0x40   : > { %s24_s7 = ssub.s32 %s6362_s15, %s6499_s6  ;;  %p34_p11 = scmp.ne.s32.totalorder %s6358_s14, %s6354_s13 }
  0x41   : > { %p25_p12 = scmp.eq.s32.totalorder %s24_s7, 0  ;;  %p35_p1 = scmp.eq.s32.totalorder %s6362_s15, 0 }
  0x42   : > { %p8595_p4 = scmp.eq.s32.totalorder %s6415_s16, 3  ;;  %p5833_p8 = scmp.lt.s32.totalorder %s6362_s15, 4 }
  0x43   : > { %s6508_s9 = scalar_select %p25_p12, %s6358_s14, %s27_s8  }
  0x44   : > { %p36_p2 = por %p35_p1, %p34_p11  ;;  %p6512_p6 = por %p8595_p4, %p34_p11 }
  0x45   : > { %s158_s10 = sand.u32 1, %s6358_s14   ;;  %s5418_s25 = sshll.u32 %s6362_s15, 11 }
  0x46   : > { %s5341_s11 = sshll.u32 %s158_s10, 7  ;;  %s6522_s24 = scalar_lea.hbm %s8584_s0, %s5418_s25 }
  0x47   : > { %s162_s26 = scalar_lea.vmem [#allocation2], %s5341_s11  ;;  %p6526_p10 = pnand %p5833_p8, %p36_p2 }
  0x48   : > { %s169_s27 = sshll.u32 %s162_s26, 4  ;;  %s6530_s22 = scalar_lea.sflag [#allocation3], %s158_s10  ;;  %s6524_s27 = int_to_ptr.vmem [resolvable:$true] %s169_s27 }
  0x49   : > { %s6262_s4 = scalar_lea.hbm %s6522_s24, 2048  ;;  %p6264_p0 = pneg %p6526_p10 }
  0x4a   : > { %p6263_p13 = scmp.ne.s32.totalorder %s6522_s24, %s6262_s4  ;;  %s6267_s8 = scalar_lea.hbm %s8584_s0, 8192 }
  0x4b   : > { %p6268_p7 = scmp.lt.u32.totalorder %s6522_s24, %s8584_s0  ;;  %p6269_p9 = scmp.lt.u32.totalorder %s6267_s8, %s6262_s4 }
  0x4c   : > { %p6265_p3 = pnand %p6264_p0, %p6263_p13  ;;  %p6271_p11 = scmp.lt.u32.totalorder %s6262_s4, %s6522_s24 }
  0x4d   : > { %p6270_p12 = por %p6269_p9, %p6268_p7 }
  0x4e   : > { %p6266_p5 = pneg %p6265_p3 }
  0x4f   : > { %p6272_p1 = por %p6271_p11, %p6270_p12 }
  0x51   : > { %p6273_p2 = pnand %p6272_p1, %p6266_p5 }
  0x53   : > { %6276 = shalt.err (!%p6273_p2)
}
  0x54   : > { %s6277_s10 = scalar_lea.vmem %s6524_s27, 2048  ;;  %s6370_s17 = smov [#allocation2]  }
  0x55   : > { %p6278_p4 = scmp.ne.s32.totalorder %s6524_s27, %s6277_s10  ;;  %s6282_s21 = sshll.u32 %s6370_s17, 4  ;;  %s6283_s21 = int_to_ptr.vmem [resolvable:$false] %s6282_s21 }
  0x56   : > { %s6284_s26 = scalar_lea.vmem %s6283_s21, 4096  ;;  %p6285_p3 = scmp.lt.s32.totalorder %s6524_s27, %s6283_s21 }
  0x57   : > { %p6280_p8 = pnand %p6278_p4, %p6264_p0  ;;  %p6286_p7 = scmp.lt.s32.totalorder %s6284_s26, %s6277_s10 }
  0x59   : > { %p6281_p13 = pneg %p6280_p8  ;;  %p6287_p9 = por %p6286_p7, %p6285_p3 }
  0x5b   : > { %p6288_p12 = pnand %p6287_p9, %p6281_p13 }
  0x5d   : > { %6291 = shalt.err (!%p6288_p12)
}
  0x5e   : > { %5826 = dma.hbm_to_vmem [thread:$0]  (!%p6526_p10), %s6522_s24, 2048, %s6524_s27, %s6530_s22, %s6368_s29, %s6368_s29, %s6369_s30  }
  0x5f   : > { %p8598_p0 = scmp.ne.s32.totalorder %s8593_s20, 0 }
  0x60   : > { %s6564_s4 = sand.u32 (!%p8598_p0), 1, %s6354_s13   ;;  %p8599_p5 = scmp.ne.s32.totalorder (!%p8598_p0), %s8591_s18, 0 }
  0x61   : > { %181 = sbr.rel (%p8598_p0) target bundleno = 2565 (0xa05), region = 32  ;;  %s5345_s5 = sshll.u32 (!%p8598_p0), %s6564_s4, 7 }
  0x62   : > { %s184_s7 = scalar_lea.sflag (!%p8598_p0), [#allocation3], %s6564_s4  ;;  %s6570_s28 = scalar_lea.vmem (!%p8598_p0), [#allocation2], %s5345_s5 }
  0x68   : > { %6337 = dma.done.wait (%p8599_p5), %s184_s7, 2048  }
  0x69   : > { %6339 = vsyncadd (%p8599_p5), %s184_s7, 4294965248  ;;  %p8600_p10 = scmp.eq.s32.totalorder %s6415_s16, 0 }
  0x6b   : > { %6341 = dma.done.wait (%p8600_p10), [#allocation6], 8448   ;;  %p8601_p11 = pmov %p8600_p10 }
  0x6c   : > { %v5877_v0 = vld [vmem:[#allocation5] sm:$0xff]   ;;  %v5878_v1 = vld [vmem:[#allocation5 + $0x8] sm:$0xff]   ;;  %v5879_v2 = vld [vmem:[#allocation5 + $0x10] sm:$0xff]   ;;  %v712_v41 = vlaneseq  ;;  %s8426_s18 = scalar_lea.vmem [#allocation8], %s5345_s5  ;;  %s5419_s20 = sshll.u32 %s6415_s16, 11 }
  0x6d   : > { %6343 = vsyncadd (%p8601_p11), [#allocation6], 4294958848  ;;  %5548 = vmatprep.subr.bf16.mxu0 %v5877_v0  ;;  %v5880_v3 = vld [vmem:[#allocation5 + $0x18] sm:$0xff]   ;;  %v223_v4 = vld [vmem:[%s6570_s28] sm:$0xff]  ;;  %s5244_s29 = sshll.u32 %s8426_s18, 4  ;;  %s8537_s27 = scalar_lea.hbm %s8587_s3, %s5419_s20  ;;  %s8539_s29 = int_to_ptr.vmem [resolvable:$true] %s5244_s29 }
  0x6e   : > { %5549 = vmatpush3.bf16.msra.mxu0 %v5877_v0  ;;  %v224_v5 = vld [vmem:[%s6570_s28 + $0x8] sm:$0xff]  ;;  %v5881_v7 = vld [vmem:[#allocation5 + $0x20] sm:$0xff]   ;;  %v5883_v9 = vld [vmem:[#allocation5 + $0x30] sm:$0xff]   ;;  %v6596_v49 = vshrl.u32 %v712_v41, 7  ;;  %s5231_s16 = scalar_lea.sflag [#allocation4], %s6564_s4  ;;  %s6292_s22 = scalar_lea.vmem %s8539_s29, 2048 }
  0x6f   : > { %5550 = vmatprep.subr.bf16.mxu0 %v5878_v1  ;;  %v239_v6 = vpack.c.bf16 %v224_v5, %v223_v4  ;;  %v5882_v8 = vld [vmem:[#allocation5 + $0x28] sm:$0xff]   ;;  %v5884_v10 = vld [vmem:[#allocation5 + $0x38] sm:$0xff]   ;;  %v225_v11 = vld [vmem:[%s6570_s28 + $0x10] sm:$0xff]  ;;  %p6293_p1 = scmp.ne.s32.totalorder %s8539_s29, %s6292_s22  ;;  %s6371_s8 = smov [#allocation8]  }
  0x70   : > { %v226_v12 = vld [vmem:[%s6570_s28 + $0x18] sm:$0xff]  ;;  %v227_v13 = vld [vmem:[%s6570_s28 + $0x20] sm:$0xff]  ;;  %v228_v14 = vld [vmem:[%s6570_s28 + $0x28] sm:$0xff]  ;;  %v6601_v59 = vsub.s32 0, %v6596_v49  ;;  %s6296_s11 = sshll.u32 %s6371_s8, 4  ;;  %s6297_s11 = int_to_ptr.vmem [resolvable:$false] %s6296_s11 }
  0x71   : > { %5564 = vmatprep.mubr.bf16.mxu0 %v239_v6  ;;  %v240_v15 = vpack.c.bf16 %v226_v12, %v225_v11  ;;  %v241_v16 = vpack.c.bf16 %v228_v14, %v227_v13  ;;  %v229_v17 = vld [vmem:[%s6570_s28 + $0x30] sm:$0xff]  ;;  %v230_v18 = vld [vmem:[%s6570_s28 + $0x38] sm:$0xff]  ;;  %v231_v19 = vld [vmem:[%s6570_s28 + $0x40] sm:$0xff]  ;;  %p6294_p2 = pnand %p6293_p1, %p6512_p6  ;;  %s6298_s25 = scalar_lea.vmem %s6297_s11, 4096 }
  0x72   : > { %5551 = vmatpush3.bf16.msra.mxu0 %v5878_v1  ;;  %v232_v20 = vld [vmem:[%s6570_s28 + $0x48] sm:$0xff]  ;;  %v242_v21 = vpack.c.bf16 %v230_v18, %v229_v17  ;;  %v233_v23 = vld [vmem:[%s6570_s28 + $0x50] sm:$0xff]  ;;  %v234_v24 = vld [vmem:[%s6570_s28 + $0x58] sm:$0xff]  ;;  %p6299_p8 = scmp.lt.s32.totalorder %s8539_s29, %s6297_s11  ;;  %p6300_p13 = scmp.lt.s32.totalorder %s6298_s25, %s6292_s22 }
  0x73   : > { %5552 = vmatprep.subr.bf16.mxu0 %v5879_v2  ;;  %v243_v22 = vpack.c.bf16 %v232_v20, %v231_v19  ;;  %v235_v25 = vld [vmem:[%s6570_s28 + $0x60] sm:$0xff]  ;;  %v236_v26 = vld [vmem:[%s6570_s28 + $0x68] sm:$0xff]  ;;  %v244_v27 = vpack.c.bf16 %v234_v24, %v233_v23  ;;  %v237_v29 = vld [vmem:[%s6570_s28 + $0x70] sm:$0xff]  ;;  %p6295_p4 = pneg %p6294_p2 }
  0x74   : > { %v245_v28 = vpack.c.bf16 %v236_v26, %v235_v25  ;;  %v238_v30 = vld [vmem:[%s6570_s28 + $0x78] sm:$0xff]  ;;  %v5885_v32 = vld [vmem:[#allocation5 + $0x40] sm:$0xff]   ;;  %v5886_v33 = vld [vmem:[#allocation5 + $0x48] sm:$0xff]   ;;  %p6301_p3 = por %p6300_p13, %p6299_p8 }
  0x75   : > { %v246_v31 = vpack.c.bf16 %v238_v30, %v237_v29  ;;  %5580 = vmatprep.subr.bf16.mxu1 %v5885_v32  ;;  %v5887_v34 = vld [vmem:[#allocation5 + $0x50] sm:$0xff]   ;;  %v5888_v35 = vld [vmem:[#allocation5 + $0x58] sm:$0xff]   ;;  %v5889_v36 = vld [vmem:[#allocation5 + $0x60] sm:$0xff]  }
  0x76   : > { %5553 = vmatpush3.bf16.msra.mxu0 %v5879_v2  ;;  %5581 = vmatpush3.bf16.msra.mxu1 %v5885_v32  ;;  %v5890_v37 = vld [vmem:[#allocation5 + $0x68] sm:$0xff]   ;;  %v5891_v38 = vld [vmem:[#allocation5 + $0x70] sm:$0xff]   ;;  %v5892_v39 = vld [vmem:[#allocation5 + $0x78] sm:$0xff]   ;;  %p6302_p7 = pnand %p6301_p3, %p6295_p4 }
  0x77   : > { %5554 = vmatprep.subr.bf16.mxu0 %v5880_v3  ;;  %5582 = vmatprep.subr.bf16.mxu1 %v5886_v33  ;;  %v6598_v56 = vld [vmem:[#allocation7 + $0x8] sm:$0xff] }
  0x7a   : > { %5555 = vmatpush3.bf16.msra.mxu0 %v5880_v3  ;;  %5583 = vmatpush3.bf16.msra.mxu1 %v5886_v33  ;;  %v6610_v3 = vrot.slane %v6598_v56, %v6601_v59 }
  0x7b   : > { %5556 = vmatprep.subr.bf16.mxu0 %v5881_v7  ;;  %5584 = vmatprep.subr.bf16.mxu1 %v5887_v34 }
  0x7e   : > { %5557 = vmatpush3.bf16.msra.mxu0 %v5881_v7  ;;  %5585 = vmatpush3.bf16.msra.mxu1 %v5887_v34 }
  0x7f   : > { %5558 = vmatprep.subr.bf16.mxu0 %v5882_v8  ;;  %5586 = vmatprep.subr.bf16.mxu1 %v5888_v35 }
  0x82   : > { %5559 = vmatpush3.bf16.msra.mxu0 %v5882_v8  ;;  %5587 = vmatpush3.bf16.msra.mxu1 %v5888_v35 }
  0x83   : > { %5560 = vmatprep.subr.bf16.mxu0 %v5883_v9  ;;  %5588 = vmatprep.subr.bf16.mxu1 %v5889_v36 }
  0x86   : > { %5561 = vmatpush3.bf16.msra.mxu0 %v5883_v9  ;;  %5589 = vmatpush3.bf16.msra.mxu1 %v5889_v36 }
  0x87   : > { %5562 = vmatprep.subr.bf16.mxu0 %v5884_v10  ;;  %5590 = vmatprep.subr.bf16.mxu1 %v5890_v37 }
  0x8a   : > { %5563 = vmatpush3.bf16.msra.mxu0 %v5884_v10  ;;  %5591 = vmatpush3.bf16.msra.mxu1 %v5890_v37 }
  0x8b   : > { %5592 = vmatprep.subr.bf16.mxu1 %v5891_v38 }
  0x8d   : > { %5565 = vmatmul.mubr.bf16.vlgmr.msra.gmra.mrb[0].mxu0 %v240_v15 }
  0x8e   : > { %5568 = vmatprep.mubr.bf16.mxu0 %v241_v16  ;;  %5593 = vmatpush3.bf16.msra.mxu1 %v5891_v38 }
  0x8f   : > { %5594 = vmatprep.subr.bf16.mxu1 %v5892_v39 }
  0x92   : > { %5595 = vmatpush3.bf16.msra.mxu1 %v5892_v39 }
  0x95   : > { %5569 = vmatmul.mubr.bf16.gmra.mrb[4].mxu0 %v242_v21 }
  0x96   : > { %5572 = vmatprep.mubr.bf16.mxu0 %v243_v22 }
  0x9d   : > { %5573 = vmatmul.mubr.bf16.gmra.mrb[8].mxu0 %v244_v27 }
  0x9e   : > { %5576 = vmatprep.mubr.bf16.mxu0 %v245_v28 }
  0xa5   : > { %5577 = vmatmul.mubr.bf16.gmra.mrb[12].mxu0 %v246_v31 }
 0x160   : > { %v5566_v40 = vpop.f32.mrb[0].mxu0 }
 0x161   : > { %v420_v42 = vrot.slane %v5566_v40, 4  ;;  %v345_v43 = vpop.f32.mrb[1].mxu0 }
 0x162   : > { %v408_v44 = vrot.slane %v345_v43, 4  ;;  %v5567_v45 = vpop.f32.mrb[2].mxu0 }
 0x163   : > { %v421_v46 = vadd.f32 %v5566_v40, %v420_v42  ;;  %v426_v47 = vrot.slane %v5567_v45, 4  ;;  %v348_v48 = vpop.f32.mrb[3].mxu0 }
 0x164   : > { %v409_v50 = vadd.f32 %v408_v44, %v345_v43  ;;  %v414_v51 = vrot.slane %v348_v48, 4 }
 0x165   : > { %v422_v52 = vrot.slane %v421_v46, 2  ;;  %v427_v53 = vadd.f32 %v5567_v45, %v426_v47 }
 0x166   : > { %v410_v54 = vrot.slane %v409_v50, 2  ;;  %v415_v55 = vadd.f32 %v414_v51, %v348_v48 }
 0x167   : > { %v423_v57 = vadd.f32 %v422_v52, %v421_v46  ;;  %v428_v58 = vrot.slane %v427_v53, 2 }
 0x168   : > { %v411_v60 = vadd.f32 %v410_v54, %v409_v50  ;;  %v416_v61 = vrot.slane %v415_v55, 2  ;;  %v6603_v62 = vpop.f32.mrb[4].mxu0 }
 0x169   : > { %v424_v63 = vrot.slane %v423_v57, 1  ;;  %v429_v0 = vadd.f32 %v428_v58, %v427_v53  ;;  %v444_v1 = vrot.slane %v6603_v62, 4  ;;  %v6606_v2 = vpop.f32.mrb[5].mxu0 }
 0x16a   : > { %v412_v4 = vrot.slane %v411_v60, 1  ;;  %v417_v5 = vadd.f32 %v416_v61, %v415_v55  ;;  %v432_v6 = vrot.slane %v6606_v2, 4  ;;  %v6613_v7 = vpop.f32.mrb[6].mxu0 }
 0x16b   : > { %v425_v8 = vadd.f32 %v424_v63, %v423_v57  ;;  %v430_v9 = vrot.slane %v429_v0, 1  ;;  %v445_v10 = vadd.f32 %v6603_v62, %v444_v1  ;;  %v450_v11 = vrot.slane %v6613_v7, 4  ;;  %v6617_v12 = vpop.f32.mrb[7].mxu0 }
 0x16c   : > { %v413_v13 = vadd.f32 %v412_v4, %v411_v60  ;;  %v418_v14 = vrot.slane %v417_v5, 1  ;;  %v433_v15 = vadd.f32 %v432_v6, %v6606_v2  ;;  %v438_v16 = vrot.slane %v6617_v12, 4 }
 0x16d   : > { %v506_v17 = vmul.f32 0.125, %v425_v8  ;;  %v431_v18 = vadd.f32 %v430_v9, %v429_v0  ;;  %v446_v19 = vrot.slane %v445_v10, 2  ;;  %v451_v20 = vadd.f32 %v6613_v7, %v450_v11 }
 0x16e   : > { %v504_v21 = vmul.f32 0.125, %v413_v13  ;;  %v419_v22 = vadd.f32 %v418_v14, %v417_v5  ;;  %v434_v23 = vrot.slane %v433_v15, 2  ;;  %v439_v24 = vadd.f32 %v438_v16, %v6617_v12 }
 0x16f   : > { %v6623_v25 = vsub.f32 %v5566_v40, %v506_v17  ;;  %v507_v26 = vmul.f32 0.125, %v431_v18  ;;  %v447_v27 = vadd.f32 %v446_v19, %v445_v10  ;;  %v452_v28 = vrot.slane %v451_v20, 2 }
 0x170   : > { %v6625_v29 = vsub.f32 %v345_v43, %v504_v21  ;;  %v505_v30 = vmul.f32 0.125, %v419_v22  ;;  %v435_v31 = vadd.f32 %v434_v23, %v433_v15  ;;  %v440_v32 = vrot.slane %v439_v24, 2  ;;  %v6627_v33 = vpop.f32.mrb[8].mxu0 }
 0x171   : > { %v538_v34 = vmul.f32 %v6623_v25, %v6623_v25  ;;  %v6631_v35 = vsub.f32 %v5567_v45, %v507_v26  ;;  %v448_v36 = vrot.slane %v447_v27, 1  ;;  %v453_v37 = vadd.f32 %v452_v28, %v451_v20  ;;  %v6633_v38 = vpop.f32.mrb[9].mxu0 }
 0x172   : > { %v536_v39 = vmul.f32 %v6625_v29, %v6625_v29  ;;  %v6637_v40 = vsub.f32 %v348_v48, %v505_v30  ;;  %v436_v41 = vrot.slane %v435_v31, 1  ;;  %v441_v42 = vadd.f32 %v440_v32, %v439_v24  ;;  %v6639_v43 = vpop.f32.mrb[10].mxu0 }
 0x173   : > { %v564_v44 = vrot.slane %v538_v34, 4  ;;  %v539_v46 = vmul.f32 %v6631_v35, %v6631_v35  ;;  %v449_v47 = vadd.f32 %v448_v36, %v447_v27  ;;  %v454_v45 = vrot.slane %v453_v37, 1  ;;  %v6643_v50 = vpop.f32.mrb[11].mxu0 }
 0x174   : > { %v552_v51 = vrot.slane %v536_v39, 4  ;;  %v537_v52 = vmul.f32 %v6637_v40, %v6637_v40  ;;  %v437_v53 = vadd.f32 %v436_v41, %v435_v31  ;;  %v442_v54 = vrot.slane %v441_v42, 1 }
 0x175   : > { %v565_v48 = vadd.f32 %v564_v44, %v538_v34  ;;  %v570_v55 = vrot.slane %v539_v46, 4  ;;  %v510_v57 = vmul.f32 0.125, %v449_v47  ;;  %v455_v58 = vadd.f32 %v454_v45, %v453_v37 }
 0x176   : > { %v553_v60 = vadd.f32 %v552_v51, %v536_v39  ;;  %v558_v61 = vrot.slane %v537_v52, 4  ;;  %v508_v63 = vmul.f32 0.125, %v437_v53  ;;  %v443_v0 = vadd.f32 %v442_v54, %v441_v42 }
 0x177   : > { %v566_v1 = vrot.slane %v565_v48, 2  ;;  %v571_v4 = vadd.f32 %v570_v55, %v539_v46  ;;  %v6648_v5 = vsub.f32 %v6603_v62, %v510_v57  ;;  %v511_v6 = vmul.f32 0.125, %v455_v58 }
 0x178   : > { %v554_v8 = vrot.slane %v553_v60, 2  ;;  %v559_v9 = vadd.f32 %v558_v61, %v537_v52  ;;  %v6651_v10 = vsub.f32 %v6606_v2, %v508_v63  ;;  %v509_v11 = vmul.f32 0.125, %v443_v0  ;;  %v6653_v13 = vpop.f32.mrb[12].mxu0 }
 0x179   : > { %v567_v14 = vadd.f32 %v566_v1, %v565_v48  ;;  %v572_v15 = vrot.slane %v571_v4, 2  ;;  %v542_v16 = vmul.f32 %v6648_v5, %v6648_v5  ;;  %v6658_v17 = vsub.f32 %v6613_v7, %v511_v6  ;;  %v6660_v18 = vpop.f32.mrb[13].mxu0 }
 0x17a   : > { %v555_v62 = vadd.f32 %v554_v8, %v553_v60  ;;  %v560_v19 = vrot.slane %v559_v9, 2  ;;  %v540_v20 = vmul.f32 %v6651_v10, %v6651_v10  ;;  %v6665_v2 = vsub.f32 %v6617_v12, %v509_v11  ;;  %v6667_v21 = vpop.f32.mrb[14].mxu0 }
 0x17b   : > { %v568_v22 = vrot.slane %v567_v14, 1  ;;  %v573_v23 = vadd.f32 %v572_v15, %v571_v4  ;;  %v588_v24 = vrot.slane %v542_v16, 4  ;;  %v543_v26 = vmul.f32 %v6658_v17, %v6658_v17  ;;  %v6671_v7 = vpop.f32.mrb[15].mxu0 }
 0x17c   : > { %v556_v27 = vrot.slane %v555_v62, 1  ;;  %v561_v28 = vadd.f32 %v560_v19, %v559_v9  ;;  %v576_v30 = vrot.slane %v540_v20, 4  ;;  %v541_v31 = vmul.f32 %v6665_v2, %v6665_v2 }
 0x17d   : > { %v569_v32 = vadd.f32 %v568_v22, %v567_v14  ;;  %v574_v34 = vrot.slane %v573_v23, 1  ;;  %v589_v12 = vadd.f32 %v588_v24, %v542_v16  ;;  %v594_v36 = vrot.slane %v543_v26, 4 }
 0x17e   : > { %v557_v37 = vadd.f32 %v556_v27, %v555_v62  ;;  %v562_v39 = vrot.slane %v561_v28, 1  ;;  %v577_v41 = vadd.f32 %v576_v30, %v540_v20  ;;  %v582_v42 = vrot.slane %v541_v31, 4 }
 0x17f   : > { %v650_v44 = vmul.f32 0.125, %v569_v32  ;;  %v575_v46 = vadd.f32 %v574_v34, %v573_v23  ;;  %v590_v47 = vrot.slane %v589_v12, 2  ;;  %v595_v45 = vadd.f32 %v594_v36, %v543_v26 }
 0x180   : > { %v648_v51 = vmul.f32 0.125, %v557_v37  ;;  %v563_v52 = vadd.f32 %v562_v39, %v561_v28  ;;  %v578_v53 = vrot.slane %v577_v41, 2  ;;  %v583_v54 = vadd.f32 %v582_v42, %v541_v31 }
 0x181   : > { %v666_v48 = vadd.f32 1e-05, %v650_v44  ;;  %v651_v55 = vmul.f32 0.125, %v575_v46  ;;  %v591_v57 = vadd.f32 %v590_v47, %v589_v12  ;;  %v596_v58 = vrot.slane %v595_v45, 2  ;;  %v6683_v44 = vld [vmem:[#allocation7] sm:$0xff] }
 0x182   : > { %v664_v60 = vadd.f32 1e-05, %v648_v51  ;;  %v649_v61 = vmul.f32 0.125, %v563_v52  ;;  %v579_v63 = vadd.f32 %v578_v53, %v577_v41  ;;  %v584_v0 = vrot.slane %v583_v54, 2 }
 0x183   : > { %5941 = vrsqrt.f32 %v666_v48  ;;  %v667_v1 = vadd.f32 1e-05, %v651_v55  ;;  %v592_v4 = vrot.slane %v591_v57, 1  ;;  %v597_v6 = vadd.f32 %v596_v58, %v595_v45 }
 0x184   : > { %5943 = vrsqrt.f32 %v664_v60  ;;  %v665_v8 = vadd.f32 1e-05, %v649_v61  ;;  %v580_v9 = vrot.slane %v579_v63, 1  ;;  %v585_v11 = vadd.f32 %v584_v0, %v583_v54 }
 0x185   : > { %5945 = vrsqrt.f32 %v667_v1  ;;  %v593_v14 = vadd.f32 %v592_v4, %v591_v57  ;;  %v598_v15 = vrot.slane %v597_v6, 1  ;;  %v468_v16 = vrot.slane %v6627_v33, 4 }
 0x186   : > { %5947 = vrsqrt.f32 %v665_v8  ;;  %v581_v62 = vadd.f32 %v580_v9, %v579_v63  ;;  %v586_v19 = vrot.slane %v585_v11, 1  ;;  %v456_v20 = vrot.slane %v6633_v38, 4 }
 0x187   : > { %v654_v22 = vmul.f32 0.125, %v593_v14  ;;  %v599_v23 = vadd.f32 %v598_v15, %v597_v6  ;;  %v469_v24 = vadd.f32 %v6627_v33, %v468_v16  ;;  %v474_v26 = vrot.slane %v6639_v43, 4 }
 0x188   : > { %v652_v27 = vmul.f32 0.125, %v581_v62  ;;  %v587_v28 = vadd.f32 %v586_v19, %v585_v11  ;;  %v457_v30 = vadd.f32 %v456_v20, %v6633_v38  ;;  %v462_v31 = vrot.slane %v6643_v50, 4 }
 0x189   : > { %v670_v32 = vadd.f32 1e-05, %v654_v22  ;;  %v655_v34 = vmul.f32 0.125, %v599_v23  ;;  %v470_v12 = vrot.slane %v469_v24, 2  ;;  %v475_v36 = vadd.f32 %v6639_v43, %v474_v26 }
 0x18a   : > { %v668_v37 = vadd.f32 1e-05, %v652_v27  ;;  %v653_v39 = vmul.f32 0.125, %v587_v28  ;;  %v458_v41 = vrot.slane %v457_v30, 2  ;;  %v463_v42 = vadd.f32 %v462_v31, %v6643_v50 }
 0x18b   : > { %5949 = vrsqrt.f32 %v670_v32  ;;  %v671_v46 = vadd.f32 1e-05, %v655_v34  ;;  %v471_v47 = vadd.f32 %v470_v12, %v469_v24  ;;  %v476_v45 = vrot.slane %v475_v36, 2 }
 0x18c   : > { %5951 = vrsqrt.f32 %v668_v37  ;;  %v669_v51 = vadd.f32 1e-05, %v653_v39  ;;  %v459_v52 = vadd.f32 %v458_v41, %v457_v30  ;;  %v464_v53 = vrot.slane %v463_v42, 2 }
 0x18d   : > { %v5942_v54 = vpop.eup %5941  ;;  %5953 = vrsqrt.f32 %v671_v46  ;;  %v472_v48 = vrot.slane %v471_v47, 1  ;;  %v477_v55 = vadd.f32 %v476_v45, %v475_v36  ;;  %v492_v57 = vrot.slane %v6653_v13, 4 }
 0x18e   : > { %v5944_v58 = vpop.eup %5943  ;;  %v698_v60 = vmul.f32 %v5942_v54, %v6683_v44  ;;  %5955 = vrsqrt.f32 %v669_v51  ;;  %v460_v61 = vrot.slane %v459_v52, 1  ;;  %v465_v63 = vadd.f32 %v464_v53, %v463_v42 }
 0x18f   : > { %v5946_v0 = vpop.eup %5945  ;;  %v696_v1 = vmul.f32 %v5944_v58, %v6683_v44  ;;  %v473_v4 = vadd.f32 %v472_v48, %v471_v47  ;;  %v478_v6 = vrot.slane %v477_v55, 1  ;;  %v493_v8 = vadd.f32 %v6653_v13, %v492_v57 }
 0x190   : > { %v5948_v9 = vpop.eup %5947  ;;  %v723_v11 = vrot.slane %v698_v60, %v6601_v59  ;;  %v699_v14 = vmul.f32 %v5946_v0, %v6683_v44  ;;  %v461_v15 = vadd.f32 %v460_v61, %v459_v52  ;;  %v466_v16 = vrot.slane %v465_v63, 1 }
 0x191   : > { %v715_v62 = vrot.slane %v696_v1, %v6601_v59  ;;  %v697_v19 = vmul.f32 %v5948_v9, %v6683_v44  ;;  %v514_v20 = vmul.f32 0.125, %v473_v4  ;;  %v479_v22 = vadd.f32 %v478_v6, %v477_v55 }
 0x192   : > { %v778_v23 = vmul.f32 %v723_v11, %v6623_v25  ;;  %v727_v24 = vrot.slane %v699_v14, %v6601_v59  ;;  %v512_v26 = vmul.f32 0.125, %v461_v15  ;;  %v467_v27 = vadd.f32 %v466_v16, %v465_v63 }
 0x193   : > { %v719_v28 = vrot.slane %v697_v19, %v6601_v59  ;;  %v6697_v30 = vsub.f32 %v6627_v33, %v514_v20  ;;  %v515_v31 = vmul.f32 0.125, %v479_v22  ;;  %v6703_v34 = vmul.f32 %v715_v62, %v6625_v29 }
 0x194   : > { %v6700_v32 = vadd.f32 %v6610_v3, %v778_v23  ;;  %v6706_v12 = vsub.f32 %v6633_v38, %v512_v26  ;;  %v513_v25 = vmul.f32 0.125, %v467_v27  ;;  %v779_v37 = vmul.f32 %v727_v24, %v6631_v35 }
 0x195   : > { %v5950_v36 = vpop.eup %5949  ;;  %v546_v39 = vmul.f32 %v6697_v30, %v6697_v30  ;;  %v6712_v33 = vsub.f32 %v6639_v43, %v515_v31  ;;  %v494_v41 = vrot.slane %v493_v8, 2  ;;  %v6715_v46 = vmul.f32 %v719_v28, %v6637_v40 }
 0x196   : > { %v5952_v42 = vpop.eup %5951  ;;  %v702_v29 = vmul.f32 %v5950_v36, %v6683_v44  ;;  %v544_v38 = vmul.f32 %v6706_v12, %v6706_v12  ;;  %v6721_v47 = vsub.f32 %v6643_v50, %v513_v25  ;;  %v6737_v11 = vadd.f32 %v6610_v3, %v779_v37 }
 0x197   : > { %v5954_v35 = vpop.eup %5953  ;;  %v700_v45 = vmul.f32 %v5952_v42, %v6683_v44  ;;  %v612_v51 = vrot.slane %v546_v39, 4  ;;  %v547_v43 = vmul.f32 %v6712_v33, %v6712_v33  ;;  %v495_v52 = vadd.f32 %v494_v41, %v493_v8 }
 0x198   : > { %v5956_v53 = vpop.eup %5955  ;;  %v739_v40 = vrot.slane %v702_v29, %v6601_v59  ;;  %v703_v54 = vmul.f32 %v5954_v35, %v6683_v44  ;;  %v600_v48 = vrot.slane %v544_v38, 4  ;;  %v545_v55 = vmul.f32 %v6721_v47, %v6721_v47 }
 0x199   : > { %v731_v50 = vrot.slane %v700_v45, %v6601_v59  ;;  %v701_v57 = vmul.f32 %v5956_v53, %v6683_v44  ;;  %v613_v58 = vadd.f32 %v612_v51, %v546_v39  ;;  %v618_v60 = vrot.slane %v547_v43, 4 }
 0x19a   : > { %v782_v61 = vmul.f32 %v739_v40, %v6648_v5  ;;  %v743_v63 = vrot.slane %v703_v54, %v6601_v59  ;;  %v601_v0 = vadd.f32 %v600_v48, %v544_v38  ;;  %v606_v1 = vrot.slane %v545_v55, 4 }
 0x19b   : > { %v780_v4 = vmul.f32 %v731_v50, %v6651_v10  ;;  %v735_v6 = vrot.slane %v701_v57, %v6601_v59  ;;  %v614_v8 = vrot.slane %v613_v58, 2  ;;  %v619_v9 = vadd.f32 %v618_v60, %v547_v43 }
 0x19c   : > { %v6740_v14 = vadd.f32 %v6610_v3, %v782_v61  ;;  %v602_v15 = vrot.slane %v601_v0, 2  ;;  %v607_v16 = vadd.f32 %v606_v1, %v545_v55  ;;  %v6743_v5 = vmul.f32 %v743_v63, %v6658_v17 }
 0x19d   : > { %v781_v62 = vmul.f32 %v735_v6, %v6665_v2  ;;  %v615_v19 = vadd.f32 %v614_v8, %v613_v58  ;;  %v620_v20 = vrot.slane %v619_v9, 2  ;;  %v6747_v10 = vadd.f32 %v6610_v3, %v780_v4 }
 0x19e   : > { %v603_v22 = vadd.f32 %v602_v15, %v601_v0  ;;  %v608_v23 = vrot.slane %v607_v16, 2  ;;  %v496_v24 = vrot.slane %v495_v52, 1  ;;  %v480_v31 = vrot.slane %v6660_v18, 4 }
 0x19f   : > { %v6750_v26 = vadd.f32 %v6610_v3, %v781_v62  ;;  %v616_v27 = vrot.slane %v615_v19, 1  ;;  %v621_v28 = vadd.f32 %v620_v20, %v619_v9  ;;  %v498_v2 = vrot.slane %v6667_v21, 4 }
 0x1a0   : > { %v604_v25 = vrot.slane %v603_v22, 1  ;;  %v609_v17 = vadd.f32 %v608_v23, %v607_v16  ;;  %v497_v36 = vadd.f32 %v496_v24, %v495_v52  ;;  %v481_v41 = vadd.f32 %v480_v31, %v6660_v18 }
 0x1a1   : > { %v617_v37 = vadd.f32 %v616_v27, %v615_v19  ;;  %v622_v39 = vrot.slane %v621_v28, 1  ;;  %v486_v42 = vrot.slane %v6671_v7, 4  ;;  %v499_v45 = vadd.f32 %v6667_v21, %v498_v2 }
 0x1a2   : > { %v605_v29 = vadd.f32 %v604_v25, %v603_v22  ;;  %v610_v38 = vrot.slane %v609_v17, 1  ;;  %v518_v35 = vmul.f32 0.125, %v497_v36  ;;  %v482_v53 = vrot.slane %v481_v41, 2 }
 0x1a3   : > { %v658_v51 = vmul.f32 0.125, %v617_v37  ;;  %v623_v43 = vadd.f32 %v622_v39, %v621_v28  ;;  %v487_v40 = vadd.f32 %v486_v42, %v6671_v7  ;;  %v500_v55 = vrot.slane %v499_v45, 2 }
 0x1a4   : > { %v656_v54 = vmul.f32 0.125, %v605_v29  ;;  %v611_v52 = vadd.f32 %v610_v38, %v609_v17  ;;  %v6759_v48 = vsub.f32 %v6653_v13, %v518_v35  ;;  %v483_v58 = vadd.f32 %v482_v53, %v481_v41 }
 0x1a5   : > { %v674_v50 = vadd.f32 1e-05, %v658_v51  ;;  %v659_v57 = vmul.f32 0.125, %v623_v43  ;;  %v488_v60 = vrot.slane %v487_v40, 2  ;;  %v501_v1 = vadd.f32 %v500_v55, %v499_v45 }
 0x1a6   : > { %v672_v61 = vadd.f32 1e-05, %v656_v54  ;;  %v657_v63 = vmul.f32 0.125, %v611_v52  ;;  %v550_v0 = vmul.f32 %v6759_v48, %v6759_v48  ;;  %v484_v6 = vrot.slane %v483_v58, 1 }
 0x1a7   : > { %5957 = vrsqrt.f32 %v674_v50  ;;  %v675_v4 = vadd.f32 1e-05, %v659_v57  ;;  %v489_v8 = vadd.f32 %v488_v60, %v487_v40  ;;  %v502_v13 = vrot.slane %v501_v1, 1 }
 0x1a8   : > { %5959 = vrsqrt.f32 %v672_v61  ;;  %v673_v9 = vadd.f32 1e-05, %v657_v63  ;;  %v636_v15 = vrot.slane %v550_v0, 4  ;;  %v485_v16 = vadd.f32 %v484_v6, %v483_v58 }
 0x1a9   : > { %5961 = vrsqrt.f32 %v675_v4  ;;  %v490_v62 = vrot.slane %v489_v8, 1  ;;  %v796_v19 = vadd.f32 %v6610_v3, %v6703_v34  ;;  %v503_v22 = vadd.f32 %v502_v13, %v501_v1 }
 0x1aa   : > { %5963 = vrsqrt.f32 %v673_v9  ;;  %v637_v20 = vadd.f32 %v636_v15, %v550_v0  ;;  %v797_v23 = vadd.f32 %v6610_v3, %v6715_v46  ;;  %v516_v24 = vmul.f32 0.125, %v485_v16 }
 0x1ab   : > { %v491_v27 = vadd.f32 %v490_v62, %v489_v8  ;;  %vm812_vm0 = vcmp.ge.f32.partialorder %v796_v19, 0.0  ;;  %v828_v28 = vmul.f32 0.01, %v796_v19  ;;  %v519_v25 = vmul.f32 0.125, %v503_v22 }
 0x1ac   : > { %v638_v31 = vrot.slane %v637_v20, 2  ;;  %vm813_vm1 = vcmp.ge.f32.partialorder %v797_v23, 0.0  ;;  %v829_v17 = vmul.f32 0.01, %v797_v23  ;;  %v6768_v36 = vsub.f32 %v6660_v18, %v516_v24 }
 0x1ad   : > { %v517_v2 = vmul.f32 0.125, %v491_v27  ;;  %v844_v37 = vsel %vm812_vm0, %v796_v19, %v828_v28  ;;  %vm814_vm2 = vcmp.ge.f32.partialorder %v6700_v32, 0.0  ;;  %v6772_v39 = vsub.f32 %v6667_v21, %v519_v25 }
 0x1ae   : > { %v639_v34 = vadd.f32 %v638_v31, %v637_v20  ;;  %v845_v46 = vsel %vm813_vm1, %v797_v23, %v829_v17  ;;  %vm815_vm3 = vcmp.ge.f32.partialorder %v6737_v11, 0.0  ;;  %v548_v41 = vmul.f32 %v6768_v36, %v6768_v36 }
 0x1af   : > { %v6778_v42 = vsub.f32 %v6671_v7, %v517_v2  ;;  %v860_v29 = vpack.c.bf16 %v845_v46, %v844_v37  ;;  %v830_v18 = vmul.f32 0.01, %v6700_v32  ;;  %v6783_v38 = vadd.f32 %v6610_v3, %v6743_v5 }
 0x1b0   : > { %v640_v35 = vrot.slane %v639_v34, 1  ;;  %v551_v21 = vmul.f32 %v6772_v39, %v6772_v39  ;;  %v831_v45 = vmul.f32 0.01, %v6737_v11  ;;  %v624_v43 = vrot.slane %v548_v41, 4 }
 0x1b1   : > { %v5958_v51 = vpop.eup %5957  ;;  %v549_v53 = vmul.f32 %v6778_v42, %v6778_v42  ;;  %5596 = vmatprep.mubr.bf16.mxu1 %v860_v29  ;;  %v846_v7 = vsel %vm814_vm2, %v6700_v32, %v830_v18  ;;  %vm816_vm4 = vcmp.ge.f32.partialorder %v6747_v10, 0.0  ;;  %vm817_vm5 = vcmp.ge.f32.partialorder %v6750_v26, 0.0 }
 0x1b2   : > { %v5960_v5 = vpop.eup %5959  ;;  %v706_v40 = vmul.f32 %v5958_v51, %v6683_v44  ;;  %v641_v54 = vadd.f32 %v640_v35, %v639_v34  ;;  %v642_v52 = vrot.slane %v551_v21, 4  ;;  %v847_v55 = vsel %vm815_vm3, %v6737_v11, %v831_v45 }
 0x1b3   : > { %v5962_v50 = vpop.eup %5961  ;;  %v704_v57 = vmul.f32 %v5960_v5, %v6683_v44  ;;  %v625_v58 = vadd.f32 %v624_v43, %v548_v41  ;;  %v630_v60 = vrot.slane %v549_v53, 4  ;;  %v861_v61 = vpack.c.bf16 %v847_v55, %v846_v7 }
 0x1b4   : > { %v5964_v32 = vpop.eup %5963  ;;  %v755_v63 = vrot.slane %v706_v40, %v6601_v59  ;;  %v707_v0 = vmul.f32 %v5962_v50, %v6683_v44  ;;  %v662_v1 = vmul.f32 0.125, %v641_v54  ;;  %v643_v4 = vadd.f32 %v642_v52, %v551_v21 }
 0x1b5   : > { %v747_v6 = vrot.slane %v704_v57, %v6601_v59  ;;  %v705_v8 = vmul.f32 %v5964_v32, %v6683_v44  ;;  %v626_v9 = vrot.slane %v625_v58, 2  ;;  %v631_v15 = vadd.f32 %v630_v60, %v549_v53  ;;  %5597 = vmatmul.mubr.bf16.vlgmr.msra.gmra.mrb[0].mxu1 %v861_v61 }
 0x1b6   : > { %v786_v11 = vmul.f32 %v755_v63, %v6697_v30  ;;  %v759_v13 = vrot.slane %v707_v0, %v6601_v59  ;;  %v678_v16 = vadd.f32 1e-05, %v662_v1  ;;  %v644_v62 = vrot.slane %v643_v4, 2 }
 0x1b7   : > { %v784_v19 = vmul.f32 %v747_v6, %v6706_v12  ;;  %v751_v20 = vrot.slane %v705_v8, %v6601_v59  ;;  %v627_v22 = vadd.f32 %v626_v9, %v625_v58  ;;  %v632_v23 = vrot.slane %v631_v15, 2 }
 0x1b8   : > { %v806_v24 = vadd.f32 %v6610_v3, %v786_v11  ;;  %v787_v27 = vmul.f32 %v759_v13, %v6712_v33  ;;  %5965 = vrsqrt.f32 %v678_v16  ;;  %v645_v28 = vadd.f32 %v644_v62, %v643_v4 }
 0x1b9   : > { %v804_v31 = vadd.f32 %v6610_v3, %v784_v19  ;;  %v785_v30 = vmul.f32 %v751_v20, %v6721_v47  ;;  %v628_v25 = vrot.slane %v627_v22, 1  ;;  %v633_v17 = vadd.f32 %v632_v23, %v631_v15 }
 0x1ba   : > { %v807_v2 = vadd.f32 %v6610_v3, %v787_v27  ;;  %v646_v37 = vrot.slane %v645_v28, 1  ;;  %v832_v12 = vmul.f32 0.01, %v6747_v10  ;;  %v833_v34 = vmul.f32 0.01, %v6750_v26 }
 0x1bb   : > { %v805_v46 = vadd.f32 %v6610_v3, %v785_v30  ;;  %v629_v41 = vadd.f32 %v628_v25, %v627_v22  ;;  %v634_v29 = vrot.slane %v633_v17, 1  ;;  %vm818_vm6 = vcmp.ge.f32.partialorder %v6740_v14, 0.0 }
 0x1bc   : > { %v647_v33 = vadd.f32 %v646_v37, %v645_v28  ;;  %v848_v47 = vsel %vm816_vm4, %v6747_v10, %v832_v12  ;;  %v849_v18 = vsel %vm817_vm5, %v6750_v26, %v833_v34  ;;  %vm819_vm7 = vcmp.ge.f32.partialorder %v6783_v38, 0.0 }
 0x1bd   : > { %v660_v35 = vmul.f32 0.125, %v629_v41  ;;  %v635_v21 = vadd.f32 %v634_v29, %v633_v17  ;;  %v862_v45 = vpack.c.bf16 %v849_v18, %v848_v47  ;;  %v834_v51 = vmul.f32 0.01, %v6740_v14  ;;  %v5896_v41 = vld [vmem:[#allocation5 + $0x98] sm:$0xff]   ;;  %v5897_v29 = vld [vmem:[#allocation5 + $0xa0] sm:$0xff]   ;;  %v5899_v47 = vld [vmem:[#allocation5 + $0xb0] sm:$0xff]  }
 0x1be   : > { %v663_v43 = vmul.f32 0.125, %v647_v33  ;;  %v835_v53 = vmul.f32 0.01, %v6783_v38  ;;  %vm820_vm8 = vcmp.ge.f32.partialorder %v804_v31, 0.0  ;;  %vm821_vm9 = vcmp.ge.f32.partialorder %v805_v46, 0.0  ;;  %v5898_v33 = vld [vmem:[#allocation5 + $0xa8] sm:$0xff]  }
 0x1bf   : > { %v676_v7 = vadd.f32 1e-05, %v660_v35  ;;  %v661_v5 = vmul.f32 0.125, %v635_v21  ;;  %5600 = vmatprep.mubr.bf16.mxu1 %v862_v45  ;;  %v850_v10 = vsel %vm818_vm6, %v6740_v14, %v834_v51  ;;  %v836_v26 = vmul.f32 0.01, %v804_v31  ;;  %v5900_v18 = vld [vmem:[#allocation5 + $0xb8] sm:$0xff]  }
 0x1c0   : > { %v679_v40 = vadd.f32 1e-05, %v663_v43  ;;  %v851_v54 = vsel %vm819_vm7, %v6783_v38, %v835_v53  ;;  %v837_v52 = vmul.f32 0.01, %v805_v46  ;;  %vm822_vm10 = vcmp.ge.f32.partialorder %v806_v24, 0.0 }
 0x1c1   : > { %5967 = vrsqrt.f32 %v676_v7  ;;  %v677_v55 = vadd.f32 1e-05, %v661_v5  ;;  %v863_v50 = vpack.c.bf16 %v851_v54, %v850_v10  ;;  %v852_v57 = vsel %vm820_vm8, %v804_v31, %v836_v26 }
 0x1c2   : > { %v5966_v58 = vpop.eup %5965  ;;  %5969 = vrsqrt.f32 %v679_v40  ;;  %v853_v60 = vsel %vm821_vm9, %v805_v46, %v837_v52  ;;  %vm823_vm11 = vcmp.ge.f32.partialorder %v807_v2, 0.0  ;;  %v838_v61 = vmul.f32 0.01, %v806_v24  ;;  %v5894_v46 = vld [vmem:[#allocation5 + $0x88] sm:$0xff]  }
 0x1c3   : > { %v710_v32 = vmul.f32 %v5966_v58, %v6683_v44  ;;  %5971 = vrsqrt.f32 %v677_v55  ;;  %5601 = vmatmul.mubr.bf16.gmra.mrb[4].mxu1 %v863_v50  ;;  %v864_v14 = vpack.c.bf16 %v853_v60, %v852_v57  ;;  %v839_v63 = vmul.f32 0.01, %v807_v2 }
 0x1c4   : > { %v854_v38 = vsel %vm822_vm10, %v806_v24, %v838_v61 }
 0x1c5   : > { %5604 = vmatprep.mubr.bf16.mxu1 %v864_v14  ;;  %v855_v0 = vsel %vm823_vm11, %v807_v2, %v839_v63  ;;  %v771_v4 = vrot.slane %v710_v32, %v6601_v59 }
 0x1c6   : > { %v865_v1 = vpack.c.bf16 %v855_v0, %v854_v38 }
 0x1c7   : > { %v790_v8 = vmul.f32 %v771_v4, %v6759_v48 }
 0x1c9   : > { %v810_v19 = vadd.f32 %v6610_v3, %v790_v8 }
 0x1cb   : > { %v5968_v6 = vpop.eup %5967  ;;  %5605 = vmatmul.mubr.bf16.gmra.mrb[8].mxu1 %v865_v1  ;;  %v842_v31 = vmul.f32 0.01, %v810_v19  ;;  %vm826_vm12 = vcmp.ge.f32.partialorder %v810_v19, 0.0 }
 0x1cc   : > { %v5970_v9 = vpop.eup %5969  ;;  %v708_v15 = vmul.f32 %v5968_v6, %v6683_v44 }
 0x1cd   : > { %v5972_v11 = vpop.eup %5971  ;;  %v711_v13 = vmul.f32 %v5970_v9, %v6683_v44  ;;  %v858_v2 = vsel %vm826_vm12, %v810_v19, %v842_v31  ;;  %v6849_v9 = vsub.s32 1, %v6596_v49 }
 0x1ce   : > { %v763_v16 = vrot.slane %v708_v15, %v6601_v59  ;;  %v709_v62 = vmul.f32 %v5972_v11, %v6683_v44 }
 0x1cf   : > { %v775_v20 = vrot.slane %v711_v13, %v6601_v59 }
 0x1d0   : > { %v788_v22 = vmul.f32 %v763_v16, %v6768_v36  ;;  %v767_v23 = vrot.slane %v709_v62, %v6601_v59 }
 0x1d1   : > { %v791_v48 = vmul.f32 %v775_v20, %v6772_v39 }
 0x1d2   : > { %v808_v24 = vadd.f32 %v6610_v3, %v788_v22  ;;  %v789_v27 = vmul.f32 %v767_v23, %v6778_v42  ;;  %v5893_v42 = vld [vmem:[#allocation5 + $0x80] sm:$0xff]   ;;  %v6860_v22 = vrot.slane %v6598_v56, %v6849_v9 }
 0x1d3   : > { %v811_v28 = vadd.f32 %v6610_v3, %v791_v48  ;;  %5612 = vmatprep.subr.bf16.mxu0 %v5893_v42 }
 0x1d4   : > { %v809_v30 = vadd.f32 %v6610_v3, %v789_v27  ;;  %v840_v25 = vmul.f32 0.01, %v808_v24  ;;  %vm824_vm13 = vcmp.ge.f32.partialorder %v808_v24, 0.0  ;;  %5613 = vmatpush3.bf16.msra.mxu0 %v5893_v42  ;;  %v5895_v3 = vld [vmem:[#allocation5 + $0x90] sm:$0xff]  }
 0x1d5   : > { %vm827_vm14 = vcmp.ge.f32.partialorder %v811_v28, 0.0  ;;  %v843_v17 = vmul.f32 0.01, %v811_v28  ;;  %5614 = vmatprep.subr.bf16.mxu0 %v5894_v46 }
 0x1d6   : > { %vm825_vm15 = vcmp.ge.f32.partialorder %v809_v30, 0.0  ;;  %v841_v36 = vmul.f32 0.01, %v809_v30  ;;  %v856_v37 = vsel %vm824_vm13, %v808_v24, %v840_v25 }
 0x1d7   : > { %v859_v59 = vsel %vm827_vm14, %v811_v28, %v843_v17 }
 0x1d8   : > { %v857_v39 = vsel %vm825_vm15, %v809_v30, %v841_v36  ;;  %v867_v12 = vpack.c.bf16 %v859_v59, %v858_v2  ;;  %5615 = vmatpush3.bf16.msra.mxu0 %v5894_v46 }
 0x1d9   : > { %v866_v34 = vpack.c.bf16 %v857_v39, %v856_v37  ;;  %5616 = vmatprep.subr.bf16.mxu0 %v5895_v3 }
 0x1db   : > { %5608 = vmatprep.mubr.bf16.mxu1 %v866_v34 }
 0x1dc   : > { %5609 = vmatmul.mubr.bf16.gmra.mrb[12].mxu1 %v867_v12  ;;  %5617 = vmatpush3.bf16.msra.mxu0 %v5895_v3 }
 0x1dd   : > { %5618 = vmatprep.subr.bf16.mxu0 %v5896_v41 }
 0x1e0   : > { %5619 = vmatpush3.bf16.msra.mxu0 %v5896_v41 }
 0x1e1   : > { %5620 = vmatprep.subr.bf16.mxu0 %v5897_v29 }
 0x1e4   : > { %5621 = vmatpush3.bf16.msra.mxu0 %v5897_v29 }
 0x1e5   : > { %5622 = vmatprep.subr.bf16.mxu0 %v5898_v33 }
 0x1e8   : > { %5623 = vmatpush3.bf16.msra.mxu0 %v5898_v33 }
 0x1e9   : > { %5624 = vmatprep.subr.bf16.mxu0 %v5899_v47 }
 0x1ec   : > { %5625 = vmatpush3.bf16.msra.mxu0 %v5899_v47 }
 0x1ed   : > { %5626 = vmatprep.subr.bf16.mxu0 %v5900_v18 }
 0x1f0   : > { %5627 = vmatpush3.bf16.msra.mxu0 %v5900_v18 }
 0x288   : > { %v5598_v35 = vpop.f32.mrb[0].mxu1 }
 0x289   : > { %v1042_v21 = vrot.slane %v5598_v35, 4  ;;  %v967_v45 = vpop.f32.mrb[1].mxu1 }
 0x28a   : > { %v1030_v51 = vrot.slane %v967_v45, 4  ;;  %v5599_v43 = vpop.f32.mrb[2].mxu1 }
 0x28b   : > { %v1043_v53 = vadd.f32 %v5598_v35, %v1042_v21  ;;  %v1048_v7 = vrot.slane %v5599_v43, 4  ;;  %v970_v5 = vpop.f32.mrb[3].mxu1 }
 0x28c   : > { %v1031_v10 = vadd.f32 %v1030_v51, %v967_v45  ;;  %v1036_v26 = vrot.slane %v970_v5, 4 }
 0x28d   : > { %v1044_v40 = vrot.slane %v1043_v53, 2  ;;  %v1049_v54 = vadd.f32 %v5599_v43, %v1048_v7 }
 0x28e   : > { %v1032_v52 = vrot.slane %v1031_v10, 2  ;;  %v1037_v55 = vadd.f32 %v1036_v26, %v970_v5 }
 0x28f   : > { %v1045_v50 = vadd.f32 %v1044_v40, %v1043_v53  ;;  %v1050_v57 = vrot.slane %v1049_v54, 2 }
 0x290   : > { %v1033_v58 = vadd.f32 %v1032_v52, %v1031_v10  ;;  %v1038_v60 = vrot.slane %v1037_v55, 2 }
 0x291   : > { %v1046_v61 = vrot.slane %v1045_v50, 1  ;;  %v1051_v32 = vadd.f32 %v1050_v57, %v1049_v54 }
 0x292   : > { %v1034_v14 = vrot.slane %v1033_v58, 1  ;;  %v1039_v63 = vadd.f32 %v1038_v60, %v1037_v55 }
 0x293   : > { %v1047_v38 = vadd.f32 %v1046_v61, %v1045_v50  ;;  %v1052_v0 = vrot.slane %v1051_v32, 1 }
 0x294   : > { %v1035_v1 = vadd.f32 %v1034_v14, %v1033_v58  ;;  %v1040_v4 = vrot.slane %v1039_v63, 1 }
 0x295   : > { %v1128_v6 = vmul.f32 0.125, %v1047_v38  ;;  %v1053_v8 = vadd.f32 %v1052_v0, %v1051_v32 }
 0x296   : > { %v1126_v15 = vmul.f32 0.125, %v1035_v1  ;;  %v1041_v11 = vadd.f32 %v1040_v4, %v1039_v63  ;;  %v6851_v13 = vpop.f32.mrb[4].mxu1 }
 0x297   : > { %v6853_v16 = vsub.f32 %v5598_v35, %v1128_v6  ;;  %v1129_v62 = vmul.f32 0.125, %v1053_v8  ;;  %v1066_v19 = vrot.slane %v6851_v13, 4  ;;  %v6856_v20 = vpop.f32.mrb[5].mxu1 }
 0x298   : > { %v6862_v23 = vsub.f32 %v967_v45, %v1126_v15  ;;  %v1127_v48 = vmul.f32 0.125, %v1041_v11  ;;  %v1054_v24 = vrot.slane %v6856_v20, 4  ;;  %v6865_v27 = vpop.f32.mrb[6].mxu1 }
 0x299   : > { %v1160_v28 = vmul.f32 %v6853_v16, %v6853_v16  ;;  %v6869_v31 = vsub.f32 %v5599_v43, %v1129_v62  ;;  %v1067_v30 = vadd.f32 %v6851_v13, %v1066_v19  ;;  %v1072_v25 = vrot.slane %v6865_v27, 4  ;;  %v6873_v17 = vpop.f32.mrb[7].mxu1 }
 0x29a   : > { %v1158_v56 = vmul.f32 %v6862_v23, %v6862_v23  ;;  %v6877_v36 = vsub.f32 %v970_v5, %v1127_v48  ;;  %v1055_v2 = vadd.f32 %v1054_v24, %v6856_v20  ;;  %v1060_v59 = vrot.slane %v6873_v17, 4 }
 0x29b   : > { %v1186_v37 = vrot.slane %v1160_v28, 4  ;;  %v1161_v39 = vmul.f32 %v6869_v31, %v6869_v31  ;;  %v1068_v12 = vrot.slane %v1067_v30, 2  ;;  %v1073_v34 = vadd.f32 %v6865_v27, %v1072_v25 }
 0x29c   : > { %v1174_v42 = vrot.slane %v1158_v56, 4  ;;  %v1159_v46 = vmul.f32 %v6877_v36, %v6877_v36  ;;  %v1056_v3 = vrot.slane %v1055_v2, 2  ;;  %v1061_v41 = vadd.f32 %v1060_v59, %v6873_v17 }
 0x29d   : > { %v1187_v29 = vadd.f32 %v1186_v37, %v1160_v28  ;;  %v1192_v33 = vrot.slane %v1161_v39, 4  ;;  %v1069_v47 = vadd.f32 %v1068_v12, %v1067_v30  ;;  %v1074_v18 = vrot.slane %v1073_v34, 2 }
 0x29e   : > { %v1175_v35 = vadd.f32 %v1174_v42, %v1158_v56  ;;  %v1180_v21 = vrot.slane %v1159_v46, 4  ;;  %v1057_v45 = vadd.f32 %v1056_v3, %v1055_v2  ;;  %v1062_v51 = vrot.slane %v1061_v41, 2  ;;  %v6887_v43 = vpop.f32.mrb[8].mxu1 }
 0x29f   : > { %v1188_v53 = vrot.slane %v1187_v29, 2  ;;  %v1193_v7 = vadd.f32 %v1192_v33, %v1161_v39  ;;  %v1070_v5 = vrot.slane %v1069_v47, 1  ;;  %v1075_v10 = vadd.f32 %v1074_v18, %v1073_v34  ;;  %v6889_v26 = vpop.f32.mrb[9].mxu1 }
 0x2a0   : > { %v1176_v40 = vrot.slane %v1175_v35, 2  ;;  %v1181_v54 = vadd.f32 %v1180_v21, %v1159_v46  ;;  %v1058_v52 = vrot.slane %v1057_v45, 1  ;;  %v1063_v55 = vadd.f32 %v1062_v51, %v1061_v41  ;;  %v6891_v50 = vpop.f32.mrb[10].mxu1 }
 0x2a1   : > { %v1189_v57 = vadd.f32 %v1188_v53, %v1187_v29  ;;  %v1194_v58 = vrot.slane %v1193_v7, 2  ;;  %v1071_v60 = vadd.f32 %v1070_v5, %v1069_v47  ;;  %v1076_v61 = vrot.slane %v1075_v10, 1  ;;  %v6893_v32 = vpop.f32.mrb[11].mxu1 }
 0x2a2   : > { %v1177_v14 = vadd.f32 %v1176_v40, %v1175_v35  ;;  %v1182_v63 = vrot.slane %v1181_v54, 2  ;;  %v1059_v38 = vadd.f32 %v1058_v52, %v1057_v45  ;;  %v1064_v0 = vrot.slane %v1063_v55, 1 }
 0x2a3   : > { %v1190_v1 = vrot.slane %v1189_v57, 1  ;;  %v1195_v4 = vadd.f32 %v1194_v58, %v1193_v7  ;;  %v1132_v6 = vmul.f32 0.125, %v1071_v60  ;;  %v1077_v8 = vadd.f32 %v1076_v61, %v1075_v10 }
 0x2a4   : > { %v1178_v15 = vrot.slane %v1177_v14, 1  ;;  %v1183_v11 = vadd.f32 %v1182_v63, %v1181_v54  ;;  %v1130_v62 = vmul.f32 0.125, %v1059_v38  ;;  %v1065_v19 = vadd.f32 %v1064_v0, %v1063_v55 }
 0x2a5   : > { %v1191_v48 = vadd.f32 %v1190_v1, %v1189_v57  ;;  %v1196_v24 = vrot.slane %v1195_v4, 1  ;;  %v6896_v28 = vsub.f32 %v6851_v13, %v1132_v6  ;;  %v1133_v30 = vmul.f32 0.125, %v1077_v8 }
 0x2a6   : > { %v1179_v25 = vadd.f32 %v1178_v15, %v1177_v14  ;;  %v1184_v56 = vrot.slane %v1183_v11, 1  ;;  %v6899_v2 = vsub.f32 %v6856_v20, %v1130_v62  ;;  %v1131_v59 = vmul.f32 0.125, %v1065_v19 }
 0x2a7   : > { %v1272_v37 = vmul.f32 0.125, %v1191_v48  ;;  %v1197_v39 = vadd.f32 %v1196_v24, %v1195_v4  ;;  %v1164_v12 = vmul.f32 %v6896_v28, %v6896_v28  ;;  %v6904_v34 = vsub.f32 %v6865_v27, %v1133_v30 }
 0x2a8   : > { %v1270_v42 = vmul.f32 0.125, %v1179_v25  ;;  %v1185_v46 = vadd.f32 %v1184_v56, %v1183_v11  ;;  %v1162_v13 = vmul.f32 %v6899_v2, %v6899_v2  ;;  %v6909_v3 = vsub.f32 %v6873_v17, %v1131_v59 }
 0x2a9   : > { %v1288_v41 = vadd.f32 1e-05, %v1272_v37  ;;  %v1273_v20 = vmul.f32 0.125, %v1197_v39  ;;  %v1210_v29 = vrot.slane %v1164_v12, 4  ;;  %v1165_v33 = vmul.f32 %v6904_v34, %v6904_v34 }
 0x2aa   : > { %v1286_v47 = vadd.f32 1e-05, %v1270_v42  ;;  %v1271_v18 = vmul.f32 0.125, %v1185_v46  ;;  %v1198_v35 = vrot.slane %v1162_v13, 4  ;;  %v1163_v27 = vmul.f32 %v6909_v3, %v6909_v3 }
 0x2ab   : > { %5973 = vrsqrt.f32 %v1288_v41  ;;  %v1289_v21 = vadd.f32 1e-05, %v1273_v20  ;;  %v1211_v45 = vadd.f32 %v1210_v29, %v1164_v12  ;;  %v1216_v51 = vrot.slane %v1165_v33, 4 }
 0x2ac   : > { %5975 = vrsqrt.f32 %v1286_v47  ;;  %v1287_v53 = vadd.f32 1e-05, %v1271_v18  ;;  %v1199_v17 = vadd.f32 %v1198_v35, %v1162_v13  ;;  %v1204_v7 = vrot.slane %v1163_v27, 4 }
 0x2ad   : > { %5977 = vrsqrt.f32 %v1289_v21  ;;  %v1212_v5 = vrot.slane %v1211_v45, 2  ;;  %v1217_v10 = vadd.f32 %v1216_v51, %v1165_v33  ;;  %v1090_v40 = vrot.slane %v6887_v43, 4 }
 0x2ae   : > { %5979 = vrsqrt.f32 %v1287_v53  ;;  %v1200_v54 = vrot.slane %v1199_v17, 2  ;;  %v1205_v52 = vadd.f32 %v1204_v7, %v1163_v27  ;;  %v1078_v55 = vrot.slane %v6889_v26, 4 }
 0x2af   : > { %v1213_v57 = vadd.f32 %v1212_v5, %v1211_v45  ;;  %v1218_v58 = vrot.slane %v1217_v10, 2  ;;  %v1091_v60 = vadd.f32 %v6887_v43, %v1090_v40  ;;  %v1096_v61 = vrot.slane %v6891_v50, 4  ;;  %v6919_v14 = vpop.f32.mrb[12].mxu1 }
 0x2b0   : > { %v1201_v63 = vadd.f32 %v1200_v54, %v1199_v17  ;;  %v1206_v38 = vrot.slane %v1205_v52, 2  ;;  %v1079_v0 = vadd.f32 %v1078_v55, %v6889_v26  ;;  %v1084_v1 = vrot.slane %v6893_v32, 4  ;;  %v6923_v4 = vpop.f32.mrb[13].mxu1 }
 0x2b1   : > { %v1214_v6 = vrot.slane %v1213_v57, 1  ;;  %v1219_v8 = vadd.f32 %v1218_v58, %v1217_v10  ;;  %v1092_v15 = vrot.slane %v1091_v60, 2  ;;  %v1097_v11 = vadd.f32 %v6891_v50, %v1096_v61  ;;  %v6926_v62 = vpop.f32.mrb[14].mxu1 }
 0x2b2   : > { %v1202_v19 = vrot.slane %v1201_v63, 1  ;;  %v1207_v48 = vadd.f32 %v1206_v38, %v1205_v52  ;;  %v1080_v24 = vrot.slane %v1079_v0, 2  ;;  %v1085_v30 = vadd.f32 %v1084_v1, %v6893_v32  ;;  %v6929_v25 = vpop.f32.mrb[15].mxu1 }
 0x2b3   : > { %v1215_v56 = vadd.f32 %v1214_v6, %v1213_v57  ;;  %v1220_v59 = vrot.slane %v1219_v8, 1  ;;  %v1093_v37 = vadd.f32 %v1092_v15, %v1091_v60  ;;  %v1098_v39 = vrot.slane %v1097_v11, 2 }
 0x2b4   : > { %v1203_v12 = vadd.f32 %v1202_v19, %v1201_v63  ;;  %v1208_v42 = vrot.slane %v1207_v48, 1  ;;  %v1081_v46 = vadd.f32 %v1080_v24, %v1079_v0  ;;  %v1086_v13 = vrot.slane %v1085_v30, 2 }
 0x2b5   : > { %v5974_v41 = vpop.eup %5973  ;;  %v1276_v20 = vmul.f32 0.125, %v1215_v56  ;;  %v1221_v29 = vadd.f32 %v1220_v59, %v1219_v8  ;;  %v1094_v33 = vrot.slane %v1093_v37, 1  ;;  %v1099_v47 = vadd.f32 %v1098_v39, %v1097_v11 }
 0x2b6   : > { %v5976_v18 = vpop.eup %5975  ;;  %v1320_v35 = vmul.f32 %v5974_v41, %v6683_v44  ;;  %v1274_v27 = vmul.f32 0.125, %v1203_v12  ;;  %v1209_v21 = vadd.f32 %v1208_v42, %v1207_v48  ;;  %v1082_v45 = vrot.slane %v1081_v46, 1 }
 0x2b7   : > { %v5978_v51 = vpop.eup %5977  ;;  %v1318_v53 = vmul.f32 %v5976_v18, %v6683_v44  ;;  %v1292_v17 = vadd.f32 1e-05, %v1276_v20  ;;  %v1277_v7 = vmul.f32 0.125, %v1221_v29  ;;  %v1095_v5 = vadd.f32 %v1094_v33, %v1093_v37 }
 0x2b8   : > { %v5980_v10 = vpop.eup %5979  ;;  %v1345_v40 = vrot.slane %v1320_v35, %v6849_v9  ;;  %v1321_v54 = vmul.f32 %v5978_v51, %v6683_v44  ;;  %v1290_v52 = vadd.f32 1e-05, %v1274_v27  ;;  %v1275_v55 = vmul.f32 0.125, %v1209_v21  ;;  %v6971_v21 = vld [vmem:[#allocation7] sm:$0xff] }
 0x2b9   : > { %v1337_v57 = vrot.slane %v1318_v53, %v6849_v9  ;;  %v1319_v58 = vmul.f32 %v5980_v10, %v6683_v44  ;;  %5981 = vrsqrt.f32 %v1292_v17  ;;  %v1293_v60 = vadd.f32 1e-05, %v1277_v7 }
 0x2ba   : > { %v1400_v61 = vmul.f32 %v1345_v40, %v6853_v16  ;;  %v1349_v63 = vrot.slane %v1321_v54, %v6849_v9  ;;  %5983 = vrsqrt.f32 %v1290_v52  ;;  %v1291_v38 = vadd.f32 1e-05, %v1275_v55 }
 0x2bb   : > { %v1398_v0 = vmul.f32 %v1337_v57, %v6862_v23  ;;  %v1341_v1 = vrot.slane %v1319_v58, %v6849_v9  ;;  %5985 = vrsqrt.f32 %v1293_v60  ;;  %v1136_v6 = vmul.f32 0.125, %v1095_v5 }
 0x2bc   : > { %v1420_v8 = vadd.f32 %v6860_v22, %v1400_v61  ;;  %v1401_v15 = vmul.f32 %v1349_v63, %v6869_v31  ;;  %5987 = vrsqrt.f32 %v1291_v38  ;;  %v1083_v44 = vadd.f32 %v1082_v45, %v1081_v46 }
 0x2bd   : > { %v1399_v11 = vmul.f32 %v1341_v1, %v6877_v36  ;;  %v6945_v16 = vsub.f32 %v6887_v43, %v1136_v6  ;;  %v1100_v19 = vrot.slane %v1099_v47, 1  ;;  %v6948_v24 = vadd.f32 %v6860_v22, %v1398_v0 }
 0x2be   : > { %v1452_v48 = vmul.f32 0.01, %v1420_v8  ;;  %v1421_v23 = vadd.f32 %v6860_v22, %v1401_v15  ;;  %v1134_v56 = vmul.f32 0.125, %v1083_v44  ;;  %vm1436_vm0 = vcmp.ge.f32.partialorder %v1420_v8, 0.0 }
 0x2bf   : > { %v1168_v59 = vmul.f32 %v6945_v16, %v6945_v16  ;;  %v1101_v31 = vadd.f32 %v1100_v19, %v1099_v47  ;;  %v1087_v37 = vadd.f32 %v1086_v13, %v1085_v30  ;;  %v6954_v36 = vadd.f32 %v6860_v22, %v1399_v11 }
 0x2c0   : > { %vm1437_vm1 = vcmp.ge.f32.partialorder %v1421_v23, 0.0  ;;  %v1453_v39 = vmul.f32 0.01, %v1421_v23  ;;  %v6957_v43 = vsub.f32 %v6889_v26, %v1134_v56  ;;  %v1114_v41 = vrot.slane %v6919_v14, 4 }
 0x2c1   : > { %v1234_v12 = vrot.slane %v1168_v59, 4  ;;  %v1137_v42 = vmul.f32 0.125, %v1101_v31  ;;  %v1088_v46 = vrot.slane %v1087_v37, 1  ;;  %v6960_v20 = vsel %vm1436_vm0, %v1420_v8, %v1452_v48 }
 0x2c2   : > { %v6962_v29 = vsel %vm1437_vm1, %v1421_v23, %v1453_v39  ;;  %v1166_v30 = vmul.f32 %v6957_v43, %v6957_v43  ;;  %v1102_v13 = vrot.slane %v6923_v4, 4  ;;  %v1115_v35 = vadd.f32 %v6919_v14, %v1114_v41 }
 0x2c3   : > { %v5982_v33 = vpop.eup %5981  ;;  %v1235_v47 = vadd.f32 %v1234_v12, %v1168_v59  ;;  %v6968_v18 = vsub.f32 %v6891_v50, %v1137_v42  ;;  %v1089_v26 = vadd.f32 %v1088_v46, %v1087_v37  ;;  %v1120_v17 = vrot.slane %v6926_v62, 4 }
 0x2c4   : > { %v5984_v27 = vpop.eup %5983  ;;  %v1324_v45 = vmul.f32 %v6971_v21, %v5982_v33  ;;  %v1222_v51 = vrot.slane %v1166_v30, 4  ;;  %v1103_v53 = vadd.f32 %v1102_v13, %v6923_v4  ;;  %v1116_v58 = vrot.slane %v1115_v35, 2 }
 0x2c5   : > { %v5986_v7 = vpop.eup %5985  ;;  %v1322_v5 = vmul.f32 %v6971_v21, %v5984_v27  ;;  %v1236_v10 = vrot.slane %v1235_v47, 2  ;;  %v1169_v50 = vmul.f32 %v6968_v18, %v6968_v18  ;;  %v1135_v40 = vmul.f32 0.125, %v1089_v26 }
 0x2c6   : > { %v5988_v54 = vpop.eup %5987  ;;  %v1361_v52 = vrot.slane %v1324_v45, %v6849_v9  ;;  %v1325_v55 = vmul.f32 %v6971_v21, %v5986_v7  ;;  %v1223_v57 = vadd.f32 %v1222_v51, %v1166_v30  ;;  %v1117_v42 = vadd.f32 %v1116_v58, %v1115_v35 }
 0x2c7   : > { %v1353_v60 = vrot.slane %v1322_v5, %v6849_v9  ;;  %v1323_v61 = vmul.f32 %v6971_v21, %v5988_v54  ;;  %v1237_v63 = vadd.f32 %v1236_v10, %v1235_v47  ;;  %v1240_v38 = vrot.slane %v1169_v50, 4 }
 0x2c8   : > { %v1404_v0 = vmul.f32 %v1361_v52, %v6896_v28  ;;  %v1365_v1 = vrot.slane %v1325_v55, %v6849_v9  ;;  %v1224_v6 = vrot.slane %v1223_v57, 2  ;;  %v6986_v8 = vsub.f32 %v6893_v32, %v1135_v40 }
 0x2c9   : > { %v1402_v15 = vmul.f32 %v1353_v60, %v6899_v2  ;;  %v1357_v44 = vrot.slane %v1323_v61, %v6849_v9  ;;  %v1238_v11 = vrot.slane %v1237_v63, 1  ;;  %v1241_v19 = vadd.f32 %v1240_v38, %v1169_v50 }
 0x2ca   : > { %v6991_v48 = vadd.f32 %v6860_v22, %v1404_v0  ;;  %v1225_v23 = vadd.f32 %v1224_v6, %v1223_v57  ;;  %v1167_v56 = vmul.f32 %v6986_v8, %v6986_v8  ;;  %v1121_v28 = vadd.f32 %v6926_v62, %v1120_v17 }
 0x2cb   : > { %v6997_v59 = vmul.f32 %v1365_v1, %v6904_v34  ;;  %v1403_v32 = vmul.f32 %v1357_v44, %v6909_v3  ;;  %v1239_v31 = vadd.f32 %v1238_v11, %v1237_v63  ;;  %v1242_v2 = vrot.slane %v1241_v19, 2 }
 0x2cc   : > { %v7001_v37 = vadd.f32 %v6860_v22, %v1402_v15  ;;  %v1226_v39 = vrot.slane %v1225_v23, 1  ;;  %v1228_v12 = vrot.slane %v1167_v56, 4  ;;  %v1104_v13 = vrot.slane %v1103_v53, 2 }
 0x2cd   : > { %v7004_v46 = vadd.f32 %v6860_v22, %v1403_v32  ;;  %v1280_v41 = vmul.f32 0.125, %v1239_v31  ;;  %v1243_v30 = vadd.f32 %v1242_v2, %v1241_v19  ;;  %v1118_v34 = vrot.slane %v1117_v42, 1 }
 0x2ce   : > { %v1227_v33 = vadd.f32 %v1226_v39, %v1225_v23  ;;  %v1229_v47 = vadd.f32 %v1228_v12, %v1167_v56  ;;  %v1122_v26 = vrot.slane %v1121_v28, 2  ;;  %v1105_v45 = vadd.f32 %v1104_v13, %v1103_v53 }
 0x2cf   : > { %v1296_v27 = vadd.f32 1e-05, %v1280_v41  ;;  %v1244_v3 = vrot.slane %v1243_v30, 1  ;;  %v1108_v51 = vrot.slane %v6929_v25, 4  ;;  %v1119_v5 = vadd.f32 %v1118_v34, %v1117_v42 }
 0x2d0   : > { %v1278_v17 = vmul.f32 0.125, %v1227_v33  ;;  %v1230_v7 = vrot.slane %v1229_v47, 2  ;;  %v1123_v10 = vadd.f32 %v1122_v26, %v1121_v28  ;;  %v1106_v50 = vrot.slane %v1105_v45, 1 }
 0x2d1   : > { %5989 = vrsqrt.f32 %v1296_v27  ;;  %v1245_v35 = vadd.f32 %v1244_v3, %v1243_v30  ;;  %v1109_v40 = vadd.f32 %v1108_v51, %v6929_v25  ;;  %v1140_v55 = vmul.f32 0.125, %v1119_v5 }
 0x2d2   : > { %v1294_v54 = vadd.f32 1e-05, %v1278_v17  ;;  %v1231_v52 = vadd.f32 %v1230_v7, %v1229_v47  ;;  %v1124_v57 = vrot.slane %v1123_v10, 1  ;;  %v1107_v60 = vadd.f32 %v1106_v50, %v1105_v45 }
 0x2d3   : > { %v1281_v58 = vmul.f32 0.125, %v1245_v35  ;;  %v1110_v61 = vrot.slane %v1109_v40, 2  ;;  %vm1434_vm2 = vcmp.ge.f32.partialorder %v6948_v24, 0.0  ;;  %v7010_v63 = vsub.f32 %v6919_v14, %v1140_v55 }
 0x2d4   : > { %5991 = vrsqrt.f32 %v1294_v54  ;;  %v1232_v53 = vrot.slane %v1231_v52, 1  ;;  %v1125_v38 = vadd.f32 %v1124_v57, %v1123_v10  ;;  %v1138_v1 = vmul.f32 0.125, %v1107_v60 }
 0x2d5   : > { %v1297_v0 = vadd.f32 1e-05, %v1281_v58  ;;  %v1111_v6 = vadd.f32 %v1110_v61, %v1109_v40  ;;  %vm1435_vm3 = vcmp.ge.f32.partialorder %v6954_v36, 0.0  ;;  %v1172_v44 = vmul.f32 %v7010_v63, %v7010_v63 }
 0x2d6   : > { %v1233_v15 = vadd.f32 %v1232_v53, %v1231_v52  ;;  %v1141_v11 = vmul.f32 0.125, %v1125_v38  ;;  %v1450_v19 = vmul.f32 0.01, %v6948_v24  ;;  %v7017_v23 = vsub.f32 %v6923_v4, %v1138_v1 }
 0x2d7   : > { %5993 = vrsqrt.f32 %v1297_v0  ;;  %v1112_v56 = vrot.slane %v1111_v6, 1  ;;  %v1451_v14 = vmul.f32 0.01, %v6954_v36  ;;  %v1258_v32 = vrot.slane %v1172_v44, 4 }
 0x2d8   : > { %v1279_v28 = vmul.f32 0.125, %v1233_v15  ;;  %v7021_v31 = vsub.f32 %v6926_v62, %v1141_v11  ;;  %v1466_v2 = vsel %vm1434_vm2, %v6948_v24, %v1450_v19  ;;  %v1170_v39 = vmul.f32 %v7017_v23, %v7017_v23 }
 0x2d9   : > { %v1113_v12 = vadd.f32 %v1112_v56, %v1111_v6  ;;  %v1467_v42 = vsel %vm1435_vm3, %v6954_v36, %v1451_v14  ;;  %v1483_v4 = vpack.c.bf16 %v6962_v29, %v6960_v20  ;;  %v1259_v30 = vadd.f32 %v1258_v32, %v1172_v44 }
 0x2da   : > { %v1295_v41 = vadd.f32 1e-05, %v1279_v28  ;;  %v1173_v13 = vmul.f32 %v7021_v31, %v7021_v31  ;;  %v1482_v62 = vpack.c.bf16 %v1467_v42, %v1466_v2  ;;  %v1246_v47 = vrot.slane %v1170_v39, 4 }
 0x2db   : > { %v5990_v33 = vpop.eup %5989  ;;  %v1139_v34 = vmul.f32 0.125, %v1113_v12  ;;  %vm1438_vm4 = vcmp.ge.f32.partialorder %v7001_v37, 0.0  ;;  %vm1439_vm5 = vcmp.ge.f32.partialorder %v7004_v46, 0.0  ;;  %v1260_v36 = vrot.slane %v1259_v30, 2 }
 0x2dc   : > { %v1328_v24 = vmul.f32 %v6971_v21, %v5990_v33  ;;  %5995 = vrsqrt.f32 %v1295_v41  ;;  %v1264_v26 = vrot.slane %v1173_v13, 4  ;;  %5628 = vmatprep.mubr.bf16.mxu0 %v1482_v62  ;;  %v1247_v20 = vadd.f32 %v1246_v47, %v1170_v39 }
 0x2dd   : > { %v7037_v29 = vsub.f32 %v6929_v25, %v1139_v34  ;;  %5629 = vmatmul.mubr.bf16.vlgmr.msra.gmra.mrb[16].mxu0 %v1483_v4  ;;  %v1454_v27 = vmul.f32 0.01, %v7001_v37  ;;  %v1455_v3 = vmul.f32 0.01, %v7004_v46  ;;  %v1425_v51 = vadd.f32 %v6860_v22, %v6997_v59 }
 0x2de   : > { %v5992_v45 = vpop.eup %5991  ;;  %v1377_v17 = vrot.slane %v1328_v24, %v6849_v9  ;;  %v1261_v7 = vadd.f32 %v1260_v36, %v1259_v30  ;;  %v1265_v5 = vadd.f32 %v1264_v26, %v1173_v13  ;;  %v1248_v35 = vrot.slane %v1247_v20, 2 }
 0x2df   : > { %v1326_v10 = vmul.f32 %v6971_v21, %v5992_v45  ;;  %v1171_v25 = vmul.f32 %v7037_v29, %v7037_v29  ;;  %v1470_v50 = vsel %vm1438_vm4, %v7001_v37, %v1454_v27  ;;  %v1471_v59 = vsel %vm1439_vm5, %v7004_v46, %v1455_v3 }
 0x2e0   : > { %v1408_v40 = vmul.f32 %v1377_v17, %v6945_v16  ;;  %v1262_v54 = vrot.slane %v1261_v7, 1  ;;  %v1266_v52 = vrot.slane %v1265_v5, 2  ;;  %v1249_v58 = vadd.f32 %v1248_v35, %v1247_v20 }
 0x2e1   : > { %v5994_v55 = vpop.eup %5993  ;;  %v1369_v57 = vrot.slane %v1326_v10, %v6849_v9  ;;  %v1252_v60 = vrot.slane %v1171_v25, 4  ;;  %v1484_v61 = vpack.c.bf16 %v1471_v59, %v1470_v50  ;;  %vm1440_vm6 = vcmp.ge.f32.partialorder %v6991_v48, 0.0 }
 0x2e2   : > { %v1329_v53 = vmul.f32 %v6971_v21, %v5994_v55  ;;  %v1263_v38 = vadd.f32 %v1262_v54, %v1261_v7  ;;  %v1267_v0 = vadd.f32 %v1266_v52, %v1265_v5  ;;  %v1428_v16 = vadd.f32 %v6860_v22, %v1408_v40 }
 0x2e3   : > { %v1250_v37 = vrot.slane %v1249_v58, 1  ;;  %v1253_v1 = vadd.f32 %v1252_v60, %v1171_v25  ;;  %5632 = vmatprep.mubr.bf16.mxu0 %v1484_v61  ;;  %vm1441_vm7 = vcmp.ge.f32.partialorder %v1425_v51, 0.0  ;;  %v1456_v44 = vmul.f32 0.01, %v6991_v48 }
 0x2e4   : > { %v1381_v46 = vrot.slane %v1329_v53, %v6849_v9  ;;  %v1284_v6 = vmul.f32 0.125, %v1263_v38  ;;  %v1268_v15 = vrot.slane %v1267_v0, 1  ;;  %v1406_v11 = vmul.f32 %v1369_v57, %v6957_v43 }
 0x2e5   : > { %v1251_v19 = vadd.f32 %v1250_v37, %v1249_v58  ;;  %v1254_v56 = vrot.slane %v1253_v1, 2  ;;  %v1457_v14 = vmul.f32 0.01, %v1425_v51  ;;  %v1472_v12 = vsel %vm1440_vm6, %v6991_v48, %v1456_v44 }
 0x2e6   : > { %v5996_v28 = vpop.eup %5995  ;;  %v1409_v32 = vmul.f32 %v1381_v46, %v6968_v18  ;;  %v1300_v2 = vadd.f32 1e-05, %v1284_v6  ;;  %v1269_v39 = vadd.f32 %v1268_v15, %v1267_v0  ;;  %v1426_v33 = vadd.f32 %v6860_v22, %v1406_v11 }
 0x2e7   : > { %v1327_v42 = vmul.f32 %v6971_v21, %v5996_v28  ;;  %v1282_v4 = vmul.f32 0.125, %v1251_v19  ;;  %v1255_v41 = vadd.f32 %v1254_v56, %v1253_v1  ;;  %v1473_v30 = vsel %vm1441_vm7, %v1425_v51, %v1457_v14 }
 0x2e8   : > { %v1429_v43 = vadd.f32 %v6860_v22, %v1409_v32  ;;  %5997 = vrsqrt.f32 %v1300_v2  ;;  %v1285_v13 = vmul.f32 0.125, %v1269_v39  ;;  %v1485_v62 = vpack.c.bf16 %v1473_v30, %v1472_v12  ;;  %v5902_v39 = vld [vmem:[#allocation5 + $0xc8] sm:$0xff]   ;;  %v5905_v12 = vld [vmem:[#allocation5 + $0xe0] sm:$0xff]  }
 0x2e9   : > { %v1373_v18 = vrot.slane %v1327_v42, %v6849_v9  ;;  %v1298_v47 = vadd.f32 1e-05, %v1282_v4  ;;  %v1256_v34 = vrot.slane %v1255_v41, 1  ;;  %vm1444_vm8 = vcmp.ge.f32.partialorder %v1428_v16, 0.0  ;;  %v5906_v42 = vld [vmem:[#allocation5 + $0xe8] sm:$0xff]   ;;  %v5907_v4 = vld [vmem:[#allocation5 + $0xf0] sm:$0xff]  }
 0x2ea   : > { %v1301_v24 = vadd.f32 1e-05, %v1285_v13  ;;  %5633 = vmatmul.mubr.bf16.gmra.mrb[20].mxu0 %v1485_v62  ;;  %vm1445_vm9 = vcmp.ge.f32.partialorder %v1429_v43, 0.0  ;;  %v1460_v26 = vmul.f32 0.01, %v1428_v16  ;;  %vm1442_vm10 = vcmp.ge.f32.partialorder %v1426_v33, 0.0 }
 0x2eb   : > { %v1407_v48 = vmul.f32 %v1373_v18, %v6986_v8  ;;  %5999 = vrsqrt.f32 %v1298_v47  ;;  %v1257_v36 = vadd.f32 %v1256_v34, %v1255_v41  ;;  %v1461_v20 = vmul.f32 0.01, %v1429_v43  ;;  %v5908_v41 = vld [vmem:[#allocation5 + $0xf8] sm:$0xff]  }
 0x2ec   : > { %6001 = vrsqrt.f32 %v1301_v24  ;;  %v1458_v45 = vmul.f32 0.01, %v1426_v33  ;;  %v1476_v51 = vsel %vm1444_vm8, %v1428_v16, %v1460_v26 }
 0x2ed   : > { %v1427_v27 = vadd.f32 %v6860_v22, %v1407_v48  ;;  %v1283_v3 = vmul.f32 0.125, %v1257_v36  ;;  %v1477_v17 = vsel %vm1445_vm9, %v1429_v43, %v1461_v20 }
 0x2ee   : > { %v1487_v10 = vpack.c.bf16 %v1477_v17, %v1476_v51  ;;  %v1474_v35 = vsel %vm1442_vm10, %v1426_v33, %v1458_v45 }
 0x2ef   : > { %v1299_v7 = vadd.f32 1e-05, %v1283_v3  ;;  %vm1443_vm11 = vcmp.ge.f32.partialorder %v1427_v27, 0.0  ;;  %v1459_v5 = vmul.f32 0.01, %v1427_v27 }
 0x2f1   : > { %6003 = vrsqrt.f32 %v1299_v7  ;;  %v1475_v25 = vsel %vm1443_vm11, %v1427_v27, %v1459_v5 }
 0x2f2   : > { %v5998_v8 = vpop.eup %5997  ;;  %v1486_v50 = vpack.c.bf16 %v1475_v25, %v1474_v35 }
 0x2f3   : > { %v1332_v40 = vmul.f32 %v6971_v21, %v5998_v8 }
 0x2f4   : > { %5636 = vmatprep.mubr.bf16.mxu0 %v1486_v50 }
 0x2f5   : > { %v6000_v54 = vpop.eup %5999  ;;  %v1393_v52 = vrot.slane %v1332_v40, %v6849_v9  ;;  %5637 = vmatmul.mubr.bf16.gmra.mrb[24].mxu0 %v1487_v10 }
 0x2f6   : > { %v6002_v59 = vpop.eup %6001  ;;  %v1330_v55 = vmul.f32 %v6971_v21, %v6000_v54 }
 0x2f7   : > { %v1412_v57 = vmul.f32 %v1393_v52, %v7010_v63  ;;  %v1333_v58 = vmul.f32 %v6971_v21, %v6002_v59  ;;  %v7089_v52 = vsub.s32 2, %v6596_v49 }
 0x2f8   : > { %v1385_v60 = vrot.slane %v1330_v55, %v6849_v9 }
 0x2f9   : > { %v1432_v61 = vadd.f32 %v6860_v22, %v1412_v57  ;;  %v1397_v53 = vrot.slane %v1333_v58, %v6849_v9 }
 0x2fa   : > { %v1410_v38 = vmul.f32 %v1385_v60, %v7017_v23 }
 0x2fb   : > { %v6004_v0 = vpop.eup %6003  ;;  %v1413_v16 = vmul.f32 %v1397_v53, %v7021_v31  ;;  %v1464_v46 = vmul.f32 0.01, %v1432_v61  ;;  %vm1448_vm12 = vcmp.ge.f32.partialorder %v1432_v61, 0.0 }
 0x2fc   : > { %v1331_v37 = vmul.f32 %v6971_v21, %v6004_v0  ;;  %v1430_v63 = vadd.f32 %v6860_v22, %v1410_v38  ;;  %v7098_v38 = vld [vmem:[#allocation7 + $0x8] sm:$0xff] }
 0x2fd   : > { %v1433_v1 = vadd.f32 %v6860_v22, %v1413_v16  ;;  %v1480_v11 = vsel %vm1448_vm12, %v1432_v61, %v1464_v46  ;;  %v7102_v0 = vrot.slane %v7098_v38, %v7089_v52 }
 0x2fe   : > { %v1389_v6 = vrot.slane %v1331_v37, %v6849_v9  ;;  %v1462_v56 = vmul.f32 0.01, %v1430_v63  ;;  %vm1446_vm14 = vcmp.ge.f32.partialorder %v1430_v63, 0.0  ;;  %v5901_v9 = vld [vmem:[#allocation5 + $0xc0] sm:$0xff]  }
 0x2ff   : > { %vm1449_vm13 = vcmp.ge.f32.partialorder %v1433_v1, 0.0  ;;  %v1465_v15 = vmul.f32 0.01, %v1433_v1  ;;  %5644 = vmatprep.subr.bf16.mxu1 %v5901_v9 }
 0x300   : > { %v1411_v44 = vmul.f32 %v1389_v6, %v7037_v29  ;;  %v1478_v28 = vsel %vm1446_vm14, %v1430_v63, %v1462_v56  ;;  %5645 = vmatpush3.bf16.msra.mxu1 %v5901_v9  ;;  %v5903_v29 = vld [vmem:[#allocation5 + $0xd0] sm:$0xff]  }
 0x301   : > { %v1481_v19 = vsel %vm1449_vm13, %v1433_v1, %v1465_v15  ;;  %5646 = vmatprep.subr.bf16.mxu1 %v5902_v39 }
 0x302   : > { %v1431_v23 = vadd.f32 %v6860_v22, %v1411_v44  ;;  %v1489_v31 = vpack.c.bf16 %v1481_v19, %v1480_v11  ;;  %v5904_v22 = vld [vmem:[#allocation5 + $0xd8] sm:$0xff]  }
 0x304   : > { %vm1447_vm15 = vcmp.ge.f32.partialorder %v1431_v23, 0.0  ;;  %v1463_v14 = vmul.f32 0.01, %v1431_v23  ;;  %5647 = vmatpush3.bf16.msra.mxu1 %v5902_v39 }
 0x305   : > { %5648 = vmatprep.subr.bf16.mxu1 %v5903_v29 }
 0x306   : > { %v1479_v32 = vsel %vm1447_vm15, %v1431_v23, %v1463_v14 }
 0x307   : > { %v1488_v2 = vpack.c.bf16 %v1479_v32, %v1478_v28 }
 0x308   : > { %5649 = vmatpush3.bf16.msra.mxu1 %v5903_v29 }
 0x309   : > { %5640 = vmatprep.mubr.bf16.mxu0 %v1488_v2  ;;  %5650 = vmatprep.subr.bf16.mxu1 %v5904_v22 }
 0x30a   : > { %5641 = vmatmul.mubr.bf16.gmra.mrb[28].mxu0 %v1489_v31 }
 0x30c   : > { %5651 = vmatpush3.bf16.msra.mxu1 %v5904_v22 }
 0x30d   : > { %5652 = vmatprep.subr.bf16.mxu1 %v5905_v12 }
 0x310   : > { %5653 = vmatpush3.bf16.msra.mxu1 %v5905_v12 }
 0x311   : > { %5654 = vmatprep.subr.bf16.mxu1 %v5906_v42 }
 0x314   : > { %5655 = vmatpush3.bf16.msra.mxu1 %v5906_v42 }
 0x315   : > { %5656 = vmatprep.subr.bf16.mxu1 %v5907_v4 }
 0x318   : > { %5657 = vmatpush3.bf16.msra.mxu1 %v5907_v4 }
 0x319   : > { %5658 = vmatprep.subr.bf16.mxu1 %v5908_v41 }
 0x31c   : > { %5659 = vmatpush3.bf16.msra.mxu1 %v5908_v41 }
 0x3b0   : > { %v5630_v30 = vpop.f32.mrb[16].mxu0 }
 0x3b1   : > { %v1664_v43 = vrot.slane %v5630_v30, 4  ;;  %v1589_v13 = vpop.f32.mrb[17].mxu0 }
 0x3b2   : > { %v1652_v62 = vrot.slane %v1589_v13, 4  ;;  %v5631_v33 = vpop.f32.mrb[18].mxu0 }
 0x3b3   : > { %v1665_v18 = vadd.f32 %v5630_v30, %v1664_v43  ;;  %v1670_v47 = vrot.slane %v5631_v33, 4  ;;  %v1592_v34 = vpop.f32.mrb[19].mxu0 }
 0x3b4   : > { %v1653_v24 = vadd.f32 %v1652_v62, %v1589_v13  ;;  %v1658_v48 = vrot.slane %v1592_v34, 4 }
 0x3b5   : > { %v1666_v36 = vrot.slane %v1665_v18, 2  ;;  %v1671_v26 = vadd.f32 %v5631_v33, %v1670_v47 }
 0x3b6   : > { %v1654_v20 = vrot.slane %v1653_v24, 2  ;;  %v1659_v27 = vadd.f32 %v1658_v48, %v1592_v34 }
 0x3b7   : > { %v1667_v3 = vadd.f32 %v1666_v36, %v1665_v18  ;;  %v1672_v45 = vrot.slane %v1671_v26, 2 }
 0x3b8   : > { %v1655_v51 = vadd.f32 %v1654_v20, %v1653_v24  ;;  %v1660_v17 = vrot.slane %v1659_v27, 2 }
 0x3b9   : > { %v1668_v7 = vrot.slane %v1667_v3, 1  ;;  %v1673_v5 = vadd.f32 %v1672_v45, %v1671_v26 }
 0x3ba   : > { %v1656_v10 = vrot.slane %v1655_v51, 1  ;;  %v1661_v35 = vadd.f32 %v1660_v17, %v1659_v27 }
 0x3bb   : > { %v1669_v25 = vadd.f32 %v1668_v7, %v1667_v3  ;;  %v1674_v8 = vrot.slane %v1673_v5, 1 }
 0x3bc   : > { %v1657_v50 = vadd.f32 %v1656_v10, %v1655_v51  ;;  %v1662_v40 = vrot.slane %v1661_v35, 1 }
 0x3bd   : > { %v1750_v54 = vmul.f32 0.125, %v1669_v25  ;;  %v1675_v59 = vadd.f32 %v1674_v8, %v1673_v5  ;;  %v7091_v55 = vpop.f32.mrb[20].mxu0 }
 0x3be   : > { %v1748_v57 = vmul.f32 0.125, %v1657_v50  ;;  %v1663_v58 = vadd.f32 %v1662_v40, %v1661_v35  ;;  %v1688_v60 = vrot.slane %v7091_v55, 4  ;;  %v7094_v61 = vpop.f32.mrb[21].mxu0 }
 0x3bf   : > { %v7096_v53 = vsub.f32 %v5630_v30, %v1750_v54  ;;  %v1751_v16 = vmul.f32 0.125, %v1675_v59  ;;  %v1676_v37 = vrot.slane %v7094_v61, 4  ;;  %v7105_v1 = vpop.f32.mrb[22].mxu0 }
 0x3c0   : > { %v7107_v46 = vsub.f32 %v1589_v13, %v1748_v57  ;;  %v1749_v63 = vmul.f32 0.125, %v1663_v58  ;;  %v1689_v6 = vadd.f32 %v7091_v55, %v1688_v60  ;;  %v1694_v15 = vrot.slane %v7105_v1, 4  ;;  %v7111_v44 = vpop.f32.mrb[23].mxu0 }
 0x3c1   : > { %v1782_v11 = vmul.f32 %v7096_v53, %v7096_v53  ;;  %v7115_v19 = vsub.f32 %v5631_v33, %v1751_v16  ;;  %v1677_v23 = vadd.f32 %v1676_v37, %v7094_v61  ;;  %v1682_v56 = vrot.slane %v7111_v44, 4 }
 0x3c2   : > { %v1780_v31 = vmul.f32 %v7107_v46, %v7107_v46  ;;  %v7121_v14 = vsub.f32 %v1592_v34, %v1749_v63  ;;  %v1690_v28 = vrot.slane %v1689_v6, 2  ;;  %v1695_v32 = vadd.f32 %v7105_v1, %v1694_v15 }
 0x3c3   : > { %v1808_v2 = vrot.slane %v1782_v11, 4  ;;  %v1783_v9 = vmul.f32 %v7115_v19, %v7115_v19  ;;  %v1678_v39 = vrot.slane %v1677_v23, 2  ;;  %v1683_v29 = vadd.f32 %v1682_v56, %v7111_v44 }
 0x3c4   : > { %v1796_v22 = vrot.slane %v1780_v31, 4  ;;  %v1781_v12 = vmul.f32 %v7121_v14, %v7121_v14  ;;  %v1691_v42 = vadd.f32 %v1690_v28, %v1689_v6  ;;  %v1696_v4 = vrot.slane %v1695_v32, 2 }
 0x3c5   : > { %v1809_v41 = vadd.f32 %v1808_v2, %v1782_v11  ;;  %v1814_v30 = vrot.slane %v1783_v9, 4  ;;  %v1679_v43 = vadd.f32 %v1678_v39, %v1677_v23  ;;  %v1684_v13 = vrot.slane %v1683_v29, 2 }
 0x3c6   : > { %v1797_v62 = vadd.f32 %v1796_v22, %v1780_v31  ;;  %v1802_v33 = vrot.slane %v1781_v12, 4  ;;  %v1692_v18 = vrot.slane %v1691_v42, 1  ;;  %v1697_v47 = vadd.f32 %v1696_v4, %v1695_v32 }
 0x3c7   : > { %v1810_v34 = vrot.slane %v1809_v41, 2  ;;  %v1815_v24 = vadd.f32 %v1814_v30, %v1783_v9  ;;  %v1680_v48 = vrot.slane %v1679_v43, 1  ;;  %v1685_v36 = vadd.f32 %v1684_v13, %v1683_v29 }
 0x3c8   : > { %v1798_v26 = vrot.slane %v1797_v62, 2  ;;  %v1803_v20 = vadd.f32 %v1802_v33, %v1781_v12  ;;  %v1693_v27 = vadd.f32 %v1692_v18, %v1691_v42  ;;  %v1698_v3 = vrot.slane %v1697_v47, 1  ;;  %v7129_v45 = vpop.f32.mrb[24].mxu0 }
 0x3c9   : > { %v1811_v51 = vadd.f32 %v1810_v34, %v1809_v41  ;;  %v1816_v17 = vrot.slane %v1815_v24, 2  ;;  %v1681_v7 = vadd.f32 %v1680_v48, %v1679_v43  ;;  %v1686_v5 = vrot.slane %v1685_v36, 1  ;;  %v7131_v10 = vpop.f32.mrb[25].mxu0 }
 0x3ca   : > { %v1799_v35 = vadd.f32 %v1798_v26, %v1797_v62  ;;  %v1804_v25 = vrot.slane %v1803_v20, 2  ;;  %v1754_v8 = vmul.f32 0.125, %v1693_v27  ;;  %v1699_v50 = vadd.f32 %v1698_v3, %v1697_v47  ;;  %v7133_v40 = vpop.f32.mrb[26].mxu0 }
 0x3cb   : > { %v1812_v54 = vrot.slane %v1811_v51, 1  ;;  %v1817_v59 = vadd.f32 %v1816_v17, %v1815_v24  ;;  %v1752_v57 = vmul.f32 0.125, %v1681_v7  ;;  %v1687_v58 = vadd.f32 %v1686_v5, %v1685_v36  ;;  %v7135_v60 = vpop.f32.mrb[27].mxu0 }
 0x3cc   : > { %v1800_v16 = vrot.slane %v1799_v35, 1  ;;  %v1805_v37 = vadd.f32 %v1804_v25, %v1803_v20  ;;  %v7138_v63 = vsub.f32 %v7091_v55, %v1754_v8  ;;  %v1755_v6 = vmul.f32 0.125, %v1699_v50 }
 0x3cd   : > { %v1813_v15 = vadd.f32 %v1812_v54, %v1811_v51  ;;  %v1818_v11 = vrot.slane %v1817_v59, 1  ;;  %v7141_v23 = vsub.f32 %v7094_v61, %v1752_v57  ;;  %v1753_v56 = vmul.f32 0.125, %v1687_v58 }
 0x3ce   : > { %v1801_v31 = vadd.f32 %v1800_v16, %v1799_v35  ;;  %v1806_v28 = vrot.slane %v1805_v37, 1  ;;  %v1786_v32 = vmul.f32 %v7138_v63, %v7138_v63  ;;  %v7146_v2 = vsub.f32 %v7105_v1, %v1755_v6 }
 0x3cf   : > { %v1894_v9 = vmul.f32 0.125, %v1813_v15  ;;  %v1819_v39 = vadd.f32 %v1818_v11, %v1817_v59  ;;  %v1784_v55 = vmul.f32 %v7141_v23, %v7141_v23  ;;  %v7151_v29 = vsub.f32 %v7111_v44, %v1753_v56 }
 0x3d0   : > { %v1892_v22 = vmul.f32 0.125, %v1801_v31  ;;  %v1807_v61 = vadd.f32 %v1806_v28, %v1805_v37  ;;  %v1832_v12 = vrot.slane %v1786_v32, 4  ;;  %v1787_v42 = vmul.f32 %v7146_v2, %v7146_v2 }
 0x3d1   : > { %v1910_v4 = vadd.f32 1e-05, %v1894_v9  ;;  %v1895_v41 = vmul.f32 0.125, %v1819_v39  ;;  %v1820_v30 = vrot.slane %v1784_v55, 4  ;;  %v1785_v1 = vmul.f32 %v7151_v29, %v7151_v29 }
 0x3d2   : > { %v1908_v43 = vadd.f32 1e-05, %v1892_v22  ;;  %v1893_v13 = vmul.f32 0.125, %v1807_v61  ;;  %v1833_v62 = vadd.f32 %v1832_v12, %v1786_v32  ;;  %v1838_v33 = vrot.slane %v1787_v42, 4 }
 0x3d3   : > { %6005 = vrsqrt.f32 %v1910_v4  ;;  %v1911_v18 = vadd.f32 1e-05, %v1895_v41  ;;  %v1821_v44 = vadd.f32 %v1820_v30, %v1784_v55  ;;  %v1826_v47 = vrot.slane %v1785_v1, 4 }
 0x3d4   : > { %6007 = vrsqrt.f32 %v1908_v43  ;;  %v1909_v34 = vadd.f32 1e-05, %v1893_v13  ;;  %v1834_v24 = vrot.slane %v1833_v62, 2  ;;  %v1839_v48 = vadd.f32 %v1838_v33, %v1787_v42 }
 0x3d5   : > { %6009 = vrsqrt.f32 %v1911_v18  ;;  %v1822_v36 = vrot.slane %v1821_v44, 2  ;;  %v1827_v26 = vadd.f32 %v1826_v47, %v1785_v1  ;;  %v1712_v20 = vrot.slane %v7129_v45, 4 }
 0x3d6   : > { %6011 = vrsqrt.f32 %v1909_v34  ;;  %v1835_v27 = vadd.f32 %v1834_v24, %v1833_v62  ;;  %v1840_v3 = vrot.slane %v1839_v48, 2  ;;  %v1700_v51 = vrot.slane %v7131_v10, 4 }
 0x3d7   : > { %v1823_v17 = vadd.f32 %v1822_v36, %v1821_v44  ;;  %v1828_v7 = vrot.slane %v1827_v26, 2  ;;  %v1713_v5 = vadd.f32 %v7129_v45, %v1712_v20  ;;  %v1718_v35 = vrot.slane %v7133_v40, 4 }
 0x3d8   : > { %v1836_v25 = vrot.slane %v1835_v27, 1  ;;  %v1841_v8 = vadd.f32 %v1840_v3, %v1839_v48  ;;  %v1701_v50 = vadd.f32 %v1700_v51, %v7131_v10  ;;  %v1706_v54 = vrot.slane %v7135_v60, 4 }
 0x3d9   : > { %v1824_v59 = vrot.slane %v1823_v17, 1  ;;  %v1829_v57 = vadd.f32 %v1828_v7, %v1827_v26  ;;  %v1714_v58 = vrot.slane %v1713_v5, 2  ;;  %v1719_v16 = vadd.f32 %v7133_v40, %v1718_v35 }
 0x3da   : > { %v1837_v37 = vadd.f32 %v1836_v25, %v1835_v27  ;;  %v1842_v6 = vrot.slane %v1841_v8, 1  ;;  %v1702_v15 = vrot.slane %v1701_v50, 2  ;;  %v1707_v11 = vadd.f32 %v1706_v54, %v7135_v60 }
 0x3db   : > { %v1825_v56 = vadd.f32 %v1824_v59, %v1823_v17  ;;  %v1830_v31 = vrot.slane %v1829_v57, 1  ;;  %v1715_v28 = vadd.f32 %v1714_v58, %v1713_v5  ;;  %v1720_v32 = vrot.slane %v1719_v16, 2 }
 0x3dc   : > { %v1898_v9 = vmul.f32 0.125, %v1837_v37  ;;  %v1843_v39 = vadd.f32 %v1842_v6, %v1841_v8  ;;  %v1703_v55 = vadd.f32 %v1702_v15, %v1701_v50  ;;  %v1708_v22 = vrot.slane %v1707_v11, 2 }
 0x3dd   : > { %v6006_v61 = vpop.eup %6005  ;;  %v1896_v12 = vmul.f32 0.125, %v1825_v56  ;;  %v1831_v42 = vadd.f32 %v1830_v31, %v1829_v57  ;;  %v1716_v4 = vrot.slane %v1715_v28, 1  ;;  %v1721_v41 = vadd.f32 %v1720_v32, %v1719_v16  ;;  %v7165_v30 = vpop.f32.mrb[28].mxu0 }
 0x3de   : > { %v6008_v1 = vpop.eup %6007  ;;  %v1942_v43 = vmul.f32 %v6971_v21, %v6006_v61  ;;  %v1914_v13 = vadd.f32 1e-05, %v1898_v9  ;;  %v1899_v62 = vmul.f32 0.125, %v1843_v39  ;;  %v1704_v33 = vrot.slane %v1703_v55, 1  ;;  %v7168_v18 = vpop.f32.mrb[29].mxu0 }
 0x3df   : > { %v6010_v44 = vpop.eup %6009  ;;  %v1940_v47 = vmul.f32 %v6971_v21, %v6008_v1  ;;  %v1912_v34 = vadd.f32 1e-05, %v1896_v12  ;;  %v1897_v24 = vmul.f32 0.125, %v1831_v42  ;;  %v1717_v48 = vadd.f32 %v1716_v4, %v1715_v28  ;;  %v7171_v36 = vpop.f32.mrb[30].mxu0 }
 0x3e0   : > { %v6012_v26 = vpop.eup %6011  ;;  %v1967_v20 = vrot.slane %v1942_v43, %v7089_v52  ;;  %v1943_v27 = vmul.f32 %v6971_v21, %v6010_v44  ;;  %6013 = vrsqrt.f32 %v1914_v13  ;;  %v1915_v3 = vadd.f32 1e-05, %v1899_v62  ;;  %v7175_v51 = vpop.f32.mrb[31].mxu0 }
 0x3e1   : > { %v1959_v17 = vrot.slane %v1940_v47, %v7089_v52  ;;  %v1941_v7 = vmul.f32 %v6971_v21, %v6012_v26  ;;  %6015 = vrsqrt.f32 %v1912_v34  ;;  %v1913_v5 = vadd.f32 1e-05, %v1897_v24 }
 0x3e2   : > { %v2022_v35 = vmul.f32 %v1967_v20, %v7096_v53  ;;  %v1971_v25 = vrot.slane %v1943_v27, %v7089_v52  ;;  %6017 = vrsqrt.f32 %v1915_v3  ;;  %v1758_v8 = vmul.f32 0.125, %v1717_v48 }
 0x3e3   : > { %v2020_v50 = vmul.f32 %v1959_v17, %v7107_v46  ;;  %v1963_v54 = vrot.slane %v1941_v7, %v7089_v52  ;;  %6019 = vrsqrt.f32 %v1913_v5  ;;  %v1705_v59 = vadd.f32 %v1704_v33, %v1703_v55 }
 0x3e4   : > { %v2042_v57 = vadd.f32 %v7102_v0, %v2022_v35  ;;  %v2023_v58 = vmul.f32 %v1971_v25, %v7115_v19  ;;  %v7186_v16 = vsub.f32 %v7129_v45, %v1758_v8  ;;  %v1722_v37 = vrot.slane %v1721_v41, 1 }
 0x3e5   : > { %v7189_v53 = vadd.f32 %v7102_v0, %v2020_v50  ;;  %v2021_v6 = vmul.f32 %v1963_v54, %v7121_v14  ;;  %v1756_v15 = vmul.f32 0.125, %v1705_v59  ;;  %v1709_v56 = vadd.f32 %v1708_v22, %v1707_v11 }
 0x3e6   : > { %vm2058_vm0 = vcmp.ge.f32.partialorder %v2042_v57, 0.0  ;;  %v2074_v46 = vmul.f32 0.01, %v2042_v57  ;;  %v2043_v31 = vadd.f32 %v7102_v0, %v2023_v58  ;;  %v1790_v28 = vmul.f32 %v7186_v16, %v7186_v16 }
 0x3e7   : > { %v7196_v19 = vadd.f32 %v7102_v0, %v2021_v6  ;;  %v7199_v45 = vsub.f32 %v7131_v10, %v1756_v15  ;;  %v1723_v32 = vadd.f32 %v1722_v37, %v1721_v41  ;;  %v1710_v9 = vrot.slane %v1709_v56, 1 }
 0x3e8   : > { %v7201_v39 = vsel %vm2058_vm0, %v2042_v57, %v2074_v46  ;;  %vm2059_vm1 = vcmp.ge.f32.partialorder %v2043_v31, 0.0  ;;  %v2075_v14 = vmul.f32 0.01, %v2043_v31  ;;  %v1856_v11 = vrot.slane %v1790_v28, 4 }
 0x3e9   : > { %v1788_v55 = vmul.f32 %v7199_v45, %v7199_v45  ;;  %v1759_v22 = vmul.f32 0.125, %v1723_v32  ;;  %v1711_v61 = vadd.f32 %v1710_v9, %v1709_v56  ;;  %v1736_v12 = vrot.slane %v7165_v30, 4 }
 0x3ea   : > { %v6014_v42 = vpop.eup %6013  ;;  %v7206_v4 = vsel %vm2059_vm1, %v2043_v31, %v2075_v14  ;;  %v1857_v1 = vadd.f32 %v1856_v11, %v1790_v28  ;;  %v1724_v10 = vrot.slane %v7168_v18, 4  ;;  %v1742_v41 = vrot.slane %v7171_v36, 4 }
 0x3eb   : > { %v6016_v43 = vpop.eup %6015  ;;  %v1946_v13 = vmul.f32 %v6971_v21, %v6014_v42  ;;  %v1844_v62 = vrot.slane %v1788_v55, 4  ;;  %v7212_v33 = vsub.f32 %v7133_v40, %v1759_v22  ;;  %v1757_v44 = vmul.f32 0.125, %v1711_v61 }
 0x3ec   : > { %v6018_v47 = vpop.eup %6017  ;;  %v1944_v34 = vmul.f32 %v6971_v21, %v6016_v43  ;;  %v1858_v24 = vrot.slane %v1857_v1, 2  ;;  %v1737_v48 = vadd.f32 %v7165_v30, %v1736_v12  ;;  %v1725_v26 = vadd.f32 %v1724_v10, %v7168_v18 }
 0x3ed   : > { %v6020_v20 = vpop.eup %6019  ;;  %v1983_v27 = vrot.slane %v1946_v13, %v7089_v52  ;;  %v1947_v3 = vmul.f32 %v6971_v21, %v6018_v47  ;;  %v1845_v17 = vadd.f32 %v1844_v62, %v1788_v55  ;;  %v1791_v7 = vmul.f32 %v7212_v33, %v7212_v33 }
 0x3ee   : > { %v1975_v40 = vrot.slane %v1944_v34, %v7089_v52  ;;  %v1945_v5 = vmul.f32 %v6971_v21, %v6020_v20  ;;  %v1859_v35 = vadd.f32 %v1858_v24, %v1857_v1  ;;  %v7224_v25 = vsub.f32 %v7135_v60, %v1757_v44 }
 0x3ef   : > { %v2026_v8 = vmul.f32 %v1983_v27, %v7138_v63  ;;  %v1987_v50 = vrot.slane %v1947_v3, %v7089_v52  ;;  %v1846_v54 = vrot.slane %v1845_v17, 2  ;;  %v1862_v59 = vrot.slane %v1791_v7, 4 }
 0x3f0   : > { %v2024_v57 = vmul.f32 %v1975_v40, %v7141_v23  ;;  %v1979_v58 = vrot.slane %v1945_v5, %v7089_v52  ;;  %v1860_v37 = vrot.slane %v1859_v35, 1  ;;  %v1789_v6 = vmul.f32 %v7224_v25, %v7224_v25 }
 0x3f1   : > { %v7233_v21 = vadd.f32 %v7102_v0, %v2026_v8  ;;  %v2027_v60 = vmul.f32 %v1987_v50, %v7146_v2  ;;  %v1847_v15 = vadd.f32 %v1846_v54, %v1845_v17  ;;  %v1863_v56 = vadd.f32 %v1862_v59, %v1791_v7 }
 0x3f2   : > { %v7237_v63 = vadd.f32 %v7102_v0, %v2024_v57  ;;  %v2025_v46 = vmul.f32 %v1979_v58, %v7151_v29  ;;  %v1861_v31 = vadd.f32 %v1860_v37, %v1859_v35  ;;  %v1850_v23 = vrot.slane %v1789_v6, 4 }
 0x3f3   : > { %v7241_v28 = vadd.f32 %v7102_v0, %v2027_v60  ;;  %v1848_v32 = vrot.slane %v1847_v15, 1  ;;  %v1864_v9 = vrot.slane %v1863_v56, 2  ;;  %v1738_v14 = vrot.slane %v1737_v48, 2 }
 0x3f4   : > { %v7244_v11 = vadd.f32 %v7102_v0, %v2025_v46  ;;  %v1902_v55 = vmul.f32 0.125, %v1861_v31  ;;  %v1851_v2 = vadd.f32 %v1850_v23, %v1789_v6  ;;  %v1726_v22 = vrot.slane %v1725_v26, 2 }
 0x3f5   : > { %v1849_v61 = vadd.f32 %v1848_v32, %v1847_v15  ;;  %v1865_v12 = vadd.f32 %v1864_v9, %v1863_v56  ;;  %v1739_v42 = vadd.f32 %v1738_v14, %v1737_v48  ;;  %v1743_v1 = vadd.f32 %v7171_v36, %v1742_v41 }
 0x3f6   : > { %v1918_v29 = vadd.f32 1e-05, %v1902_v55  ;;  %v1852_v10 = vrot.slane %v1851_v2, 2  ;;  %v1727_v43 = vadd.f32 %v1726_v22, %v1725_v26  ;;  %v1730_v13 = vrot.slane %v7175_v51, 4 }
 0x3f7   : > { %v1900_v62 = vmul.f32 0.125, %v1849_v61  ;;  %v1866_v44 = vrot.slane %v1865_v12, 1  ;;  %v1740_v47 = vrot.slane %v1739_v42, 1  ;;  %v1744_v34 = vrot.slane %v1743_v1, 2 }
 0x3f8   : > { %6021 = vrsqrt.f32 %v1918_v29  ;;  %v1853_v24 = vadd.f32 %v1852_v10, %v1851_v2  ;;  %v1728_v20 = vrot.slane %v1727_v43, 1  ;;  %v1731_v27 = vadd.f32 %v1730_v13, %v7175_v51 }
 0x3f9   : > { %v1916_v3 = vadd.f32 1e-05, %v1900_v62  ;;  %v1867_v17 = vadd.f32 %v1866_v44, %v1865_v12  ;;  %v1741_v7 = vadd.f32 %v1740_v47, %v1739_v42  ;;  %v1745_v48 = vadd.f32 %v1744_v34, %v1743_v1  ;;  %v7275_v1 = vld [vmem:[#allocation7] sm:$0xff] }
 0x3fa   : > { %v1854_v40 = vrot.slane %v1853_v24, 1  ;;  %v1729_v41 = vadd.f32 %v1728_v20, %v1727_v43  ;;  %v1732_v5 = vrot.slane %v1731_v27, 2  ;;  %vm2056_vm2 = vcmp.ge.f32.partialorder %v7189_v53, 0.0 }
 0x3fb   : > { %6023 = vrsqrt.f32 %v1916_v3  ;;  %v1903_v26 = vmul.f32 0.125, %v1867_v17  ;;  %v1762_v35 = vmul.f32 0.125, %v1741_v7  ;;  %v1746_v8 = vrot.slane %v1745_v48, 1 }
 0x3fc   : > { %v1855_v50 = vadd.f32 %v1854_v40, %v1853_v24  ;;  %v1760_v54 = vmul.f32 0.125, %v1729_v41  ;;  %v1733_v59 = vadd.f32 %v1732_v5, %v1731_v27  ;;  %vm2057_vm3 = vcmp.ge.f32.partialorder %v7196_v19, 0.0 }
 0x3fd   : > { %v1919_v57 = vadd.f32 1e-05, %v1903_v26  ;;  %v7252_v58 = vsub.f32 %v7165_v30, %v1762_v35  ;;  %v1747_v37 = vadd.f32 %v1746_v8, %v1745_v48  ;;  %v2072_v6 = vmul.f32 0.01, %v7189_v53 }
 0x3fe   : > { %v1901_v60 = vmul.f32 0.125, %v1855_v50  ;;  %v7256_v15 = vsub.f32 %v7168_v18, %v1760_v54  ;;  %v1734_v56 = vrot.slane %v1733_v59, 1  ;;  %v2073_v46 = vmul.f32 0.01, %v7196_v19 }
 0x3ff   : > { %6025 = vrsqrt.f32 %v1919_v57  ;;  %v1794_v31 = vmul.f32 %v7252_v58, %v7252_v58  ;;  %v1763_v23 = vmul.f32 0.125, %v1747_v37  ;;  %v2088_v30 = vsel %vm2056_vm2, %v7189_v53, %v2072_v6 }
 0x400   : > { %v1917_v32 = vadd.f32 1e-05, %v1901_v60  ;;  %v1792_v9 = vmul.f32 %v7256_v15, %v7256_v15  ;;  %v1735_v14 = vadd.f32 %v1734_v56, %v1733_v59  ;;  %v2089_v18 = vsel %vm2057_vm3, %v7196_v19, %v2073_v46 }
 0x401   : > { %v1880_v55 = vrot.slane %v1794_v31, 4  ;;  %v7270_v2 = vsub.f32 %v7171_v36, %v1763_v23  ;;  %v2104_v22 = vpack.c.bf16 %v2089_v18, %v2088_v30  ;;  %v2105_v61 = vpack.c.bf16 %v7206_v4, %v7201_v39 }
 0x402   : > { %v6022_v12 = vpop.eup %6021  ;;  %6027 = vrsqrt.f32 %v1917_v32  ;;  %v1868_v53 = vrot.slane %v1792_v9, 4  ;;  %v1761_v42 = vmul.f32 0.125, %v1735_v14  ;;  %vm2060_vm4 = vcmp.ge.f32.partialorder %v7237_v63, 0.0 }
 0x403   : > { %v1950_v29 = vmul.f32 %v7275_v1, %v6022_v12  ;;  %v1881_v10 = vadd.f32 %v1880_v55, %v1794_v31  ;;  %v1795_v19 = vmul.f32 %v7270_v2, %v7270_v2  ;;  %5660 = vmatprep.mubr.bf16.mxu1 %v2104_v22  ;;  %vm2061_vm5 = vcmp.ge.f32.partialorder %v7244_v11, 0.0 }
 0x404   : > { %v1869_v36 = vadd.f32 %v1868_v53, %v1792_v9  ;;  %v7282_v39 = vsub.f32 %v7175_v51, %v1761_v42  ;;  %5661 = vmatmul.mubr.bf16.vlgmr.msra.gmra.mrb[16].mxu1 %v2105_v61  ;;  %v2076_v4 = vmul.f32 0.01, %v7237_v63  ;;  %v2077_v43 = vmul.f32 0.01, %v7244_v11 }
 0x405   : > { %v6024_v13 = vpop.eup %6023  ;;  %v1999_v62 = vrot.slane %v1950_v29, %v7089_v52  ;;  %v1882_v44 = vrot.slane %v1881_v10, 2  ;;  %v1886_v47 = vrot.slane %v1795_v19, 4  ;;  %vm2062_vm6 = vcmp.ge.f32.partialorder %v7233_v21, 0.0 }
 0x406   : > { %v1948_v34 = vmul.f32 %v7275_v1, %v6024_v13  ;;  %v1870_v24 = vrot.slane %v1869_v36, 2  ;;  %v1793_v20 = vmul.f32 %v7282_v39, %v7282_v39  ;;  %v2092_v51 = vsel %vm2060_vm4, %v7237_v63, %v2076_v4 }
 0x407   : > { %v2030_v27 = vmul.f32 %v1999_v62, %v7186_v16  ;;  %v1883_v3 = vadd.f32 %v1882_v44, %v1881_v10  ;;  %v1887_v17 = vadd.f32 %v1886_v47, %v1795_v19  ;;  %v2093_v7 = vsel %vm2061_vm5, %v7244_v11, %v2077_v43 }
 0x408   : > { %v1991_v48 = vrot.slane %v1948_v34, %v7089_v52  ;;  %v1871_v40 = vadd.f32 %v1870_v24, %v1869_v36  ;;  %v1874_v41 = vrot.slane %v1793_v20, 4  ;;  %v2106_v5 = vpack.c.bf16 %v2093_v7, %v2092_v51 }
 0x409   : > { %v6026_v26 = vpop.eup %6025  ;;  %v2050_v35 = vadd.f32 %v7102_v0, %v2030_v27  ;;  %v1884_v8 = vrot.slane %v1883_v3, 1  ;;  %v1888_v50 = vrot.slane %v1887_v17, 2  ;;  %vm2063_vm7 = vcmp.ge.f32.partialorder %v7241_v28, 0.0 }
 0x40a   : > { %v2028_v16 = vmul.f32 %v1991_v48, %v7199_v45  ;;  %v1951_v63 = vmul.f32 %v7275_v1, %v6026_v26  ;;  %v1872_v54 = vrot.slane %v1871_v40, 1  ;;  %v1875_v59 = vadd.f32 %v1874_v41, %v1793_v20  ;;  %5664 = vmatprep.mubr.bf16.mxu1 %v2106_v5 }
 0x40b   : > { %v1885_v11 = vadd.f32 %v1884_v8, %v1883_v3  ;;  %v1889_v57 = vadd.f32 %v1888_v50, %v1887_v17  ;;  %v2078_v37 = vmul.f32 0.01, %v7233_v21  ;;  %v2079_v6 = vmul.f32 0.01, %v7241_v28 }
 0x40c   : > { %v6028_v60 = vpop.eup %6027  ;;  %v2048_v56 = vadd.f32 %v7102_v0, %v2028_v16  ;;  %v2003_v46 = vrot.slane %v1951_v63, %v7089_v52  ;;  %v1873_v31 = vadd.f32 %v1872_v54, %v1871_v40  ;;  %v1876_v23 = vrot.slane %v1875_v59, 2 }
 0x40d   : > { %v1949_v45 = vmul.f32 %v7275_v1, %v6028_v60  ;;  %v1906_v30 = vmul.f32 0.125, %v1885_v11  ;;  %v1890_v32 = vrot.slane %v1889_v57, 1  ;;  %v2094_v9 = vsel %vm2062_vm6, %v7233_v21, %v2078_v37 }
 0x40e   : > { %v2031_v14 = vmul.f32 %v2003_v46, %v7212_v33  ;;  %v1904_v18 = vmul.f32 0.125, %v1873_v31  ;;  %v1877_v55 = vadd.f32 %v1876_v23, %v1875_v59  ;;  %v2095_v22 = vsel %vm2063_vm7, %v7241_v28, %v2079_v6 }
 0x40f   : > { %v1995_v61 = vrot.slane %v1949_v45, %v7089_v52  ;;  %v1922_v12 = vadd.f32 1e-05, %v1906_v30  ;;  %v1891_v53 = vadd.f32 %v1890_v32, %v1889_v57  ;;  %v2107_v42 = vpack.c.bf16 %v2095_v22, %v2094_v9  ;;  %v5909_v9 = vld [vmem:[#allocation5 + $0x100] sm:$0xff]   ;;  %v5915_v22 = vld [vmem:[#allocation5 + $0x130] sm:$0xff]  }
 0x410   : > { %v2051_v29 = vadd.f32 %v7102_v0, %v2031_v14  ;;  %v1920_v10 = vadd.f32 1e-05, %v1904_v18  ;;  %v1878_v19 = vrot.slane %v1877_v55, 1  ;;  %v2080_v4 = vmul.f32 0.01, %v2048_v56  ;;  %5676 = vmatprep.subr.bf16.mxu0 %v5909_v9  ;;  %v5911_v14 = vld [vmem:[#allocation5 + $0x110] sm:$0xff]  }
 0x411   : > { %v2029_v36 = vmul.f32 %v1995_v61, %v7224_v25  ;;  %6029 = vrsqrt.f32 %v1922_v12  ;;  %v1907_v21 = vmul.f32 0.125, %v1891_v53  ;;  %5665 = vmatmul.mubr.bf16.gmra.mrb[20].mxu1 %v2107_v42  ;;  %vm2066_vm8 = vcmp.ge.f32.partialorder %v2050_v35, 0.0  ;;  %5677 = vmatpush3.bf16.msra.mxu0 %v5909_v9  ;;  %v5913_v18 = vld [vmem:[#allocation5 + $0x120] sm:$0xff]   ;;  %v5916_v61 = vld [vmem:[#allocation5 + $0x138] sm:$0xff]  }
 0x412   : > { %6031 = vrsqrt.f32 %v1920_v10  ;;  %v1879_v33 = vadd.f32 %v1878_v19, %v1877_v55  ;;  %vm2067_vm9 = vcmp.ge.f32.partialorder %v2051_v29, 0.0  ;;  %v2082_v13 = vmul.f32 0.01, %v2050_v35  ;;  %v5914_v55 = vld [vmem:[#allocation5 + $0x128] sm:$0xff]  }
 0x413   : > { %v2049_v28 = vadd.f32 %v7102_v0, %v2029_v36  ;;  %v1923_v43 = vadd.f32 1e-05, %v1907_v21  ;;  %vm2064_vm10 = vcmp.ge.f32.partialorder %v2048_v56, 0.0  ;;  %v2083_v44 = vmul.f32 0.01, %v2051_v29 }
 0x414   : > { %v1905_v62 = vmul.f32 0.125, %v1879_v33  ;;  %v2098_v25 = vsel %vm2066_vm8, %v2050_v35, %v2082_v13  ;;  %v2096_v20 = vsel %vm2064_vm10, %v2048_v56, %v2080_v4 }
 0x415   : > { %6033 = vrsqrt.f32 %v1923_v43  ;;  %vm2065_vm11 = vcmp.ge.f32.partialorder %v2049_v28, 0.0  ;;  %v2081_v47 = vmul.f32 0.01, %v2049_v28  ;;  %v2099_v24 = vsel %vm2067_vm9, %v2051_v29, %v2083_v44 }
 0x416   : > { %v1921_v34 = vadd.f32 1e-05, %v1905_v62  ;;  %v2109_v27 = vpack.c.bf16 %v2099_v24, %v2098_v25 }
 0x417   : > { %v2097_v51 = vsel %vm2065_vm11, %v2049_v28, %v2081_v47 }
 0x418   : > { %6035 = vrsqrt.f32 %v1921_v34  ;;  %v2108_v3 = vpack.c.bf16 %v2097_v51, %v2096_v20 }
 0x41a   : > { %5668 = vmatprep.mubr.bf16.mxu1 %v2108_v3 }
 0x41b   : > { %v6030_v17 = vpop.eup %6029  ;;  %5669 = vmatmul.mubr.bf16.gmra.mrb[24].mxu1 %v2109_v27 }
 0x41c   : > { %v6032_v7 = vpop.eup %6031  ;;  %v1954_v48 = vmul.f32 %v7275_v1, %v6030_v17 }
 0x41d   : > { %v1952_v40 = vmul.f32 %v7275_v1, %v6032_v7 }
 0x41e   : > { %v2015_v41 = vrot.slane %v1954_v48, %v7089_v52 }
 0x41f   : > { %v6034_v5 = vpop.eup %6033  ;;  %v2007_v26 = vrot.slane %v1952_v40, %v7089_v52 }
 0x420   : > { %v2034_v35 = vmul.f32 %v2015_v41, %v7252_v58  ;;  %v1955_v8 = vmul.f32 %v7275_v1, %v6034_v5  ;;  %v7336_v41 = vsub.s32 3, %v6596_v49 }
 0x421   : > { %v2032_v50 = vmul.f32 %v2007_v26, %v7256_v15 }
 0x422   : > { %v6036_v16 = vpop.eup %6035  ;;  %v2054_v63 = vadd.f32 %v7102_v0, %v2034_v35  ;;  %v2019_v54 = vrot.slane %v1955_v8, %v7089_v52 }
 0x423   : > { %v1953_v59 = vmul.f32 %v7275_v1, %v6036_v16  ;;  %v2052_v57 = vadd.f32 %v7102_v0, %v2032_v50 }
 0x424   : > { %v2035_v11 = vmul.f32 %v2019_v54, %v7270_v2  ;;  %v2086_v58 = vmul.f32 0.01, %v2054_v63  ;;  %vm2070_vm12 = vcmp.ge.f32.partialorder %v2054_v63, 0.0  ;;  %v7347_v54 = vrot.slane %v7098_v38, %v7336_v41 }
 0x425   : > { %v2011_v37 = vrot.slane %v1953_v59, %v7089_v52  ;;  %v2084_v46 = vmul.f32 0.01, %v2052_v57  ;;  %vm2068_vm14 = vcmp.ge.f32.partialorder %v2052_v57, 0.0 }
 0x426   : > { %v2055_v6 = vadd.f32 %v7102_v0, %v2035_v11  ;;  %v2102_v31 = vsel %vm2070_vm12, %v2054_v63, %v2086_v58 }
 0x427   : > { %v2033_v60 = vmul.f32 %v2011_v37, %v7282_v39  ;;  %v2100_v30 = vsel %vm2068_vm14, %v2052_v57, %v2084_v46  ;;  %v5910_v39 = vld [vmem:[#allocation5 + $0x108] sm:$0xff]  }
 0x428   : > { %vm2071_vm13 = vcmp.ge.f32.partialorder %v2055_v6, 0.0  ;;  %v2087_v15 = vmul.f32 0.01, %v2055_v6  ;;  %5678 = vmatprep.subr.bf16.mxu0 %v5910_v39 }
 0x429   : > { %v2053_v56 = vadd.f32 %v7102_v0, %v2033_v60  ;;  %5679 = vmatpush3.bf16.msra.mxu0 %v5910_v39  ;;  %v5912_v0 = vld [vmem:[#allocation5 + $0x118] sm:$0xff]  }
 0x42a   : > { %v2103_v23 = vsel %vm2071_vm13, %v2055_v6, %v2087_v15  ;;  %5680 = vmatprep.subr.bf16.mxu0 %v5911_v14 }
 0x42b   : > { %vm2069_vm15 = vcmp.ge.f32.partialorder %v2053_v56, 0.0  ;;  %v2085_v2 = vmul.f32 0.01, %v2053_v56  ;;  %v2111_v45 = vpack.c.bf16 %v2103_v23, %v2102_v31 }
 0x42d   : > { %v2101_v32 = vsel %vm2069_vm15, %v2053_v56, %v2085_v2  ;;  %5681 = vmatpush3.bf16.msra.mxu0 %v5911_v14 }
 0x42e   : > { %v2110_v52 = vpack.c.bf16 %v2101_v32, %v2100_v30  ;;  %5682 = vmatprep.subr.bf16.mxu0 %v5912_v0 }
 0x430   : > { %5672 = vmatprep.mubr.bf16.mxu1 %v2110_v52 }
 0x431   : > { %5673 = vmatmul.mubr.bf16.gmra.mrb[28].mxu1 %v2111_v45  ;;  %5683 = vmatpush3.bf16.msra.mxu0 %v5912_v0 }
 0x432   : > { %5684 = vmatprep.subr.bf16.mxu0 %v5913_v18 }
 0x435   : > { %5685 = vmatpush3.bf16.msra.mxu0 %v5913_v18 }
 0x436   : > { %5686 = vmatprep.subr.bf16.mxu0 %v5914_v55 }
 0x439   : > { %5687 = vmatpush3.bf16.msra.mxu0 %v5914_v55 }
 0x43a   : > { %5688 = vmatprep.subr.bf16.mxu0 %v5915_v22 }
 0x43d   : > { %5689 = vmatpush3.bf16.msra.mxu0 %v5915_v22 }
 0x43e   : > { %5690 = vmatprep.subr.bf16.mxu0 %v5916_v61 }
 0x441   : > { %5691 = vmatpush3.bf16.msra.mxu0 %v5916_v61 }
 0x4d7   : > { %v5662_v12 = vpop.f32.mrb[16].mxu1 }
 0x4d8   : > { %v2286_v53 = vrot.slane %v5662_v12, 4  ;;  %v2211_v42 = vpop.f32.mrb[17].mxu1 }
 0x4d9   : > { %v2274_v29 = vrot.slane %v2211_v42, 4  ;;  %v5663_v10 = vpop.f32.mrb[18].mxu1 }
 0x4da   : > { %v2287_v19 = vadd.f32 %v5662_v12, %v2286_v53  ;;  %v2292_v36 = vrot.slane %v5663_v10, 4  ;;  %v2214_v21 = vpop.f32.mrb[19].mxu1 }
 0x4db   : > { %v2275_v33 = vadd.f32 %v2274_v29, %v2211_v42  ;;  %v2280_v4 = vrot.slane %v2214_v21, 4 }
 0x4dc   : > { %v2288_v28 = vrot.slane %v2287_v19, 2  ;;  %v2293_v43 = vadd.f32 %v5663_v10, %v2292_v36 }
 0x4dd   : > { %v2276_v13 = vrot.slane %v2275_v33, 2  ;;  %v2281_v62 = vadd.f32 %v2280_v4, %v2214_v21 }
 0x4de   : > { %v2289_v44 = vadd.f32 %v2288_v28, %v2287_v19  ;;  %v2294_v47 = vrot.slane %v2293_v43, 2 }
 0x4df   : > { %v2277_v34 = vadd.f32 %v2276_v13, %v2275_v33  ;;  %v2282_v25 = vrot.slane %v2281_v62, 2 }
 0x4e0   : > { %v2290_v24 = vrot.slane %v2289_v44, 1  ;;  %v2295_v20 = vadd.f32 %v2294_v47, %v2293_v43 }
 0x4e1   : > { %v2278_v51 = vrot.slane %v2277_v34, 1  ;;  %v2283_v27 = vadd.f32 %v2282_v25, %v2281_v62 }
 0x4e2   : > { %v2291_v3 = vadd.f32 %v2290_v24, %v2289_v44  ;;  %v2296_v17 = vrot.slane %v2295_v20, 1 }
 0x4e3   : > { %v2279_v7 = vadd.f32 %v2278_v51, %v2277_v34  ;;  %v2284_v48 = vrot.slane %v2283_v27, 1 }
 0x4e4   : > { %v2372_v40 = vmul.f32 0.125, %v2291_v3  ;;  %v2297_v5 = vadd.f32 %v2296_v17, %v2295_v20  ;;  %v7338_v26 = vpop.f32.mrb[20].mxu1 }
 0x4e5   : > { %v2370_v35 = vmul.f32 0.125, %v2279_v7  ;;  %v2285_v8 = vadd.f32 %v2284_v48, %v2283_v27  ;;  %v2310_v50 = vrot.slane %v7338_v26, 4  ;;  %v7341_v16 = vpop.f32.mrb[21].mxu1 }
 0x4e6   : > { %v7343_v63 = vsub.f32 %v5662_v12, %v2372_v40  ;;  %v2373_v59 = vmul.f32 0.125, %v2297_v5  ;;  %v2298_v11 = vrot.slane %v7341_v16, 4  ;;  %v7350_v57 = vpop.f32.mrb[22].mxu1 }
 0x4e7   : > { %v7352_v37 = vsub.f32 %v2211_v42, %v2370_v35  ;;  %v2371_v6 = vmul.f32 0.125, %v2285_v8  ;;  %v2311_v58 = vadd.f32 %v7338_v26, %v2310_v50  ;;  %v2316_v60 = vrot.slane %v7350_v57, 4  ;;  %v7356_v15 = vpop.f32.mrb[23].mxu1 }
 0x4e8   : > { %v2404_v56 = vmul.f32 %v7343_v63, %v7343_v63  ;;  %v7360_v46 = vsub.f32 %v5663_v10, %v2373_v59  ;;  %v2299_v38 = vadd.f32 %v2298_v11, %v7341_v16  ;;  %v2304_v31 = vrot.slane %v7356_v15, 4 }
 0x4e9   : > { %v2402_v23 = vmul.f32 %v7352_v37, %v7352_v37  ;;  %v7366_v2 = vsub.f32 %v2214_v21, %v2371_v6  ;;  %v2312_v45 = vrot.slane %v2311_v58, 2  ;;  %v2317_v30 = vadd.f32 %v7350_v57, %v2316_v60 }
 0x4ea   : > { %v2430_v32 = vrot.slane %v2404_v56, 4  ;;  %v2405_v52 = vmul.f32 %v7360_v46, %v7360_v46  ;;  %v2300_v9 = vrot.slane %v2299_v38, 2  ;;  %v2305_v39 = vadd.f32 %v2304_v31, %v7356_v15 }
 0x4eb   : > { %v2418_v14 = vrot.slane %v2402_v23, 4  ;;  %v2403_v0 = vmul.f32 %v7366_v2, %v7366_v2  ;;  %v2313_v18 = vadd.f32 %v2312_v45, %v2311_v58  ;;  %v2318_v55 = vrot.slane %v2317_v30, 2 }
 0x4ec   : > { %v2431_v22 = vadd.f32 %v2430_v32, %v2404_v56  ;;  %v2436_v61 = vrot.slane %v2405_v52, 4  ;;  %v2301_v12 = vadd.f32 %v2300_v9, %v2299_v38  ;;  %v2306_v53 = vrot.slane %v2305_v39, 2 }
 0x4ed   : > { %v2419_v42 = vadd.f32 %v2418_v14, %v2402_v23  ;;  %v2424_v29 = vrot.slane %v2403_v0, 4  ;;  %v2314_v10 = vrot.slane %v2313_v18, 1  ;;  %v2319_v19 = vadd.f32 %v2318_v55, %v2317_v30 }
 0x4ee   : > { %v2432_v36 = vrot.slane %v2431_v22, 2  ;;  %v2437_v21 = vadd.f32 %v2436_v61, %v2405_v52  ;;  %v2302_v33 = vrot.slane %v2301_v12, 1  ;;  %v2307_v4 = vadd.f32 %v2306_v53, %v2305_v39  ;;  %v7374_v28 = vpop.f32.mrb[24].mxu1 }
 0x4ef   : > { %v2420_v43 = vrot.slane %v2419_v42, 2  ;;  %v2425_v13 = vadd.f32 %v2424_v29, %v2403_v0  ;;  %v2315_v62 = vadd.f32 %v2314_v10, %v2313_v18  ;;  %v2320_v44 = vrot.slane %v2319_v19, 1  ;;  %v7376_v47 = vpop.f32.mrb[25].mxu1 }
 0x4f0   : > { %v2433_v34 = vadd.f32 %v2432_v36, %v2431_v22  ;;  %v2438_v25 = vrot.slane %v2437_v21, 2  ;;  %v2303_v24 = vadd.f32 %v2302_v33, %v2301_v12  ;;  %v2308_v20 = vrot.slane %v2307_v4, 1  ;;  %v7378_v51 = vpop.f32.mrb[26].mxu1 }
 0x4f1   : > { %v2421_v27 = vadd.f32 %v2420_v43, %v2419_v42  ;;  %v2426_v3 = vrot.slane %v2425_v13, 2  ;;  %v2376_v17 = vmul.f32 0.125, %v2315_v62  ;;  %v2321_v7 = vadd.f32 %v2320_v44, %v2319_v19  ;;  %v7380_v48 = vpop.f32.mrb[27].mxu1 }
 0x4f2   : > { %v2434_v40 = vrot.slane %v2433_v34, 1  ;;  %v2439_v5 = vadd.f32 %v2438_v25, %v2437_v21  ;;  %v2374_v35 = vmul.f32 0.125, %v2303_v24  ;;  %v2309_v8 = vadd.f32 %v2308_v20, %v2307_v4 }
 0x4f3   : > { %v2422_v50 = vrot.slane %v2421_v27, 1  ;;  %v2427_v59 = vadd.f32 %v2426_v3, %v2425_v13  ;;  %v7383_v11 = vsub.f32 %v7338_v26, %v2376_v17  ;;  %v2377_v6 = vmul.f32 0.125, %v2321_v7 }
 0x4f4   : > { %v2435_v58 = vadd.f32 %v2434_v40, %v2433_v34  ;;  %v2440_v60 = vrot.slane %v2439_v5, 1  ;;  %v7386_v56 = vsub.f32 %v7341_v16, %v2374_v35  ;;  %v2375_v38 = vmul.f32 0.125, %v2309_v8 }
 0x4f5   : > { %v2423_v31 = vadd.f32 %v2422_v50, %v2421_v27  ;;  %v2428_v23 = vrot.slane %v2427_v59, 1  ;;  %v2408_v45 = vmul.f32 %v7383_v11, %v7383_v11  ;;  %v7391_v30 = vsub.f32 %v7350_v57, %v2377_v6 }
 0x4f6   : > { %v2516_v32 = vmul.f32 0.125, %v2435_v58  ;;  %v2441_v52 = vadd.f32 %v2440_v60, %v2439_v5  ;;  %v2406_v26 = vmul.f32 %v7386_v56, %v7386_v56  ;;  %v7396_v9 = vsub.f32 %v7356_v15, %v2375_v38 }
 0x4f7   : > { %v2514_v39 = vmul.f32 0.125, %v2423_v31  ;;  %v2429_v16 = vadd.f32 %v2428_v23, %v2427_v59  ;;  %v2454_v14 = vrot.slane %v2408_v45, 4  ;;  %v2409_v0 = vmul.f32 %v7391_v30, %v7391_v30 }
 0x4f8   : > { %v2532_v18 = vadd.f32 1e-05, %v2516_v32  ;;  %v2517_v55 = vmul.f32 0.125, %v2441_v52  ;;  %v2442_v22 = vrot.slane %v2406_v26, 4  ;;  %v2407_v57 = vmul.f32 %v7396_v9, %v7396_v9 }
 0x4f9   : > { %v2530_v61 = vadd.f32 1e-05, %v2514_v39  ;;  %v2515_v12 = vmul.f32 0.125, %v2429_v16  ;;  %v2455_v53 = vadd.f32 %v2454_v14, %v2408_v45  ;;  %v2460_v42 = vrot.slane %v2409_v0, 4 }
 0x4fa   : > { %6037 = vrsqrt.f32 %v2532_v18  ;;  %v2533_v29 = vadd.f32 1e-05, %v2517_v55  ;;  %v2443_v15 = vadd.f32 %v2442_v22, %v2406_v26  ;;  %v2448_v10 = vrot.slane %v2407_v57, 4 }
 0x4fb   : > { %6039 = vrsqrt.f32 %v2530_v61  ;;  %v2531_v19 = vadd.f32 1e-05, %v2515_v12  ;;  %v2456_v36 = vrot.slane %v2455_v53, 2  ;;  %v2461_v21 = vadd.f32 %v2460_v42, %v2409_v0 }
 0x4fc   : > { %6041 = vrsqrt.f32 %v2533_v29  ;;  %v2444_v33 = vrot.slane %v2443_v15, 2  ;;  %v2449_v4 = vadd.f32 %v2448_v10, %v2407_v57  ;;  %v2334_v43 = vrot.slane %v7374_v28, 4 }
 0x4fd   : > { %6043 = vrsqrt.f32 %v2531_v19  ;;  %v2457_v13 = vadd.f32 %v2456_v36, %v2455_v53  ;;  %v2462_v62 = vrot.slane %v2461_v21, 2  ;;  %v2322_v44 = vrot.slane %v7376_v47, 4 }
 0x4fe   : > { %v2445_v34 = vadd.f32 %v2444_v33, %v2443_v15  ;;  %v2450_v25 = vrot.slane %v2449_v4, 2  ;;  %v2335_v24 = vadd.f32 %v7374_v28, %v2334_v43  ;;  %v2340_v20 = vrot.slane %v7378_v51, 4 }
 0x4ff   : > { %v2458_v27 = vrot.slane %v2457_v13, 1  ;;  %v2463_v3 = vadd.f32 %v2462_v62, %v2461_v21  ;;  %v2323_v17 = vadd.f32 %v2322_v44, %v7376_v47  ;;  %v2328_v7 = vrot.slane %v7380_v48, 4 }
 0x500   : > { %v2446_v40 = vrot.slane %v2445_v34, 1  ;;  %v2451_v5 = vadd.f32 %v2450_v25, %v2449_v4  ;;  %v2336_v35 = vrot.slane %v2335_v24, 2  ;;  %v2341_v8 = vadd.f32 %v7378_v51, %v2340_v20 }
 0x501   : > { %v2459_v50 = vadd.f32 %v2458_v27, %v2457_v13  ;;  %v2464_v59 = vrot.slane %v2463_v3, 1  ;;  %v2324_v6 = vrot.slane %v2323_v17, 2  ;;  %v2329_v58 = vadd.f32 %v2328_v7, %v7380_v48 }
 0x502   : > { %v2447_v60 = vadd.f32 %v2446_v40, %v2445_v34  ;;  %v2452_v38 = vrot.slane %v2451_v5, 1  ;;  %v2337_v31 = vadd.f32 %v2336_v35, %v2335_v24  ;;  %v2342_v23 = vrot.slane %v2341_v8, 2 }
 0x503   : > { %v2520_v45 = vmul.f32 0.125, %v2459_v50  ;;  %v2465_v32 = vadd.f32 %v2464_v59, %v2463_v3  ;;  %v2325_v52 = vadd.f32 %v2324_v6, %v2323_v17  ;;  %v2330_v26 = vrot.slane %v2329_v58, 2 }
 0x504   : > { %v6038_v39 = vpop.eup %6037  ;;  %v2518_v16 = vmul.f32 0.125, %v2447_v60  ;;  %v2453_v14 = vadd.f32 %v2452_v38, %v2451_v5  ;;  %v2338_v0 = vrot.slane %v2337_v31, 1  ;;  %v2343_v18 = vadd.f32 %v2342_v23, %v2341_v8  ;;  %v7410_v55 = vpop.f32.mrb[28].mxu1 }
 0x505   : > { %v6040_v22 = vpop.eup %6039  ;;  %v2564_v57 = vmul.f32 %v7275_v1, %v6038_v39  ;;  %v2536_v61 = vadd.f32 1e-05, %v2520_v45  ;;  %v2521_v12 = vmul.f32 0.125, %v2465_v32  ;;  %v2326_v53 = vrot.slane %v2325_v52, 1  ;;  %v7413_v42 = vpop.f32.mrb[29].mxu1 }
 0x506   : > { %v6042_v29 = vpop.eup %6041  ;;  %v2562_v15 = vmul.f32 %v7275_v1, %v6040_v22  ;;  %v2534_v10 = vadd.f32 1e-05, %v2518_v16  ;;  %v2519_v19 = vmul.f32 0.125, %v2453_v14  ;;  %v2339_v36 = vadd.f32 %v2338_v0, %v2337_v31  ;;  %v7416_v21 = vpop.f32.mrb[30].mxu1 }
 0x507   : > { %v6044_v33 = vpop.eup %6043  ;;  %v2589_v4 = vrot.slane %v2564_v57, %v7336_v41  ;;  %v2565_v43 = vmul.f32 %v7275_v1, %v6042_v29  ;;  %6045 = vrsqrt.f32 %v2536_v61  ;;  %v2537_v13 = vadd.f32 1e-05, %v2521_v12  ;;  %v7420_v62 = vpop.f32.mrb[31].mxu1 }
 0x508   : > { %v2581_v44 = vrot.slane %v2562_v15, %v7336_v41  ;;  %v2563_v34 = vmul.f32 %v7275_v1, %v6044_v33  ;;  %6047 = vrsqrt.f32 %v2534_v10  ;;  %v2535_v25 = vadd.f32 1e-05, %v2519_v19 }
 0x509   : > { %v2644_v24 = vmul.f32 %v2589_v4, %v7343_v63  ;;  %v2593_v20 = vrot.slane %v2565_v43, %v7336_v41  ;;  %6049 = vrsqrt.f32 %v2537_v13  ;;  %v2380_v27 = vmul.f32 0.125, %v2339_v36 }
 0x50a   : > { %v2642_v3 = vmul.f32 %v2581_v44, %v7352_v37  ;;  %v2585_v17 = vrot.slane %v2563_v34, %v7336_v41  ;;  %6051 = vrsqrt.f32 %v2535_v25  ;;  %v2327_v7 = vadd.f32 %v2326_v53, %v2325_v52 }
 0x50b   : > { %v2664_v40 = vadd.f32 %v7347_v54, %v2644_v24  ;;  %v2645_v5 = vmul.f32 %v2593_v20, %v7360_v46  ;;  %v7431_v35 = vsub.f32 %v7374_v28, %v2380_v27  ;;  %v2344_v8 = vrot.slane %v2343_v18, 1 }
 0x50c   : > { %v7434_v63 = vadd.f32 %v7347_v54, %v2642_v3  ;;  %v2643_v50 = vmul.f32 %v2585_v17, %v7366_v2  ;;  %v2378_v59 = vmul.f32 0.125, %v2327_v7  ;;  %v2331_v6 = vadd.f32 %v2330_v26, %v2329_v58 }
 0x50d   : > { %vm2680_vm0 = vcmp.ge.f32.partialorder %v2664_v40, 0.0  ;;  %v2696_v37 = vmul.f32 0.01, %v2664_v40  ;;  %v2665_v60 = vadd.f32 %v7347_v54, %v2645_v5  ;;  %v2412_v38 = vmul.f32 %v7431_v35, %v7431_v35 }
 0x50e   : > { %v7441_v46 = vadd.f32 %v7347_v54, %v2643_v50  ;;  %v7444_v28 = vsub.f32 %v7376_v47, %v2378_v59  ;;  %v2345_v31 = vadd.f32 %v2344_v8, %v2343_v18  ;;  %v2332_v23 = vrot.slane %v2331_v6, 1 }
 0x50f   : > { %v7446_v45 = vsel %vm2680_vm0, %v2664_v40, %v2696_v37  ;;  %vm2681_vm1 = vcmp.ge.f32.partialorder %v2665_v60, 0.0  ;;  %v2697_v2 = vmul.f32 0.01, %v2665_v60  ;;  %v2478_v58 = vrot.slane %v2412_v38, 4 }
 0x510   : > { %v2410_v32 = vmul.f32 %v7444_v28, %v7444_v28  ;;  %v2381_v52 = vmul.f32 0.125, %v2345_v31  ;;  %v2333_v26 = vadd.f32 %v2332_v23, %v2331_v6  ;;  %v2358_v39 = vrot.slane %v7410_v55, 4 }
 0x511   : > { %v6046_v16 = vpop.eup %6045  ;;  %v7451_v14 = vsel %vm2681_vm1, %v2665_v60, %v2697_v2  ;;  %v2479_v0 = vadd.f32 %v2478_v58, %v2412_v38  ;;  %v2346_v47 = vrot.slane %v7413_v42, 4  ;;  %v2364_v18 = vrot.slane %v7416_v21, 4 }
 0x512   : > { %v6048_v22 = vpop.eup %6047  ;;  %v2568_v57 = vmul.f32 %v7275_v1, %v6046_v16  ;;  %v2466_v61 = vrot.slane %v2410_v32, 4  ;;  %v7457_v12 = vsub.f32 %v7378_v51, %v2381_v52  ;;  %v2379_v53 = vmul.f32 0.125, %v2333_v26 }
 0x513   : > { %v6050_v29 = vpop.eup %6049  ;;  %v2566_v15 = vmul.f32 %v7275_v1, %v6048_v22  ;;  %v2480_v10 = vrot.slane %v2479_v0, 2  ;;  %v2359_v19 = vadd.f32 %v7410_v55, %v2358_v39  ;;  %v2347_v36 = vadd.f32 %v2346_v47, %v7413_v42 }
 0x514   : > { %v6052_v33 = vpop.eup %6051  ;;  %v2605_v4 = vrot.slane %v2568_v57, %v7336_v41  ;;  %v2569_v43 = vmul.f32 %v7275_v1, %v6050_v29  ;;  %v2467_v13 = vadd.f32 %v2466_v61, %v2410_v32  ;;  %v2413_v44 = vmul.f32 %v7457_v12, %v7457_v12 }
 0x515   : > { %v2597_v51 = vrot.slane %v2566_v15, %v7336_v41  ;;  %v2567_v34 = vmul.f32 %v7275_v1, %v6052_v33  ;;  %v2481_v25 = vadd.f32 %v2480_v10, %v2479_v0  ;;  %v7469_v24 = vsub.f32 %v7380_v48, %v2379_v53 }
 0x516   : > { %v2648_v20 = vmul.f32 %v2605_v4, %v7383_v11  ;;  %v2609_v27 = vrot.slane %v2569_v43, %v7336_v41  ;;  %v2468_v3 = vrot.slane %v2467_v13, 2  ;;  %v2484_v17 = vrot.slane %v2413_v44, 4 }
 0x517   : > { %v2646_v7 = vmul.f32 %v2597_v51, %v7386_v56  ;;  %v2601_v40 = vrot.slane %v2567_v34, %v7336_v41  ;;  %v2482_v5 = vrot.slane %v2481_v25, 1  ;;  %v2411_v8 = vmul.f32 %v7469_v24, %v7469_v24 }
 0x518   : > { %v7478_v50 = vadd.f32 %v7347_v54, %v2648_v20  ;;  %v2649_v48 = vmul.f32 %v2609_v27, %v7391_v30  ;;  %v2469_v59 = vadd.f32 %v2468_v3, %v2467_v13  ;;  %v2485_v6 = vadd.f32 %v2484_v17, %v2413_v44 }
 0x519   : > { %v7482_v11 = vadd.f32 %v7347_v54, %v2646_v7  ;;  %v2647_v37 = vmul.f32 %v2601_v40, %v7396_v9  ;;  %v2483_v60 = vadd.f32 %v2482_v5, %v2481_v25  ;;  %v2472_v56 = vrot.slane %v2411_v8, 4 }
 0x51a   : > { %v7486_v38 = vadd.f32 %v7347_v54, %v2649_v48  ;;  %v2470_v31 = vrot.slane %v2469_v59, 1  ;;  %v2486_v23 = vrot.slane %v2485_v6, 2  ;;  %v2360_v2 = vrot.slane %v2359_v19, 2 }
 0x51b   : > { %v7489_v58 = vadd.f32 %v7347_v54, %v2647_v37  ;;  %v2524_v32 = vmul.f32 0.125, %v2483_v60  ;;  %v2473_v30 = vadd.f32 %v2472_v56, %v2411_v8  ;;  %v2348_v52 = vrot.slane %v2347_v36, 2 }
 0x51c   : > { %v2471_v26 = vadd.f32 %v2470_v31, %v2469_v59  ;;  %v2487_v39 = vadd.f32 %v2486_v23, %v2485_v6  ;;  %v2361_v16 = vadd.f32 %v2360_v2, %v2359_v19  ;;  %v2365_v0 = vadd.f32 %v7416_v21, %v2364_v18 }
 0x51d   : > { %v2540_v9 = vadd.f32 1e-05, %v2524_v32  ;;  %v2474_v47 = vrot.slane %v2473_v30, 2  ;;  %v2349_v22 = vadd.f32 %v2348_v52, %v2347_v36  ;;  %v2352_v57 = vrot.slane %v7420_v62, 4 }
 0x51e   : > { %v2522_v61 = vmul.f32 0.125, %v2471_v26  ;;  %v2488_v53 = vrot.slane %v2487_v39, 1  ;;  %v2362_v29 = vrot.slane %v2361_v16, 1  ;;  %v2366_v15 = vrot.slane %v2365_v0, 2 }
 0x51f   : > { %6053 = vrsqrt.f32 %v2540_v9  ;;  %v2475_v10 = vadd.f32 %v2474_v47, %v2473_v30  ;;  %v2350_v33 = vrot.slane %v2349_v22, 1  ;;  %v2353_v4 = vadd.f32 %v2352_v57, %v7420_v62 }
 0x520   : > { %v2538_v43 = vadd.f32 1e-05, %v2522_v61  ;;  %v2489_v13 = vadd.f32 %v2488_v53, %v2487_v39  ;;  %v2363_v44 = vadd.f32 %v2362_v29, %v2361_v16  ;;  %v2367_v19 = vadd.f32 %v2366_v15, %v2365_v0 }
 0x521   : > { %v2476_v51 = vrot.slane %v2475_v10, 1  ;;  %v2351_v18 = vadd.f32 %v2350_v33, %v2349_v22  ;;  %v2354_v34 = vrot.slane %v2353_v4, 2  ;;  %vm2678_vm2 = vcmp.ge.f32.partialorder %v7434_v63, 0.0 }
 0x522   : > { %6055 = vrsqrt.f32 %v2538_v43  ;;  %v2525_v36 = vmul.f32 0.125, %v2489_v13  ;;  %v2384_v25 = vmul.f32 0.125, %v2363_v44  ;;  %v2368_v20 = vrot.slane %v2367_v19, 1 }
 0x523   : > { %v2477_v27 = vadd.f32 %v2476_v51, %v2475_v10  ;;  %v2382_v3 = vmul.f32 0.125, %v2351_v18  ;;  %v2355_v17 = vadd.f32 %v2354_v34, %v2353_v4  ;;  %vm2679_vm3 = vcmp.ge.f32.partialorder %v7441_v46, 0.0 }
 0x524   : > { %v2541_v7 = vadd.f32 1e-05, %v2525_v36  ;;  %v7497_v40 = vsub.f32 %v7410_v55, %v2384_v25  ;;  %v2369_v5 = vadd.f32 %v2368_v20, %v2367_v19  ;;  %v2694_v8 = vmul.f32 0.01, %v7434_v63 }
 0x525   : > { %v2523_v48 = vmul.f32 0.125, %v2477_v27  ;;  %v7501_v59 = vsub.f32 %v7413_v42, %v2382_v3  ;;  %v2356_v6 = vrot.slane %v2355_v17, 1  ;;  %v2695_v37 = vmul.f32 0.01, %v7441_v46 }
 0x526   : > { %6057 = vrsqrt.f32 %v2541_v7  ;;  %v2416_v60 = vmul.f32 %v7497_v40, %v7497_v40  ;;  %v2385_v56 = vmul.f32 0.125, %v2369_v5  ;;  %v2710_v55 = vsel %vm2678_vm2, %v7434_v63, %v2694_v8 }
 0x527   : > { %v2539_v31 = vadd.f32 1e-05, %v2523_v48  ;;  %v2414_v23 = vmul.f32 %v7501_v59, %v7501_v59  ;;  %v2357_v2 = vadd.f32 %v2356_v6, %v2355_v17  ;;  %v2711_v42 = vsel %vm2679_vm3, %v7441_v46, %v2695_v37 }
 0x528   : > { %v2502_v32 = vrot.slane %v2416_v60, 4  ;;  %v7515_v30 = vsub.f32 %v7416_v21, %v2385_v56  ;;  %v2726_v52 = vpack.c.bf16 %v2711_v42, %v2710_v55  ;;  %v2727_v26 = vpack.c.bf16 %v7451_v14, %v7446_v45  ;;  %v7550_v56 = vld [vmem:[#allocation7] sm:$0xff] }
 0x529   : > { %v6054_v39 = vpop.eup %6053  ;;  %6059 = vrsqrt.f32 %v2539_v31  ;;  %v2490_v63 = vrot.slane %v2414_v23, 4  ;;  %v2383_v16 = vmul.f32 0.125, %v2357_v2  ;;  %vm2682_vm4 = vcmp.ge.f32.partialorder %v7482_v11, 0.0 }
 0x52a   : > { %v2572_v0 = vmul.f32 %v7275_v1, %v6054_v39  ;;  %v2503_v9 = vadd.f32 %v2502_v32, %v2416_v60  ;;  %v2417_v46 = vmul.f32 %v7515_v30, %v7515_v30  ;;  %5692 = vmatprep.mubr.bf16.mxu0 %v2726_v52  ;;  %vm2683_vm5 = vcmp.ge.f32.partialorder %v7489_v58, 0.0 }
 0x52b   : > { %v2491_v21 = vadd.f32 %v2490_v63, %v2414_v23  ;;  %v7525_v47 = vsub.f32 %v7420_v62, %v2383_v16  ;;  %5693 = vmatmul.mubr.bf16.vlgmr.msra.gmra.mrb[32].mxu0 %v2727_v26  ;;  %v2698_v45 = vmul.f32 0.01, %v7482_v11  ;;  %v2699_v14 = vmul.f32 0.01, %v7489_v58 }
 0x52c   : > { %v6056_v22 = vpop.eup %6055  ;;  %v2621_v57 = vrot.slane %v2572_v0, %v7336_v41  ;;  %v2504_v61 = vrot.slane %v2503_v9, 2  ;;  %v2508_v53 = vrot.slane %v2417_v46, 4  ;;  %vm2684_vm6 = vcmp.ge.f32.partialorder %v7478_v50, 0.0 }
 0x52d   : > { %v2570_v29 = vmul.f32 %v7275_v1, %v6056_v22  ;;  %v2492_v15 = vrot.slane %v2491_v21, 2  ;;  %v2415_v10 = vmul.f32 %v7525_v47, %v7525_v47  ;;  %v2714_v62 = vsel %vm2682_vm4, %v7482_v11, %v2698_v45 }
 0x52e   : > { %v2652_v33 = vmul.f32 %v2621_v57, %v7431_v35  ;;  %v2505_v4 = vadd.f32 %v2504_v61, %v2503_v9  ;;  %v2509_v43 = vadd.f32 %v2508_v53, %v2417_v46  ;;  %v2715_v13 = vsel %vm2683_vm5, %v7489_v58, %v2699_v14 }
 0x52f   : > { %v2613_v44 = vrot.slane %v2570_v29, %v7336_v41  ;;  %v2493_v19 = vadd.f32 %v2492_v15, %v2491_v21  ;;  %v2496_v51 = vrot.slane %v2415_v10, 4  ;;  %v2728_v18 = vpack.c.bf16 %v2715_v13, %v2714_v62 }
 0x530   : > { %v6058_v34 = vpop.eup %6057  ;;  %v2672_v36 = vadd.f32 %v7347_v54, %v2652_v33  ;;  %v2506_v25 = vrot.slane %v2505_v4, 1  ;;  %v2510_v20 = vrot.slane %v2509_v43, 2  ;;  %vm2685_vm7 = vcmp.ge.f32.partialorder %v7486_v38, 0.0 }
 0x531   : > { %v2650_v35 = vmul.f32 %v2613_v44, %v7444_v28  ;;  %v2573_v11 = vmul.f32 %v7275_v1, %v6058_v34  ;;  %v2494_v27 = vrot.slane %v2493_v19, 1  ;;  %v2497_v3 = vadd.f32 %v2496_v51, %v2415_v10  ;;  %5696 = vmatprep.mubr.bf16.mxu0 %v2728_v18 }
 0x532   : > { %v2507_v58 = vadd.f32 %v2506_v25, %v2505_v4  ;;  %v2511_v17 = vadd.f32 %v2510_v20, %v2509_v43  ;;  %v2700_v7 = vmul.f32 0.01, %v7478_v50  ;;  %v2701_v5 = vmul.f32 0.01, %v7486_v38 }
 0x533   : > { %v6060_v8 = vpop.eup %6059  ;;  %v2670_v48 = vadd.f32 %v7347_v54, %v2650_v35  ;;  %v2625_v6 = vrot.slane %v2573_v11, %v7336_v41  ;;  %v2495_v37 = vadd.f32 %v2494_v27, %v2493_v19  ;;  %v2498_v60 = vrot.slane %v2497_v3, 2 }
 0x534   : > { %v2571_v1 = vmul.f32 %v7550_v56, %v6060_v8  ;;  %v2528_v28 = vmul.f32 0.125, %v2507_v58  ;;  %v2512_v55 = vrot.slane %v2511_v17, 1  ;;  %v2716_v31 = vsel %vm2684_vm6, %v7478_v50, %v2700_v7 }
 0x535   : > { %v2653_v23 = vmul.f32 %v2625_v6, %v7457_v12  ;;  %v2526_v2 = vmul.f32 0.125, %v2495_v37  ;;  %v2499_v42 = vadd.f32 %v2498_v60, %v2497_v3  ;;  %v2717_v32 = vsel %vm2685_vm7, %v7486_v38, %v2701_v5 }
 0x536   : > { %v2617_v52 = vrot.slane %v2571_v1, %v7336_v41  ;;  %v2544_v26 = vadd.f32 1e-05, %v2528_v28  ;;  %v2513_v39 = vadd.f32 %v2512_v55, %v2511_v17  ;;  %v2729_v63 = vpack.c.bf16 %v2717_v32, %v2716_v31  ;;  %v5917_v55 = vld [vmem:[#allocation5 + $0x140] sm:$0xff]   ;;  %v5919_v31 = vld [vmem:[#allocation5 + $0x150] sm:$0xff]   ;;  %v5924_v32 = vld [vmem:[#allocation5 + $0x178] sm:$0xff]  }
 0x537   : > { %v2673_v16 = vadd.f32 %v7347_v54, %v2653_v23  ;;  %v2542_v0 = vadd.f32 1e-05, %v2526_v2  ;;  %v2500_v9 = vrot.slane %v2499_v42, 1  ;;  %v2702_v21 = vmul.f32 0.01, %v2670_v48  ;;  %5708 = vmatprep.subr.bf16.mxu1 %v5917_v55  ;;  %v5921_v23 = vld [vmem:[#allocation5 + $0x160] sm:$0xff]  }
 0x538   : > { %v2651_v46 = vmul.f32 %v2617_v52, %v7469_v24  ;;  %6061 = vrsqrt.f32 %v2544_v26  ;;  %v2529_v50 = vmul.f32 0.125, %v2513_v39  ;;  %5697 = vmatmul.mubr.bf16.gmra.mrb[36].mxu0 %v2729_v63  ;;  %vm2688_vm8 = vcmp.ge.f32.partialorder %v2672_v36, 0.0  ;;  %5709 = vmatpush3.bf16.msra.mxu1 %v5917_v55  ;;  %v5922_v2 = vld [vmem:[#allocation5 + $0x168] sm:$0xff]  }
 0x539   : > { %6063 = vrsqrt.f32 %v2542_v0  ;;  %v2501_v12 = vadd.f32 %v2500_v9, %v2499_v42  ;;  %vm2689_vm9 = vcmp.ge.f32.partialorder %v2673_v16, 0.0  ;;  %v2704_v14 = vmul.f32 0.01, %v2672_v36  ;;  %v5923_v42 = vld [vmem:[#allocation5 + $0x170] sm:$0xff]  }
 0x53a   : > { %v2671_v38 = vadd.f32 %v7347_v54, %v2651_v46  ;;  %v2545_v45 = vadd.f32 1e-05, %v2529_v50  ;;  %vm2686_vm10 = vcmp.ge.f32.partialorder %v2670_v48, 0.0  ;;  %v2705_v57 = vmul.f32 0.01, %v2673_v16 }
 0x53b   : > { %v2527_v22 = vmul.f32 0.125, %v2501_v12  ;;  %v2720_v24 = vsel %vm2688_vm8, %v2672_v36, %v2704_v14  ;;  %v2718_v15 = vsel %vm2686_vm10, %v2670_v48, %v2702_v21 }
 0x53c   : > { %6065 = vrsqrt.f32 %v2545_v45  ;;  %vm2687_vm11 = vcmp.ge.f32.partialorder %v2671_v38, 0.0  ;;  %v2703_v61 = vmul.f32 0.01, %v2671_v38  ;;  %v2721_v29 = vsel %vm2689_vm9, %v2673_v16, %v2705_v57 }
 0x53d   : > { %v2543_v53 = vadd.f32 1e-05, %v2527_v22  ;;  %v2731_v62 = vpack.c.bf16 %v2721_v29, %v2720_v24 }
 0x53e   : > { %v2719_v10 = vsel %vm2687_vm11, %v2671_v38, %v2703_v61 }
 0x53f   : > { %6067 = vrsqrt.f32 %v2543_v53  ;;  %v2730_v33 = vpack.c.bf16 %v2719_v10, %v2718_v15 }
 0x541   : > { %5700 = vmatprep.mubr.bf16.mxu0 %v2730_v33 }
 0x542   : > { %v6062_v4 = vpop.eup %6061  ;;  %5701 = vmatmul.mubr.bf16.gmra.mrb[40].mxu0 %v2731_v62 }
 0x543   : > { %v6064_v43 = vpop.eup %6063  ;;  %v2576_v13 = vmul.f32 %v7550_v56, %v6062_v4 }
 0x544   : > { %v2574_v44 = vmul.f32 %v7550_v56, %v6064_v43 }
 0x545   : > { %v2637_v19 = vrot.slane %v2576_v13, %v7336_v41 }
 0x546   : > { %v6066_v51 = vpop.eup %6065  ;;  %v2629_v18 = vrot.slane %v2574_v44, %v7336_v41  ;;  %v7581_v44 = vsub.s32 4, %v6596_v49 }
 0x547   : > { %v2656_v34 = vmul.f32 %v2637_v19, %v7497_v40  ;;  %v2577_v36 = vmul.f32 %v7550_v56, %v6066_v51 }
 0x548   : > { %v2654_v25 = vmul.f32 %v2629_v18, %v7501_v59 }
 0x549   : > { %v6068_v20 = vpop.eup %6067  ;;  %v2676_v35 = vadd.f32 %v7347_v54, %v2656_v34  ;;  %v2641_v11 = vrot.slane %v2577_v36, %v7336_v41 }
 0x54a   : > { %v2575_v27 = vmul.f32 %v7550_v56, %v6068_v20  ;;  %v2674_v58 = vadd.f32 %v7347_v54, %v2654_v25 }
 0x54b   : > { %v2657_v3 = vmul.f32 %v2641_v11, %v7515_v30  ;;  %v2708_v40 = vmul.f32 0.01, %v2676_v35  ;;  %vm2692_vm12 = vcmp.ge.f32.partialorder %v2676_v35, 0.0 }
 0x54c   : > { %v2633_v17 = vrot.slane %v2575_v27, %v7336_v41  ;;  %v2706_v48 = vmul.f32 0.01, %v2674_v58  ;;  %vm2690_vm14 = vcmp.ge.f32.partialorder %v2674_v58, 0.0 }
 0x54d   : > { %v2677_v7 = vadd.f32 %v7347_v54, %v2657_v3  ;;  %v2724_v6 = vsel %vm2692_vm12, %v2676_v35, %v2708_v40  ;;  %v7590_v35 = vld [vmem:[#allocation7 + $0x8] sm:$0xff] }
 0x54e   : > { %v2655_v5 = vmul.f32 %v2633_v17, %v7525_v47  ;;  %v2722_v1 = vsel %vm2690_vm14, %v2674_v58, %v2706_v48  ;;  %v5918_v47 = vld [vmem:[#allocation5 + $0x148] sm:$0xff]   ;;  %v7594_v11 = vrot.slane %v7590_v35, %v7581_v44 }
 0x54f   : > { %vm2693_vm13 = vcmp.ge.f32.partialorder %v2677_v7, 0.0  ;;  %v2709_v59 = vmul.f32 0.01, %v2677_v7  ;;  %5710 = vmatprep.subr.bf16.mxu1 %v5918_v47 }
 0x550   : > { %v2675_v8 = vadd.f32 %v7347_v54, %v2655_v5  ;;  %5711 = vmatpush3.bf16.msra.mxu1 %v5918_v47  ;;  %v5920_v54 = vld [vmem:[#allocation5 + $0x158] sm:$0xff]  }
 0x551   : > { %v2725_v37 = vsel %vm2693_vm13, %v2677_v7, %v2709_v59  ;;  %5712 = vmatprep.subr.bf16.mxu1 %v5919_v31 }
 0x552   : > { %vm2691_vm15 = vcmp.ge.f32.partialorder %v2675_v8, 0.0  ;;  %v2707_v30 = vmul.f32 0.01, %v2675_v8  ;;  %v2733_v60 = vpack.c.bf16 %v2725_v37, %v2724_v6 }
 0x554   : > { %v2723_v28 = vsel %vm2691_vm15, %v2675_v8, %v2707_v30  ;;  %5713 = vmatpush3.bf16.msra.mxu1 %v5919_v31 }
 0x555   : > { %v2732_v41 = vpack.c.bf16 %v2723_v28, %v2722_v1  ;;  %5714 = vmatprep.subr.bf16.mxu1 %v5920_v54 }
 0x557   : > { %5704 = vmatprep.mubr.bf16.mxu0 %v2732_v41 }
 0x558   : > { %5705 = vmatmul.mubr.bf16.gmra.mrb[44].mxu0 %v2733_v60  ;;  %5715 = vmatpush3.bf16.msra.mxu1 %v5920_v54 }
 0x559   : > { %5716 = vmatprep.subr.bf16.mxu1 %v5921_v23 }
 0x55c   : > { %5717 = vmatpush3.bf16.msra.mxu1 %v5921_v23 }
 0x55d   : > { %5718 = vmatprep.subr.bf16.mxu1 %v5922_v2 }
 0x560   : > { %5719 = vmatpush3.bf16.msra.mxu1 %v5922_v2 }
 0x561   : > { %5720 = vmatprep.subr.bf16.mxu1 %v5923_v42 }
 0x564   : > { %5721 = vmatpush3.bf16.msra.mxu1 %v5923_v42 }
 0x565   : > { %5722 = vmatprep.subr.bf16.mxu1 %v5924_v32 }
 0x568   : > { %5723 = vmatpush3.bf16.msra.mxu1 %v5924_v32 }
 0x5fe   : > { %v5694_v52 = vpop.f32.mrb[32].mxu0 }
 0x5ff   : > { %v2908_v26 = vrot.slane %v5694_v52, 4  ;;  %v2833_v39 = vpop.f32.mrb[33].mxu0 }
 0x600   : > { %v2896_v63 = vrot.slane %v2833_v39, 4  ;;  %v5695_v16 = vpop.f32.mrb[34].mxu0 }
 0x601   : > { %v2909_v0 = vadd.f32 %v5694_v52, %v2908_v26  ;;  %v2914_v9 = vrot.slane %v5695_v16, 4  ;;  %v2836_v46 = vpop.f32.mrb[35].mxu0 }
 0x602   : > { %v2897_v50 = vadd.f32 %v2896_v63, %v2833_v39  ;;  %v2902_v12 = vrot.slane %v2836_v46, 4 }
 0x603   : > { %v2910_v21 = vrot.slane %v2909_v0, 2  ;;  %v2915_v38 = vadd.f32 %v5695_v16, %v2914_v9 }
 0x604   : > { %v2898_v45 = vrot.slane %v2897_v50, 2  ;;  %v2903_v14 = vadd.f32 %v2902_v12, %v2836_v46 }
 0x605   : > { %v2911_v22 = vadd.f32 %v2910_v21, %v2909_v0  ;;  %v2916_v57 = vrot.slane %v2915_v38, 2 }
 0x606   : > { %v2899_v61 = vadd.f32 %v2898_v45, %v2897_v50  ;;  %v2904_v53 = vrot.slane %v2903_v14, 2 }
 0x607   : > { %v2912_v24 = vrot.slane %v2911_v22, 1  ;;  %v2917_v29 = vadd.f32 %v2916_v57, %v2915_v38 }
 0x608   : > { %v2900_v15 = vrot.slane %v2899_v61, 1  ;;  %v2905_v10 = vadd.f32 %v2904_v53, %v2903_v14 }
 0x609   : > { %v2913_v62 = vadd.f32 %v2912_v24, %v2911_v22  ;;  %v2918_v33 = vrot.slane %v2917_v29, 1 }
 0x60a   : > { %v2901_v4 = vadd.f32 %v2900_v15, %v2899_v61  ;;  %v2906_v43 = vrot.slane %v2905_v10, 1 }
 0x60b   : > { %v2994_v13 = vmul.f32 0.125, %v2913_v62  ;;  %v2919_v19 = vadd.f32 %v2918_v33, %v2917_v29  ;;  %v7583_v51 = vpop.f32.mrb[36].mxu0 }
 0x60c   : > { %v2992_v18 = vmul.f32 0.125, %v2901_v4  ;;  %v2907_v34 = vadd.f32 %v2906_v43, %v2905_v10  ;;  %v2932_v36 = vrot.slane %v7583_v51, 4  ;;  %v7586_v25 = vpop.f32.mrb[37].mxu0 }
 0x60d   : > { %v7588_v20 = vsub.f32 %v5694_v52, %v2994_v13  ;;  %v2995_v27 = vmul.f32 0.125, %v2919_v19  ;;  %v2920_v3 = vrot.slane %v7586_v25, 4  ;;  %v7597_v58 = vpop.f32.mrb[38].mxu0 }
 0x60e   : > { %v7599_v17 = vsub.f32 %v2833_v39, %v2992_v18  ;;  %v2993_v7 = vmul.f32 0.125, %v2907_v34  ;;  %v2933_v40 = vadd.f32 %v7583_v51, %v2932_v36  ;;  %v2938_v5 = vrot.slane %v7597_v58, 4  ;;  %v7603_v59 = vpop.f32.mrb[39].mxu0 }
 0x60f   : > { %v3026_v8 = vmul.f32 %v7588_v20, %v7588_v20  ;;  %v7607_v48 = vsub.f32 %v5695_v16, %v2995_v27  ;;  %v2921_v6 = vadd.f32 %v2920_v3, %v7586_v25  ;;  %v2926_v37 = vrot.slane %v7603_v59, 4 }
 0x610   : > { %v3024_v30 = vmul.f32 %v7599_v17, %v7599_v17  ;;  %v7613_v60 = vsub.f32 %v2836_v46, %v2993_v7  ;;  %v2934_v1 = vrot.slane %v2933_v40, 2  ;;  %v2939_v28 = vadd.f32 %v7597_v58, %v2938_v5 }
 0x611   : > { %v3052_v41 = vrot.slane %v3026_v8, 4  ;;  %v3027_v55 = vmul.f32 %v7607_v48, %v7607_v48  ;;  %v2922_v47 = vrot.slane %v2921_v6, 2  ;;  %v2927_v31 = vadd.f32 %v2926_v37, %v7603_v59 }
 0x612   : > { %v3040_v54 = vrot.slane %v3024_v30, 4  ;;  %v3025_v23 = vmul.f32 %v7613_v60, %v7613_v60  ;;  %v2935_v2 = vadd.f32 %v2934_v1, %v2933_v40  ;;  %v2940_v42 = vrot.slane %v2939_v28, 2 }
 0x613   : > { %v3053_v32 = vadd.f32 %v3052_v41, %v3026_v8  ;;  %v3058_v52 = vrot.slane %v3027_v55, 4  ;;  %v2923_v26 = vadd.f32 %v2922_v47, %v2921_v6  ;;  %v2928_v39 = vrot.slane %v2927_v31, 2 }
 0x614   : > { %v3041_v63 = vadd.f32 %v3040_v54, %v3024_v30  ;;  %v3046_v16 = vrot.slane %v3025_v23, 4  ;;  %v2936_v0 = vrot.slane %v2935_v2, 1  ;;  %v2941_v9 = vadd.f32 %v2940_v42, %v2939_v28 }
 0x615   : > { %v3054_v46 = vrot.slane %v3053_v32, 2  ;;  %v3059_v50 = vadd.f32 %v3058_v52, %v3027_v55  ;;  %v2924_v12 = vrot.slane %v2923_v26, 1  ;;  %v2929_v21 = vadd.f32 %v2928_v39, %v2927_v31  ;;  %v7621_v38 = vpop.f32.mrb[40].mxu0 }
 0x616   : > { %v3042_v45 = vrot.slane %v3041_v63, 2  ;;  %v3047_v14 = vadd.f32 %v3046_v16, %v3025_v23  ;;  %v2937_v22 = vadd.f32 %v2936_v0, %v2935_v2  ;;  %v2942_v57 = vrot.slane %v2941_v9, 1  ;;  %v7623_v61 = vpop.f32.mrb[41].mxu0 }
 0x617   : > { %v3055_v53 = vadd.f32 %v3054_v46, %v3053_v32  ;;  %v3060_v24 = vrot.slane %v3059_v50, 2  ;;  %v2925_v29 = vadd.f32 %v2924_v12, %v2923_v26  ;;  %v2930_v15 = vrot.slane %v2929_v21, 1  ;;  %v7625_v10 = vpop.f32.mrb[42].mxu0 }
 0x618   : > { %v3043_v62 = vadd.f32 %v3042_v45, %v3041_v63  ;;  %v3048_v33 = vrot.slane %v3047_v14, 2  ;;  %v2998_v4 = vmul.f32 0.125, %v2937_v22  ;;  %v2943_v43 = vadd.f32 %v2942_v57, %v2941_v9  ;;  %v7627_v13 = vpop.f32.mrb[43].mxu0 }
 0x619   : > { %v3056_v19 = vrot.slane %v3055_v53, 1  ;;  %v3061_v18 = vadd.f32 %v3060_v24, %v3059_v50  ;;  %v2996_v34 = vmul.f32 0.125, %v2925_v29  ;;  %v2931_v36 = vadd.f32 %v2930_v15, %v2929_v21 }
 0x61a   : > { %v3044_v27 = vrot.slane %v3043_v62, 1  ;;  %v3049_v3 = vadd.f32 %v3048_v33, %v3047_v14  ;;  %v7630_v7 = vsub.f32 %v7583_v51, %v2998_v4  ;;  %v2999_v40 = vmul.f32 0.125, %v2943_v43 }
 0x61b   : > { %v3057_v5 = vadd.f32 %v3056_v19, %v3055_v53  ;;  %v3062_v8 = vrot.slane %v3061_v18, 1  ;;  %v7633_v6 = vsub.f32 %v7586_v25, %v2996_v34  ;;  %v2997_v37 = vmul.f32 0.125, %v2931_v36 }
 0x61c   : > { %v3045_v30 = vadd.f32 %v3044_v27, %v3043_v62  ;;  %v3050_v1 = vrot.slane %v3049_v3, 1  ;;  %v3030_v28 = vmul.f32 %v7630_v7, %v7630_v7  ;;  %v7638_v41 = vsub.f32 %v7597_v58, %v2999_v40 }
 0x61d   : > { %v3138_v55 = vmul.f32 0.125, %v3057_v5  ;;  %v3063_v47 = vadd.f32 %v3062_v8, %v3061_v18  ;;  %v3028_v51 = vmul.f32 %v7633_v6, %v7633_v6  ;;  %v7643_v31 = vsub.f32 %v7603_v59, %v2997_v37 }
 0x61e   : > { %v3136_v54 = vmul.f32 0.125, %v3045_v30  ;;  %v3051_v25 = vadd.f32 %v3050_v1, %v3049_v3  ;;  %v3076_v23 = vrot.slane %v3030_v28, 4  ;;  %v3031_v2 = vmul.f32 %v7638_v41, %v7638_v41 }
 0x61f   : > { %v3154_v42 = vadd.f32 1e-05, %v3138_v55  ;;  %v3139_v32 = vmul.f32 0.125, %v3063_v47  ;;  %v3064_v52 = vrot.slane %v3028_v51, 4  ;;  %v3029_v58 = vmul.f32 %v7643_v31, %v7643_v31 }
 0x620   : > { %v3152_v26 = vadd.f32 1e-05, %v3136_v54  ;;  %v3137_v39 = vmul.f32 0.125, %v3051_v25  ;;  %v3077_v63 = vadd.f32 %v3076_v23, %v3030_v28  ;;  %v3082_v16 = vrot.slane %v3031_v2, 4 }
 0x621   : > { %6069 = vrsqrt.f32 %v3154_v42  ;;  %v3155_v0 = vadd.f32 1e-05, %v3139_v32  ;;  %v3065_v59 = vadd.f32 %v3064_v52, %v3028_v51  ;;  %v3070_v9 = vrot.slane %v3029_v58, 4 }
 0x622   : > { %6071 = vrsqrt.f32 %v3152_v26  ;;  %v3153_v46 = vadd.f32 1e-05, %v3137_v39  ;;  %v3078_v50 = vrot.slane %v3077_v63, 2  ;;  %v3083_v12 = vadd.f32 %v3082_v16, %v3031_v2 }
 0x623   : > { %6073 = vrsqrt.f32 %v3155_v0  ;;  %v3066_v21 = vrot.slane %v3065_v59, 2  ;;  %v3071_v45 = vadd.f32 %v3070_v9, %v3029_v58  ;;  %v2956_v14 = vrot.slane %v7621_v38, 4 }
 0x624   : > { %6075 = vrsqrt.f32 %v3153_v46  ;;  %v3079_v22 = vadd.f32 %v3078_v50, %v3077_v63  ;;  %v3084_v57 = vrot.slane %v3083_v12, 2  ;;  %v2944_v53 = vrot.slane %v7623_v61, 4 }
 0x625   : > { %v3067_v24 = vadd.f32 %v3066_v21, %v3065_v59  ;;  %v3072_v29 = vrot.slane %v3071_v45, 2  ;;  %v2957_v15 = vadd.f32 %v7621_v38, %v2956_v14  ;;  %v2962_v62 = vrot.slane %v7625_v10, 4 }
 0x626   : > { %v3080_v33 = vrot.slane %v3079_v22, 1  ;;  %v3085_v4 = vadd.f32 %v3084_v57, %v3083_v12  ;;  %v2945_v43 = vadd.f32 %v2944_v53, %v7623_v61  ;;  %v2950_v19 = vrot.slane %v7627_v13, 4 }
 0x627   : > { %v3068_v18 = vrot.slane %v3067_v24, 1  ;;  %v3073_v34 = vadd.f32 %v3072_v29, %v3071_v45  ;;  %v2958_v36 = vrot.slane %v2957_v15, 2  ;;  %v2963_v27 = vadd.f32 %v7625_v10, %v2962_v62 }
 0x628   : > { %v3081_v3 = vadd.f32 %v3080_v33, %v3079_v22  ;;  %v3086_v40 = vrot.slane %v3085_v4, 1  ;;  %v2946_v5 = vrot.slane %v2945_v43, 2  ;;  %v2951_v8 = vadd.f32 %v2950_v19, %v7627_v13 }
 0x629   : > { %v3069_v37 = vadd.f32 %v3068_v18, %v3067_v24  ;;  %v3074_v30 = vrot.slane %v3073_v34, 1  ;;  %v2959_v1 = vadd.f32 %v2958_v36, %v2957_v15  ;;  %v2964_v28 = vrot.slane %v2963_v27, 2 }
 0x62a   : > { %v3142_v55 = vmul.f32 0.125, %v3081_v3  ;;  %v3087_v47 = vadd.f32 %v3086_v40, %v3085_v4  ;;  %v2947_v51 = vadd.f32 %v2946_v5, %v2945_v43  ;;  %v2952_v54 = vrot.slane %v2951_v8, 2 }
 0x62b   : > { %v6070_v25 = vpop.eup %6069  ;;  %v3140_v23 = vmul.f32 0.125, %v3069_v37  ;;  %v3075_v2 = vadd.f32 %v3074_v30, %v3073_v34  ;;  %v2960_v42 = vrot.slane %v2959_v1, 1  ;;  %v2965_v32 = vadd.f32 %v2964_v28, %v2963_v27  ;;  %v7657_v52 = vpop.f32.mrb[44].mxu0 }
 0x62c   : > { %v6072_v58 = vpop.eup %6071  ;;  %v3186_v26 = vmul.f32 %v7550_v56, %v6070_v25  ;;  %v3158_v39 = vadd.f32 1e-05, %v3142_v55  ;;  %v3143_v63 = vmul.f32 0.125, %v3087_v47  ;;  %v2948_v16 = vrot.slane %v2947_v51, 1  ;;  %v7660_v0 = vpop.f32.mrb[45].mxu0 }
 0x62d   : > { %v6074_v59 = vpop.eup %6073  ;;  %v3184_v9 = vmul.f32 %v7550_v56, %v6072_v58  ;;  %v3156_v46 = vadd.f32 1e-05, %v3140_v23  ;;  %v3141_v50 = vmul.f32 0.125, %v3075_v2  ;;  %v2961_v12 = vadd.f32 %v2960_v42, %v2959_v1  ;;  %v7663_v21 = vpop.f32.mrb[46].mxu0 }
 0x62e   : > { %v6076_v45 = vpop.eup %6075  ;;  %v3211_v14 = vrot.slane %v3186_v26, %v7581_v44  ;;  %v3187_v22 = vmul.f32 %v7550_v56, %v6074_v59  ;;  %6077 = vrsqrt.f32 %v3158_v39  ;;  %v3159_v57 = vadd.f32 1e-05, %v3143_v63  ;;  %v7667_v53 = vpop.f32.mrb[47].mxu0 }
 0x62f   : > { %v3203_v24 = vrot.slane %v3184_v9, %v7581_v44  ;;  %v3185_v29 = vmul.f32 %v7550_v56, %v6076_v45  ;;  %6079 = vrsqrt.f32 %v3156_v46  ;;  %v3157_v15 = vadd.f32 1e-05, %v3141_v50 }
 0x630   : > { %v3266_v62 = vmul.f32 %v3211_v14, %v7588_v20  ;;  %v3215_v33 = vrot.slane %v3187_v22, %v7581_v44  ;;  %6081 = vrsqrt.f32 %v3159_v57  ;;  %v3002_v4 = vmul.f32 0.125, %v2961_v12 }
 0x631   : > { %v3264_v43 = vmul.f32 %v3203_v24, %v7599_v17  ;;  %v3207_v19 = vrot.slane %v3185_v29, %v7581_v44  ;;  %6083 = vrsqrt.f32 %v3157_v15  ;;  %v2949_v18 = vadd.f32 %v2948_v16, %v2947_v51 }
 0x632   : > { %v3286_v34 = vadd.f32 %v7594_v11, %v3266_v62  ;;  %v3267_v36 = vmul.f32 %v3215_v33, %v7607_v48  ;;  %v7678_v27 = vsub.f32 %v7621_v38, %v3002_v4  ;;  %v2966_v3 = vrot.slane %v2965_v32, 1 }
 0x633   : > { %v7681_v20 = vadd.f32 %v7594_v11, %v3264_v43  ;;  %v3265_v40 = vmul.f32 %v3207_v19, %v7613_v60  ;;  %v3000_v5 = vmul.f32 0.125, %v2949_v18  ;;  %v2953_v37 = vadd.f32 %v2952_v54, %v2951_v8 }
 0x634   : > { %vm3302_vm0 = vcmp.ge.f32.partialorder %v3286_v34, 0.0  ;;  %v3318_v17 = vmul.f32 0.01, %v3286_v34  ;;  %v3287_v30 = vadd.f32 %v7594_v11, %v3267_v36  ;;  %v3034_v1 = vmul.f32 %v7678_v27, %v7678_v27 }
 0x635   : > { %v7688_v48 = vadd.f32 %v7594_v11, %v3265_v40  ;;  %v7691_v38 = vsub.f32 %v7623_v61, %v3000_v5  ;;  %v2967_v28 = vadd.f32 %v2966_v3, %v2965_v32  ;;  %v2954_v55 = vrot.slane %v2953_v37, 1 }
 0x636   : > { %v7693_v47 = vsel %vm3302_vm0, %v3286_v34, %v3318_v17  ;;  %vm3303_vm1 = vcmp.ge.f32.partialorder %v3287_v30, 0.0  ;;  %v3319_v60 = vmul.f32 0.01, %v3287_v30  ;;  %v3100_v8 = vrot.slane %v3034_v1, 4 }
 0x637   : > { %v3032_v51 = vmul.f32 %v7691_v38, %v7691_v38  ;;  %v3003_v54 = vmul.f32 0.125, %v2967_v28  ;;  %v2955_v25 = vadd.f32 %v2954_v55, %v2953_v37  ;;  %v2980_v23 = vrot.slane %v7657_v52, 4 }
 0x638   : > { %v6078_v2 = vpop.eup %6077  ;;  %v7698_v42 = vsel %vm3303_vm1, %v3287_v30, %v3319_v60  ;;  %v3101_v58 = vadd.f32 %v3100_v8, %v3034_v1  ;;  %v2968_v61 = vrot.slane %v7660_v0, 4  ;;  %v2986_v32 = vrot.slane %v7663_v21, 4 }
 0x639   : > { %v6080_v26 = vpop.eup %6079  ;;  %v3190_v39 = vmul.f32 %v7550_v56, %v6078_v2  ;;  %v3088_v63 = vrot.slane %v3032_v51, 4  ;;  %v7704_v16 = vsub.f32 %v7625_v10, %v3003_v54  ;;  %v3001_v59 = vmul.f32 0.125, %v2955_v25 }
 0x63a   : > { %v6082_v9 = vpop.eup %6081  ;;  %v3188_v46 = vmul.f32 %v7550_v56, %v6080_v26  ;;  %v3102_v50 = vrot.slane %v3101_v58, 2  ;;  %v2981_v12 = vadd.f32 %v7657_v52, %v2980_v23  ;;  %v2969_v45 = vadd.f32 %v2968_v61, %v7660_v0 }
 0x63b   : > { %v6084_v14 = vpop.eup %6083  ;;  %v3227_v22 = vrot.slane %v3190_v39, %v7581_v44  ;;  %v3191_v57 = vmul.f32 %v7550_v56, %v6082_v9  ;;  %v3089_v24 = vadd.f32 %v3088_v63, %v3032_v51  ;;  %v3035_v29 = vmul.f32 %v7704_v16, %v7704_v16 }
 0x63c   : > { %v3219_v10 = vrot.slane %v3188_v46, %v7581_v44  ;;  %v3189_v15 = vmul.f32 %v7550_v56, %v6084_v14  ;;  %v3103_v62 = vadd.f32 %v3102_v50, %v3101_v58  ;;  %v7716_v33 = vsub.f32 %v7627_v13, %v3001_v59 }
 0x63d   : > { %v3270_v4 = vmul.f32 %v3227_v22, %v7630_v7  ;;  %v3231_v43 = vrot.slane %v3191_v57, %v7581_v44  ;;  %v3090_v19 = vrot.slane %v3089_v24, 2  ;;  %v3106_v18 = vrot.slane %v3035_v29, 4 }
 0x63e   : > { %v3268_v34 = vmul.f32 %v3219_v10, %v7633_v6  ;;  %v3223_v36 = vrot.slane %v3189_v15, %v7581_v44  ;;  %v3104_v3 = vrot.slane %v3103_v62, 1  ;;  %v3033_v40 = vmul.f32 %v7716_v33, %v7716_v33 }
 0x63f   : > { %v7725_v5 = vadd.f32 %v7594_v11, %v3270_v4  ;;  %v3271_v13 = vmul.f32 %v3231_v43, %v7638_v41  ;;  %v3091_v37 = vadd.f32 %v3090_v19, %v3089_v24  ;;  %v3107_v17 = vadd.f32 %v3106_v18, %v3035_v29 }
 0x640   : > { %v7729_v7 = vadd.f32 %v7594_v11, %v3268_v34  ;;  %v3269_v30 = vmul.f32 %v3223_v36, %v7643_v31  ;;  %v3105_v1 = vadd.f32 %v3104_v3, %v3103_v62  ;;  %v3094_v6 = vrot.slane %v3033_v40, 4 }
 0x641   : > { %v7733_v28 = vadd.f32 %v7594_v11, %v3271_v13  ;;  %v3092_v55 = vrot.slane %v3091_v37, 1  ;;  %v3108_v60 = vrot.slane %v3107_v17, 2  ;;  %v2982_v8 = vrot.slane %v2981_v12, 2 }
 0x642   : > { %v7736_v51 = vadd.f32 %v7594_v11, %v3269_v30  ;;  %v3146_v54 = vmul.f32 0.125, %v3105_v1  ;;  %v3095_v41 = vadd.f32 %v3094_v6, %v3033_v40  ;;  %v2970_v25 = vrot.slane %v2969_v45, 2 }
 0x643   : > { %v3093_v23 = vadd.f32 %v3092_v55, %v3091_v37  ;;  %v3109_v2 = vadd.f32 %v3108_v60, %v3107_v17  ;;  %v2983_v58 = vadd.f32 %v2982_v8, %v2981_v12  ;;  %v2987_v61 = vadd.f32 %v7663_v21, %v2986_v32 }
 0x644   : > { %v3162_v31 = vadd.f32 1e-05, %v3146_v54  ;;  %v3096_v26 = vrot.slane %v3095_v41, 2  ;;  %v2971_v39 = vadd.f32 %v2970_v25, %v2969_v45  ;;  %v2974_v63 = vrot.slane %v7667_v53, 4 }
 0x645   : > { %v3144_v59 = vmul.f32 0.125, %v3093_v23  ;;  %v3110_v9 = vrot.slane %v3109_v2, 1  ;;  %v2984_v46 = vrot.slane %v2983_v58, 1  ;;  %v2988_v50 = vrot.slane %v2987_v61, 2 }
 0x646   : > { %6085 = vrsqrt.f32 %v3162_v31  ;;  %v3097_v14 = vadd.f32 %v3096_v26, %v3095_v41  ;;  %v2972_v22 = vrot.slane %v2971_v39, 1  ;;  %v2975_v57 = vadd.f32 %v2974_v63, %v7667_v53 }
 0x647   : > { %v3160_v24 = vadd.f32 1e-05, %v3144_v59  ;;  %v3111_v29 = vadd.f32 %v3110_v9, %v3109_v2  ;;  %v2985_v10 = vadd.f32 %v2984_v46, %v2983_v58  ;;  %v2989_v12 = vadd.f32 %v2988_v50, %v2987_v61 }
 0x648   : > { %v3098_v15 = vrot.slane %v3097_v14, 1  ;;  %v2973_v32 = vadd.f32 %v2972_v22, %v2971_v39  ;;  %v2976_v62 = vrot.slane %v2975_v57, 2  ;;  %vm3300_vm2 = vcmp.ge.f32.partialorder %v7681_v20, 0.0 }
 0x649   : > { %6087 = vrsqrt.f32 %v3160_v24  ;;  %v3147_v45 = vmul.f32 0.125, %v3111_v29  ;;  %v3006_v4 = vmul.f32 0.125, %v2985_v10  ;;  %v2990_v43 = vrot.slane %v2989_v12, 1 }
 0x64a   : > { %v3099_v19 = vadd.f32 %v3098_v15, %v3097_v14  ;;  %v3004_v18 = vmul.f32 0.125, %v2973_v32  ;;  %v2977_v34 = vadd.f32 %v2976_v62, %v2975_v57  ;;  %vm3301_vm3 = vcmp.ge.f32.partialorder %v7688_v48, 0.0 }
 0x64b   : > { %v3163_v36 = vadd.f32 1e-05, %v3147_v45  ;;  %v7744_v3 = vsub.f32 %v7657_v52, %v3006_v4  ;;  %v2991_v40 = vadd.f32 %v2990_v43, %v2989_v12  ;;  %v3316_v13 = vmul.f32 0.01, %v7681_v20 }
 0x64c   : > { %v3145_v37 = vmul.f32 0.125, %v3099_v19  ;;  %v7748_v17 = vsub.f32 %v7660_v0, %v3004_v18  ;;  %v2978_v30 = vrot.slane %v2977_v34, 1  ;;  %v3317_v1 = vmul.f32 0.01, %v7688_v48 }
 0x64d   : > { %6089 = vrsqrt.f32 %v3163_v36  ;;  %v3038_v6 = vmul.f32 %v7744_v3, %v7744_v3  ;;  %v3007_v55 = vmul.f32 0.125, %v2991_v40  ;;  %v3332_v52 = vsel %vm3300_vm2, %v7681_v20, %v3316_v13 }
 0x64e   : > { %v3161_v60 = vadd.f32 1e-05, %v3145_v37  ;;  %v3036_v8 = vmul.f32 %v7748_v17, %v7748_v17  ;;  %v2979_v54 = vadd.f32 %v2978_v30, %v2977_v34  ;;  %v3333_v0 = vsel %vm3301_vm3, %v7688_v48, %v3317_v1 }
 0x64f   : > { %v3124_v41 = vrot.slane %v3038_v6, 4  ;;  %v7762_v25 = vsub.f32 %v7663_v21, %v3007_v55  ;;  %v3348_v23 = vpack.c.bf16 %v3333_v0, %v3332_v52  ;;  %v3349_v2 = vpack.c.bf16 %v7698_v42, %v7693_v47 }
 0x650   : > { %v6086_v58 = vpop.eup %6085  ;;  %6091 = vrsqrt.f32 %v3161_v60  ;;  %v3112_v20 = vrot.slane %v3036_v8, 4  ;;  %v3005_v61 = vmul.f32 0.125, %v2979_v54  ;;  %vm3304_vm4 = vcmp.ge.f32.partialorder %v7729_v7, 0.0 }
 0x651   : > { %v3194_v31 = vmul.f32 %v7550_v56, %v6086_v58  ;;  %v3125_v26 = vadd.f32 %v3124_v41, %v3038_v6  ;;  %v3039_v48 = vmul.f32 %v7762_v25, %v7762_v25  ;;  %5724 = vmatprep.mubr.bf16.mxu1 %v3348_v23  ;;  %vm3305_vm5 = vcmp.ge.f32.partialorder %v7736_v51, 0.0 }
 0x652   : > { %v3113_v21 = vadd.f32 %v3112_v20, %v3036_v8  ;;  %v7772_v39 = vsub.f32 %v7667_v53, %v3005_v61  ;;  %5725 = vmatmul.mubr.bf16.vlgmr.msra.gmra.mrb[32].mxu1 %v3349_v2  ;;  %v3320_v47 = vmul.f32 0.01, %v7729_v7  ;;  %v3321_v42 = vmul.f32 0.01, %v7736_v51 }
 0x653   : > { %v6088_v63 = vpop.eup %6087  ;;  %v3243_v59 = vrot.slane %v3194_v31, %v7581_v44  ;;  %v3126_v9 = vrot.slane %v3125_v26, 2  ;;  %v3130_v46 = vrot.slane %v3039_v48, 4  ;;  %vm3306_vm6 = vcmp.ge.f32.partialorder %v7725_v5, 0.0 }
 0x654   : > { %v3192_v50 = vmul.f32 %v7550_v56, %v6088_v63  ;;  %v3114_v14 = vrot.slane %v3113_v21, 2  ;;  %v3037_v22 = vmul.f32 %v7772_v39, %v7772_v39  ;;  %v3336_v53 = vsel %vm3304_vm4, %v7729_v7, %v3320_v47 }
 0x655   : > { %v3274_v57 = vmul.f32 %v3243_v59, %v7678_v27  ;;  %v3127_v24 = vadd.f32 %v3126_v9, %v3125_v26  ;;  %v3131_v29 = vadd.f32 %v3130_v46, %v3039_v48  ;;  %v3337_v10 = vsel %vm3305_vm5, %v7736_v51, %v3321_v42 }
 0x656   : > { %v3235_v12 = vrot.slane %v3192_v50, %v7581_v44  ;;  %v3115_v15 = vadd.f32 %v3114_v14, %v3113_v21  ;;  %v3118_v32 = vrot.slane %v3037_v22, 4  ;;  %v3350_v62 = vpack.c.bf16 %v3337_v10, %v3336_v53  ;;  %v7809_v10 = vld [vmem:[#allocation7] sm:$0xff] }
 0x657   : > { %v6090_v45 = vpop.eup %6089  ;;  %v3294_v4 = vadd.f32 %v7594_v11, %v3274_v57  ;;  %v3128_v43 = vrot.slane %v3127_v24, 1  ;;  %v3132_v19 = vrot.slane %v3131_v29, 2  ;;  %vm3307_vm7 = vcmp.ge.f32.partialorder %v7733_v28, 0.0 }
 0x658   : > { %v3272_v27 = vmul.f32 %v3235_v12, %v7691_v38  ;;  %v3195_v7 = vmul.f32 %v7550_v56, %v6090_v45  ;;  %v3116_v18 = vrot.slane %v3115_v15, 1  ;;  %v3119_v34 = vadd.f32 %v3118_v32, %v3037_v22  ;;  %5728 = vmatprep.mubr.bf16.mxu1 %v3350_v62 }
 0x659   : > { %v3129_v51 = vadd.f32 %v3128_v43, %v3127_v24  ;;  %v3133_v36 = vadd.f32 %v3132_v19, %v3131_v29  ;;  %v3322_v40 = vmul.f32 0.01, %v7725_v5  ;;  %v3323_v13 = vmul.f32 0.01, %v7733_v28 }
 0x65a   : > { %v6092_v37 = vpop.eup %6091  ;;  %v3292_v30 = vadd.f32 %v7594_v11, %v3272_v27  ;;  %v3247_v1 = vrot.slane %v3195_v7, %v7581_v44  ;;  %v3117_v6 = vadd.f32 %v3116_v18, %v3115_v15  ;;  %v3120_v55 = vrot.slane %v3119_v34, 2 }
 0x65b   : > { %v3193_v38 = vmul.f32 %v7550_v56, %v6092_v37  ;;  %v3150_v52 = vmul.f32 0.125, %v3129_v51  ;;  %v3134_v60 = vrot.slane %v3133_v36, 1  ;;  %v3338_v8 = vsel %vm3306_vm6, %v7725_v5, %v3322_v40 }
 0x65c   : > { %v3275_v54 = vmul.f32 %v3247_v1, %v7704_v16  ;;  %v3148_v0 = vmul.f32 0.125, %v3117_v6  ;;  %v3121_v41 = vadd.f32 %v3120_v55, %v3119_v34  ;;  %v3339_v23 = vsel %vm3307_vm7, %v7733_v28, %v3323_v13 }
 0x65d   : > { %v3239_v2 = vrot.slane %v3193_v38, %v7581_v44  ;;  %v3166_v58 = vadd.f32 1e-05, %v3150_v52  ;;  %v3135_v20 = vadd.f32 %v3134_v60, %v3133_v36  ;;  %v3351_v61 = vpack.c.bf16 %v3339_v23, %v3338_v8  ;;  %v5925_v8 = vld [vmem:[#allocation5 + $0x180] sm:$0xff]   ;;  %v5931_v23 = vld [vmem:[#allocation5 + $0x1b0] sm:$0xff]  }
 0x65e   : > { %v3295_v56 = vadd.f32 %v7594_v11, %v3275_v54  ;;  %v3164_v31 = vadd.f32 1e-05, %v3148_v0  ;;  %v3122_v26 = vrot.slane %v3121_v41, 1  ;;  %v3324_v21 = vmul.f32 0.01, %v3292_v30  ;;  %5740 = vmatprep.subr.bf16.mxu0 %v5925_v8  ;;  %v5927_v54 = vld [vmem:[#allocation5 + $0x190] sm:$0xff]  }
 0x65f   : > { %v3273_v48 = vmul.f32 %v3239_v2, %v7716_v33  ;;  %6093 = vrsqrt.f32 %v3166_v58  ;;  %v3151_v5 = vmul.f32 0.125, %v3135_v20  ;;  %5729 = vmatmul.mubr.bf16.gmra.mrb[36].mxu1 %v3351_v61  ;;  %vm3310_vm8 = vcmp.ge.f32.partialorder %v3294_v4, 0.0  ;;  %5741 = vmatpush3.bf16.msra.mxu0 %v5925_v8  ;;  %v5929_v0 = vld [vmem:[#allocation5 + $0x1a0] sm:$0xff]   ;;  %v5932_v2 = vld [vmem:[#allocation5 + $0x1b8] sm:$0xff]  }
 0x660   : > { %6095 = vrsqrt.f32 %v3164_v31  ;;  %v3123_v16 = vadd.f32 %v3122_v26, %v3121_v41  ;;  %vm3311_vm9 = vcmp.ge.f32.partialorder %v3295_v56, 0.0  ;;  %v3326_v42 = vmul.f32 0.01, %v3294_v4  ;;  %v5930_v41 = vld [vmem:[#allocation5 + $0x1a8] sm:$0xff]  }
 0x661   : > { %v3293_v28 = vadd.f32 %v7594_v11, %v3273_v48  ;;  %v3167_v47 = vadd.f32 1e-05, %v3151_v5  ;;  %vm3308_vm10 = vcmp.ge.f32.partialorder %v3292_v30, 0.0  ;;  %v3327_v59 = vmul.f32 0.01, %v3295_v56 }
 0x662   : > { %v3149_v63 = vmul.f32 0.125, %v3123_v16  ;;  %v3342_v33 = vsel %vm3310_vm8, %v3294_v4, %v3326_v42  ;;  %v3340_v14 = vsel %vm3308_vm10, %v3292_v30, %v3324_v21 }
 0x663   : > { %6097 = vrsqrt.f32 %v3167_v47  ;;  %vm3309_vm11 = vcmp.ge.f32.partialorder %v3293_v28, 0.0  ;;  %v3325_v9 = vmul.f32 0.01, %v3293_v28  ;;  %v3343_v50 = vsel %vm3311_vm9, %v3295_v56, %v3327_v59 }
 0x664   : > { %v3165_v46 = vadd.f32 1e-05, %v3149_v63  ;;  %v3353_v53 = vpack.c.bf16 %v3343_v50, %v3342_v33 }
 0x665   : > { %v3341_v22 = vsel %vm3309_vm11, %v3293_v28, %v3325_v9 }
 0x666   : > { %6099 = vrsqrt.f32 %v3165_v46  ;;  %v3352_v57 = vpack.c.bf16 %v3341_v22, %v3340_v14 }
 0x668   : > { %5732 = vmatprep.mubr.bf16.mxu1 %v3352_v57 }
 0x669   : > { %v6094_v24 = vpop.eup %6093  ;;  %5733 = vmatmul.mubr.bf16.gmra.mrb[40].mxu1 %v3353_v53 }
 0x66a   : > { %v6096_v29 = vpop.eup %6095  ;;  %v3198_v12 = vmul.f32 %v7809_v10, %v6094_v24 }
 0x66b   : > { %v3196_v15 = vmul.f32 %v7809_v10, %v6096_v29 }
 0x66c   : > { %v3259_v32 = vrot.slane %v3198_v12, %v7581_v44 }
 0x66d   : > { %v6098_v62 = vpop.eup %6097  ;;  %v3251_v45 = vrot.slane %v3196_v15, %v7581_v44 }
 0x66e   : > { %v3278_v4 = vmul.f32 %v3259_v32, %v7744_v3  ;;  %v3199_v43 = vmul.f32 %v7809_v10, %v6098_v62  ;;  %v7828_v32 = vsub.s32 5, %v6596_v49 }
 0x66f   : > { %v3276_v19 = vmul.f32 %v3251_v45, %v7748_v17 }
 0x670   : > { %v6100_v27 = vpop.eup %6099  ;;  %v3298_v7 = vadd.f32 %v7594_v11, %v3278_v4  ;;  %v3263_v18 = vrot.slane %v3199_v43, %v7581_v44 }
 0x671   : > { %v3197_v34 = vmul.f32 %v7809_v10, %v6100_v27  ;;  %v3296_v36 = vadd.f32 %v7594_v11, %v3276_v19 }
 0x672   : > { %v3279_v51 = vmul.f32 %v3263_v18, %v7762_v25  ;;  %v3330_v3 = vmul.f32 0.01, %v3298_v7  ;;  %vm3314_vm12 = vcmp.ge.f32.partialorder %v3298_v7, 0.0  ;;  %v7839_v18 = vrot.slane %v7590_v35, %v7828_v32 }
 0x673   : > { %v3255_v40 = vrot.slane %v3197_v34, %v7581_v44  ;;  %v3328_v1 = vmul.f32 0.01, %v3296_v36  ;;  %vm3312_vm14 = vcmp.ge.f32.partialorder %v3296_v36, 0.0 }
 0x674   : > { %v3299_v13 = vadd.f32 %v7594_v11, %v3279_v51  ;;  %v3346_v6 = vsel %vm3314_vm12, %v3298_v7, %v3330_v3 }
 0x675   : > { %v3277_v37 = vmul.f32 %v3255_v40, %v7772_v39  ;;  %v3344_v52 = vsel %vm3312_vm14, %v3296_v36, %v3328_v1  ;;  %v5926_v39 = vld [vmem:[#allocation5 + $0x188] sm:$0xff]  }
 0x676   : > { %vm3315_vm13 = vcmp.ge.f32.partialorder %v3299_v13, 0.0  ;;  %v3331_v17 = vmul.f32 0.01, %v3299_v13  ;;  %5742 = vmatprep.subr.bf16.mxu0 %v5926_v39 }
 0x677   : > { %v3297_v30 = vadd.f32 %v7594_v11, %v3277_v37  ;;  %5743 = vmatpush3.bf16.msra.mxu0 %v5926_v39  ;;  %v5928_v11 = vld [vmem:[#allocation5 + $0x198] sm:$0xff]  }
 0x678   : > { %v3347_v55 = vsel %vm3315_vm13, %v3299_v13, %v3331_v17  ;;  %5744 = vmatprep.subr.bf16.mxu0 %v5927_v54 }
 0x679   : > { %vm3313_vm15 = vcmp.ge.f32.partialorder %v3297_v30, 0.0  ;;  %v3329_v25 = vmul.f32 0.01, %v3297_v30  ;;  %v3355_v38 = vpack.c.bf16 %v3347_v55, %v3346_v6 }
 0x67b   : > { %v3345_v60 = vsel %vm3313_vm15, %v3297_v30, %v3329_v25  ;;  %5745 = vmatpush3.bf16.msra.mxu0 %v5927_v54 }
 0x67c   : > { %v3354_v44 = vpack.c.bf16 %v3345_v60, %v3344_v52  ;;  %5746 = vmatprep.subr.bf16.mxu0 %v5928_v11 }
 0x67e   : > { %5736 = vmatprep.mubr.bf16.mxu1 %v3354_v44 }
 0x67f   : > { %5737 = vmatmul.mubr.bf16.gmra.mrb[44].mxu1 %v3355_v38  ;;  %5747 = vmatpush3.bf16.msra.mxu0 %v5928_v11 }
 0x680   : > { %5748 = vmatprep.subr.bf16.mxu0 %v5929_v0 }
 0x683   : > { %5749 = vmatpush3.bf16.msra.mxu0 %v5929_v0 }
 0x684   : > { %5750 = vmatprep.subr.bf16.mxu0 %v5930_v41 }
 0x687   : > { %5751 = vmatpush3.bf16.msra.mxu0 %v5930_v41 }
 0x688   : > { %5752 = vmatprep.subr.bf16.mxu0 %v5931_v23 }
 0x68b   : > { %5753 = vmatpush3.bf16.msra.mxu0 %v5931_v23 }
 0x68c   : > { %5754 = vmatprep.subr.bf16.mxu0 %v5932_v2 }
 0x68f   : > { %5755 = vmatpush3.bf16.msra.mxu0 %v5932_v2 }
 0x725   : > { %v5726_v58 = vpop.f32.mrb[32].mxu1 }
 0x726   : > { %v3530_v20 = vrot.slane %v5726_v58, 4  ;;  %v3455_v61 = vpop.f32.mrb[33].mxu1 }
 0x727   : > { %v3518_v56 = vrot.slane %v3455_v61, 4  ;;  %v5727_v31 = vpop.f32.mrb[34].mxu1 }
 0x728   : > { %v3531_v26 = vadd.f32 %v5726_v58, %v3530_v20  ;;  %v3536_v48 = vrot.slane %v5727_v31, 4  ;;  %v3458_v5 = vpop.f32.mrb[35].mxu1 }
 0x729   : > { %v3519_v16 = vadd.f32 %v3518_v56, %v3455_v61  ;;  %v3524_v21 = vrot.slane %v3458_v5, 4 }
 0x72a   : > { %v3532_v28 = vrot.slane %v3531_v26, 2  ;;  %v3537_v47 = vadd.f32 %v5727_v31, %v3536_v48 }
 0x72b   : > { %v3520_v42 = vrot.slane %v3519_v16, 2  ;;  %v3525_v63 = vadd.f32 %v3524_v21, %v3458_v5 }
 0x72c   : > { %v3533_v59 = vadd.f32 %v3532_v28, %v3531_v26  ;;  %v3538_v9 = vrot.slane %v3537_v47, 2 }
 0x72d   : > { %v3521_v46 = vadd.f32 %v3520_v42, %v3519_v16  ;;  %v3526_v33 = vrot.slane %v3525_v63, 2 }
 0x72e   : > { %v3534_v50 = vrot.slane %v3533_v59, 1  ;;  %v3539_v14 = vadd.f32 %v3538_v9, %v3537_v47 }
 0x72f   : > { %v3522_v22 = vrot.slane %v3521_v46, 1  ;;  %v3527_v53 = vadd.f32 %v3526_v33, %v3525_v63 }
 0x730   : > { %v3535_v57 = vadd.f32 %v3534_v50, %v3533_v59  ;;  %v3540_v24 = vrot.slane %v3539_v14, 1 }
 0x731   : > { %v3523_v29 = vadd.f32 %v3522_v22, %v3521_v46  ;;  %v3528_v12 = vrot.slane %v3527_v53, 1 }
 0x732   : > { %v3616_v15 = vmul.f32 0.125, %v3535_v57  ;;  %v3541_v62 = vadd.f32 %v3540_v24, %v3539_v14  ;;  %v7830_v45 = vpop.f32.mrb[36].mxu1 }
 0x733   : > { %v3614_v4 = vmul.f32 0.125, %v3523_v29  ;;  %v3529_v43 = vadd.f32 %v3528_v12, %v3527_v53  ;;  %v3554_v19 = vrot.slane %v7830_v45, 4  ;;  %v7833_v27 = vpop.f32.mrb[37].mxu1 }
 0x734   : > { %v7835_v7 = vsub.f32 %v5726_v58, %v3616_v15  ;;  %v3617_v34 = vmul.f32 0.125, %v3541_v62  ;;  %v3542_v51 = vrot.slane %v7833_v27, 4  ;;  %v7842_v36 = vpop.f32.mrb[38].mxu1 }
 0x735   : > { %v7844_v40 = vsub.f32 %v3455_v61, %v3614_v4  ;;  %v3615_v13 = vmul.f32 0.125, %v3529_v43  ;;  %v3555_v3 = vadd.f32 %v7830_v45, %v3554_v19  ;;  %v3560_v37 = vrot.slane %v7842_v36, 4  ;;  %v7848_v17 = vpop.f32.mrb[39].mxu1 }
 0x736   : > { %v3648_v30 = vmul.f32 %v7835_v7, %v7835_v7  ;;  %v7852_v1 = vsub.f32 %v5727_v31, %v3617_v34  ;;  %v3543_v35 = vadd.f32 %v3542_v51, %v7833_v27  ;;  %v3548_v6 = vrot.slane %v7848_v17, 4 }
 0x737   : > { %v3646_v55 = vmul.f32 %v7844_v40, %v7844_v40  ;;  %v7858_v25 = vsub.f32 %v3458_v5, %v3615_v13  ;;  %v3556_v38 = vrot.slane %v3555_v3, 2  ;;  %v3561_v52 = vadd.f32 %v7842_v36, %v3560_v37 }
 0x738   : > { %v3674_v60 = vrot.slane %v3648_v30, 4  ;;  %v3649_v44 = vmul.f32 %v7852_v1, %v7852_v1  ;;  %v3544_v8 = vrot.slane %v3543_v35, 2  ;;  %v3549_v39 = vadd.f32 %v3548_v6, %v7848_v17 }
 0x739   : > { %v3662_v54 = vrot.slane %v3646_v55, 4  ;;  %v3647_v11 = vmul.f32 %v7858_v25, %v7858_v25  ;;  %v3557_v0 = vadd.f32 %v3556_v38, %v3555_v3  ;;  %v3562_v41 = vrot.slane %v3561_v52, 2 }
 0x73a   : > { %v3675_v23 = vadd.f32 %v3674_v60, %v3648_v30  ;;  %v3680_v2 = vrot.slane %v3649_v44, 4  ;;  %v3545_v58 = vadd.f32 %v3544_v8, %v3543_v35  ;;  %v3550_v20 = vrot.slane %v3549_v39, 2 }
 0x73b   : > { %v3663_v61 = vadd.f32 %v3662_v54, %v3646_v55  ;;  %v3668_v56 = vrot.slane %v3647_v11, 4  ;;  %v3558_v31 = vrot.slane %v3557_v0, 1  ;;  %v3563_v26 = vadd.f32 %v3562_v41, %v3561_v52 }
 0x73c   : > { %v3676_v48 = vrot.slane %v3675_v23, 2  ;;  %v3681_v5 = vadd.f32 %v3680_v2, %v3649_v44  ;;  %v3546_v16 = vrot.slane %v3545_v58, 1  ;;  %v3551_v21 = vadd.f32 %v3550_v20, %v3549_v39  ;;  %v7866_v28 = vpop.f32.mrb[40].mxu1 }
 0x73d   : > { %v3664_v47 = vrot.slane %v3663_v61, 2  ;;  %v3669_v42 = vadd.f32 %v3668_v56, %v3647_v11  ;;  %v3559_v63 = vadd.f32 %v3558_v31, %v3557_v0  ;;  %v3564_v59 = vrot.slane %v3563_v26, 1  ;;  %v7868_v9 = vpop.f32.mrb[41].mxu1 }
 0x73e   : > { %v3677_v46 = vadd.f32 %v3676_v48, %v3675_v23  ;;  %v3682_v33 = vrot.slane %v3681_v5, 2  ;;  %v3547_v50 = vadd.f32 %v3546_v16, %v3545_v58  ;;  %v3552_v14 = vrot.slane %v3551_v21, 1  ;;  %v7870_v22 = vpop.f32.mrb[42].mxu1 }
 0x73f   : > { %v3665_v53 = vadd.f32 %v3664_v47, %v3663_v61  ;;  %v3670_v57 = vrot.slane %v3669_v42, 2  ;;  %v3620_v24 = vmul.f32 0.125, %v3559_v63  ;;  %v3565_v29 = vadd.f32 %v3564_v59, %v3563_v26  ;;  %v7872_v12 = vpop.f32.mrb[43].mxu1 }
 0x740   : > { %v3678_v15 = vrot.slane %v3677_v46, 1  ;;  %v3683_v62 = vadd.f32 %v3682_v33, %v3681_v5  ;;  %v3618_v4 = vmul.f32 0.125, %v3547_v50  ;;  %v3553_v43 = vadd.f32 %v3552_v14, %v3551_v21 }
 0x741   : > { %v3666_v19 = vrot.slane %v3665_v53, 1  ;;  %v3671_v34 = vadd.f32 %v3670_v57, %v3669_v42  ;;  %v7875_v51 = vsub.f32 %v7830_v45, %v3620_v24  ;;  %v3621_v13 = vmul.f32 0.125, %v3565_v29 }
 0x742   : > { %v3679_v3 = vadd.f32 %v3678_v15, %v3677_v46  ;;  %v3684_v37 = vrot.slane %v3683_v62, 1  ;;  %v7878_v30 = vsub.f32 %v7833_v27, %v3618_v4  ;;  %v3619_v35 = vmul.f32 0.125, %v3553_v43 }
 0x743   : > { %v3667_v6 = vadd.f32 %v3666_v19, %v3665_v53  ;;  %v3672_v55 = vrot.slane %v3671_v34, 1  ;;  %v3652_v38 = vmul.f32 %v7875_v51, %v7875_v51  ;;  %v7883_v52 = vsub.f32 %v7842_v36, %v3621_v13 }
 0x744   : > { %v3760_v60 = vmul.f32 0.125, %v3679_v3  ;;  %v3685_v44 = vadd.f32 %v3684_v37, %v3683_v62  ;;  %v3650_v45 = vmul.f32 %v7878_v30, %v7878_v30  ;;  %v7888_v8 = vsub.f32 %v7848_v17, %v3619_v35 }
 0x745   : > { %v3758_v39 = vmul.f32 0.125, %v3667_v6  ;;  %v3673_v27 = vadd.f32 %v3672_v55, %v3671_v34  ;;  %v3698_v54 = vrot.slane %v3652_v38, 4  ;;  %v3653_v11 = vmul.f32 %v7883_v52, %v7883_v52 }
 0x746   : > { %v3776_v0 = vadd.f32 1e-05, %v3760_v60  ;;  %v3761_v41 = vmul.f32 0.125, %v3685_v44  ;;  %v3686_v23 = vrot.slane %v3650_v45, 4  ;;  %v3651_v36 = vmul.f32 %v7888_v8, %v7888_v8 }
 0x747   : > { %v3774_v2 = vadd.f32 1e-05, %v3758_v39  ;;  %v3759_v58 = vmul.f32 0.125, %v3673_v27  ;;  %v3699_v20 = vadd.f32 %v3698_v54, %v3652_v38  ;;  %v3704_v61 = vrot.slane %v3653_v11, 4 }
 0x748   : > { %6101 = vrsqrt.f32 %v3776_v0  ;;  %v3777_v56 = vadd.f32 1e-05, %v3761_v41  ;;  %v3687_v17 = vadd.f32 %v3686_v23, %v3650_v45  ;;  %v3692_v31 = vrot.slane %v3651_v36, 4 }
 0x749   : > { %6103 = vrsqrt.f32 %v3774_v2  ;;  %v3775_v26 = vadd.f32 1e-05, %v3759_v58  ;;  %v3700_v48 = vrot.slane %v3699_v20, 2  ;;  %v3705_v5 = vadd.f32 %v3704_v61, %v3653_v11 }
 0x74a   : > { %6105 = vrsqrt.f32 %v3777_v56  ;;  %v3688_v16 = vrot.slane %v3687_v17, 2  ;;  %v3693_v21 = vadd.f32 %v3692_v31, %v3651_v36  ;;  %v3578_v47 = vrot.slane %v7866_v28, 4 }
 0x74b   : > { %6107 = vrsqrt.f32 %v3775_v26  ;;  %v3701_v42 = vadd.f32 %v3700_v48, %v3699_v20  ;;  %v3706_v63 = vrot.slane %v3705_v5, 2  ;;  %v3566_v59 = vrot.slane %v7868_v9, 4 }
 0x74c   : > { %v3689_v46 = vadd.f32 %v3688_v16, %v3687_v17  ;;  %v3694_v33 = vrot.slane %v3693_v21, 2  ;;  %v3579_v50 = vadd.f32 %v7866_v28, %v3578_v47  ;;  %v3584_v14 = vrot.slane %v7870_v22, 4 }
 0x74d   : > { %v3702_v53 = vrot.slane %v3701_v42, 1  ;;  %v3707_v57 = vadd.f32 %v3706_v63, %v3705_v5  ;;  %v3567_v24 = vadd.f32 %v3566_v59, %v7868_v9  ;;  %v3572_v29 = vrot.slane %v7872_v12, 4 }
 0x74e   : > { %v3690_v15 = vrot.slane %v3689_v46, 1  ;;  %v3695_v62 = vadd.f32 %v3694_v33, %v3693_v21  ;;  %v3580_v4 = vrot.slane %v3579_v50, 2  ;;  %v3585_v43 = vadd.f32 %v7870_v22, %v3584_v14 }
 0x74f   : > { %v3703_v19 = vadd.f32 %v3702_v53, %v3701_v42  ;;  %v3708_v34 = vrot.slane %v3707_v57, 1  ;;  %v3568_v13 = vrot.slane %v3567_v24, 2  ;;  %v3573_v3 = vadd.f32 %v3572_v29, %v7872_v12 }
 0x750   : > { %v3691_v37 = vadd.f32 %v3690_v15, %v3689_v46  ;;  %v3696_v35 = vrot.slane %v3695_v62, 1  ;;  %v3581_v6 = vadd.f32 %v3580_v4, %v3579_v50  ;;  %v3586_v55 = vrot.slane %v3585_v43, 2 }
 0x751   : > { %v3764_v38 = vmul.f32 0.125, %v3703_v19  ;;  %v3709_v60 = vadd.f32 %v3708_v34, %v3707_v57  ;;  %v3569_v44 = vadd.f32 %v3568_v13, %v3567_v24  ;;  %v3574_v45 = vrot.slane %v3573_v3, 2 }
 0x752   : > { %v6102_v39 = vpop.eup %6101  ;;  %v3762_v27 = vmul.f32 0.125, %v3691_v37  ;;  %v3697_v54 = vadd.f32 %v3696_v35, %v3695_v62  ;;  %v3582_v11 = vrot.slane %v3581_v6, 1  ;;  %v3587_v0 = vadd.f32 %v3586_v55, %v3585_v43  ;;  %v7902_v41 = vpop.f32.mrb[44].mxu1 }
 0x753   : > { %v6104_v23 = vpop.eup %6103  ;;  %v3808_v36 = vmul.f32 %v7809_v10, %v6102_v39  ;;  %v3780_v2 = vadd.f32 1e-05, %v3764_v38  ;;  %v3765_v58 = vmul.f32 0.125, %v3709_v60  ;;  %v3570_v20 = vrot.slane %v3569_v44, 1  ;;  %v7905_v61 = vpop.f32.mrb[45].mxu1 }
 0x754   : > { %v6106_v56 = vpop.eup %6105  ;;  %v3806_v17 = vmul.f32 %v7809_v10, %v6104_v23  ;;  %v3778_v31 = vadd.f32 1e-05, %v3762_v27  ;;  %v3763_v26 = vmul.f32 0.125, %v3697_v54  ;;  %v3583_v48 = vadd.f32 %v3582_v11, %v3581_v6  ;;  %v7908_v5 = vpop.f32.mrb[46].mxu1 }
 0x755   : > { %v6108_v16 = vpop.eup %6107  ;;  %v3833_v21 = vrot.slane %v3808_v36, %v7828_v32  ;;  %v3809_v47 = vmul.f32 %v7809_v10, %v6106_v56  ;;  %6109 = vrsqrt.f32 %v3780_v2  ;;  %v3781_v42 = vadd.f32 1e-05, %v3765_v58  ;;  %v7912_v63 = vpop.f32.mrb[47].mxu1 }
 0x756   : > { %v3825_v59 = vrot.slane %v3806_v17, %v7828_v32  ;;  %v3807_v46 = vmul.f32 %v7809_v10, %v6108_v16  ;;  %6111 = vrsqrt.f32 %v3778_v31  ;;  %v3779_v33 = vadd.f32 1e-05, %v3763_v26 }
 0x757   : > { %v3888_v50 = vmul.f32 %v3833_v21, %v7835_v7  ;;  %v3837_v14 = vrot.slane %v3809_v47, %v7828_v32  ;;  %6113 = vrsqrt.f32 %v3781_v42  ;;  %v3624_v53 = vmul.f32 0.125, %v3583_v48 }
 0x758   : > { %v3886_v57 = vmul.f32 %v3825_v59, %v7844_v40  ;;  %v3829_v24 = vrot.slane %v3807_v46, %v7828_v32  ;;  %6115 = vrsqrt.f32 %v3779_v33  ;;  %v3571_v29 = vadd.f32 %v3570_v20, %v3569_v44 }
 0x759   : > { %v3908_v15 = vadd.f32 %v7839_v18, %v3888_v50  ;;  %v3889_v62 = vmul.f32 %v3837_v14, %v7852_v1  ;;  %v7923_v4 = vsub.f32 %v7866_v28, %v3624_v53  ;;  %v3588_v43 = vrot.slane %v3587_v0, 1 }
 0x75a   : > { %v7926_v7 = vadd.f32 %v7839_v18, %v3886_v57  ;;  %v3887_v19 = vmul.f32 %v3829_v24, %v7858_v25  ;;  %v3622_v34 = vmul.f32 0.125, %v3571_v29  ;;  %v3575_v13 = vadd.f32 %v3574_v45, %v3573_v3 }
 0x75b   : > { %vm3924_vm0 = vcmp.ge.f32.partialorder %v3908_v15, 0.0  ;;  %v3940_v40 = vmul.f32 0.01, %v3908_v15  ;;  %v3909_v37 = vadd.f32 %v7839_v18, %v3889_v62  ;;  %v3656_v35 = vmul.f32 %v7923_v4, %v7923_v4 }
 0x75c   : > { %v7933_v1 = vadd.f32 %v7839_v18, %v3887_v19  ;;  %v7936_v28 = vsub.f32 %v7868_v9, %v3622_v34  ;;  %v3589_v6 = vadd.f32 %v3588_v43, %v3587_v0  ;;  %v3576_v55 = vrot.slane %v3575_v13, 1 }
 0x75d   : > { %v7938_v38 = vsel %vm3924_vm0, %v3908_v15, %v3940_v40  ;;  %vm3925_vm1 = vcmp.ge.f32.partialorder %v3909_v37, 0.0  ;;  %v3941_v25 = vmul.f32 0.01, %v3909_v37  ;;  %v3722_v3 = vrot.slane %v3656_v35, 4 }
 0x75e   : > { %v3654_v60 = vmul.f32 %v7936_v28, %v7936_v28  ;;  %v3625_v44 = vmul.f32 0.125, %v3589_v6  ;;  %v3577_v45 = vadd.f32 %v3576_v55, %v3575_v13  ;;  %v3602_v39 = vrot.slane %v7902_v41, 4 }
 0x75f   : > { %v6110_v27 = vpop.eup %6109  ;;  %v7943_v54 = vsel %vm3925_vm1, %v3909_v37, %v3941_v25  ;;  %v3723_v11 = vadd.f32 %v3722_v3, %v3656_v35  ;;  %v3590_v9 = vrot.slane %v7905_v61, 4  ;;  %v3608_v0 = vrot.slane %v7908_v5, 4 }
 0x760   : > { %v6112_v23 = vpop.eup %6111  ;;  %v3812_v36 = vmul.f32 %v7809_v10, %v6110_v27  ;;  %v3710_v2 = vrot.slane %v3654_v60, 4  ;;  %v7949_v58 = vsub.f32 %v7870_v22, %v3625_v44  ;;  %v3623_v20 = vmul.f32 0.125, %v3577_v45 }
 0x761   : > { %v6114_v56 = vpop.eup %6113  ;;  %v3810_v17 = vmul.f32 %v7809_v10, %v6112_v23  ;;  %v3724_v31 = vrot.slane %v3723_v11, 2  ;;  %v3603_v26 = vadd.f32 %v7902_v41, %v3602_v39  ;;  %v3591_v48 = vadd.f32 %v3590_v9, %v7905_v61 }
 0x762   : > { %v6116_v16 = vpop.eup %6115  ;;  %v3849_v21 = vrot.slane %v3812_v36, %v7828_v32  ;;  %v3813_v47 = vmul.f32 %v7809_v10, %v6114_v56  ;;  %v3711_v42 = vadd.f32 %v3710_v2, %v3654_v60  ;;  %v3657_v59 = vmul.f32 %v7949_v58, %v7949_v58 }
 0x763   : > { %v3841_v22 = vrot.slane %v3810_v17, %v7828_v32  ;;  %v3811_v46 = vmul.f32 %v7809_v10, %v6116_v16  ;;  %v3725_v33 = vadd.f32 %v3724_v31, %v3723_v11  ;;  %v7961_v50 = vsub.f32 %v7872_v12, %v3623_v20 }
 0x764   : > { %v3892_v14 = vmul.f32 %v3849_v21, %v7875_v51  ;;  %v3853_v53 = vrot.slane %v3813_v47, %v7828_v32  ;;  %v3712_v57 = vrot.slane %v3711_v42, 2  ;;  %v3728_v24 = vrot.slane %v3657_v59, 4 }
 0x765   : > { %v3890_v29 = vmul.f32 %v3841_v22, %v7878_v30  ;;  %v3845_v15 = vrot.slane %v3811_v46, %v7828_v32  ;;  %v3726_v62 = vrot.slane %v3725_v33, 1  ;;  %v3655_v43 = vmul.f32 %v7961_v50, %v7961_v50 }
 0x766   : > { %v7970_v19 = vadd.f32 %v7839_v18, %v3892_v14  ;;  %v3893_v12 = vmul.f32 %v3853_v53, %v7883_v52  ;;  %v3713_v34 = vadd.f32 %v3712_v57, %v3711_v42  ;;  %v3729_v13 = vadd.f32 %v3728_v24, %v3657_v59 }
 0x767   : > { %v7974_v51 = vadd.f32 %v7839_v18, %v3890_v29  ;;  %v3891_v40 = vmul.f32 %v3845_v15, %v7888_v8  ;;  %v3727_v37 = vadd.f32 %v3726_v62, %v3725_v33  ;;  %v3716_v30 = vrot.slane %v3655_v43, 4 }
 0x768   : > { %v7978_v35 = vadd.f32 %v7839_v18, %v3893_v12  ;;  %v3714_v6 = vrot.slane %v3713_v34, 1  ;;  %v3730_v55 = vrot.slane %v3729_v13, 2  ;;  %v3604_v25 = vrot.slane %v3603_v26, 2 }
 0x769   : > { %v7981_v3 = vadd.f32 %v7839_v18, %v3891_v40  ;;  %v3768_v60 = vmul.f32 0.125, %v3727_v37  ;;  %v3717_v52 = vadd.f32 %v3716_v30, %v3655_v43  ;;  %v3592_v44 = vrot.slane %v3591_v48, 2 }
 0x76a   : > { %v3715_v45 = vadd.f32 %v3714_v6, %v3713_v34  ;;  %v3731_v39 = vadd.f32 %v3730_v55, %v3729_v13  ;;  %v3605_v27 = vadd.f32 %v3604_v25, %v3603_v26  ;;  %v3609_v11 = vadd.f32 %v7908_v5, %v3608_v0 }
 0x76b   : > { %v3784_v8 = vadd.f32 1e-05, %v3768_v60  ;;  %v3718_v9 = vrot.slane %v3717_v52, 2  ;;  %v3593_v23 = vadd.f32 %v3592_v44, %v3591_v48  ;;  %v3596_v36 = vrot.slane %v7912_v63, 4 }
 0x76c   : > { %v3766_v2 = vmul.f32 0.125, %v3715_v45  ;;  %v3732_v20 = vrot.slane %v3731_v39, 1  ;;  %v3606_v56 = vrot.slane %v3605_v27, 1  ;;  %v3610_v17 = vrot.slane %v3609_v11, 2 }
 0x76d   : > { %6117 = vrsqrt.f32 %v3784_v8  ;;  %v3719_v31 = vadd.f32 %v3718_v9, %v3717_v52  ;;  %v3594_v16 = vrot.slane %v3593_v23, 1  ;;  %v3597_v21 = vadd.f32 %v3596_v36, %v7912_v63 }
 0x76e   : > { %v3782_v47 = vadd.f32 1e-05, %v3766_v2  ;;  %v3733_v42 = vadd.f32 %v3732_v20, %v3731_v39  ;;  %v3607_v59 = vadd.f32 %v3606_v56, %v3605_v27  ;;  %v3611_v26 = vadd.f32 %v3610_v17, %v3609_v11 }
 0x76f   : > { %v3720_v22 = vrot.slane %v3719_v31, 1  ;;  %v3595_v0 = vadd.f32 %v3594_v16, %v3593_v23  ;;  %v3598_v46 = vrot.slane %v3597_v21, 2  ;;  %vm3922_vm2 = vcmp.ge.f32.partialorder %v7926_v7, 0.0 }
 0x770   : > { %6119 = vrsqrt.f32 %v3782_v47  ;;  %v3769_v48 = vmul.f32 0.125, %v3733_v42  ;;  %v3628_v33 = vmul.f32 0.125, %v3607_v59  ;;  %v3612_v14 = vrot.slane %v3611_v26, 1 }
 0x771   : > { %v3721_v53 = vadd.f32 %v3720_v22, %v3719_v31  ;;  %v3626_v57 = vmul.f32 0.125, %v3595_v0  ;;  %v3599_v24 = vadd.f32 %v3598_v46, %v3597_v21  ;;  %vm3923_vm3 = vcmp.ge.f32.partialorder %v7933_v1, 0.0 }
 0x772   : > { %v3785_v29 = vadd.f32 1e-05, %v3769_v48  ;;  %v7989_v15 = vsub.f32 %v7902_v41, %v3628_v33  ;;  %v3613_v62 = vadd.f32 %v3612_v14, %v3611_v26  ;;  %v3938_v43 = vmul.f32 0.01, %v7926_v7 }
 0x773   : > { %v3767_v12 = vmul.f32 0.125, %v3721_v53  ;;  %v7993_v34 = vsub.f32 %v7905_v61, %v3626_v57  ;;  %v3600_v13 = vrot.slane %v3599_v24, 1  ;;  %v3939_v40 = vmul.f32 0.01, %v7933_v1 }
 0x774   : > { %6121 = vrsqrt.f32 %v3785_v29  ;;  %v3660_v37 = vmul.f32 %v7989_v15, %v7989_v15  ;;  %v3629_v30 = vmul.f32 0.125, %v3613_v62  ;;  %v3954_v41 = vsel %vm3922_vm2, %v7926_v7, %v3938_v43 }
 0x775   : > { %v3783_v6 = vadd.f32 1e-05, %v3767_v12  ;;  %v3658_v55 = vmul.f32 %v7993_v34, %v7993_v34  ;;  %v3601_v25 = vadd.f32 %v3600_v13, %v3599_v24  ;;  %v3955_v61 = vsel %vm3923_vm3, %v7933_v1, %v3939_v40 }
 0x776   : > { %v3746_v60 = vrot.slane %v3660_v37, 4  ;;  %v8007_v52 = vsub.f32 %v7908_v5, %v3629_v30  ;;  %v3970_v44 = vpack.c.bf16 %v3955_v61, %v3954_v41  ;;  %v3971_v45 = vpack.c.bf16 %v7943_v54, %v7938_v38 }
 0x777   : > { %v6118_v39 = vpop.eup %6117  ;;  %6123 = vrsqrt.f32 %v3783_v6  ;;  %v3734_v7 = vrot.slane %v3658_v55, 4  ;;  %v3627_v27 = vmul.f32 0.125, %v3601_v25  ;;  %vm3926_vm4 = vcmp.ge.f32.partialorder %v7974_v51, 0.0 }
 0x778   : > { %v3816_v11 = vmul.f32 %v7809_v10, %v6118_v39  ;;  %v3747_v8 = vadd.f32 %v3746_v60, %v3660_v37  ;;  %v3661_v1 = vmul.f32 %v8007_v52, %v8007_v52  ;;  %5756 = vmatprep.mubr.bf16.mxu0 %v3970_v44  ;;  %vm3927_vm5 = vcmp.ge.f32.partialorder %v7981_v3, 0.0 }
 0x779   : > { %v3735_v5 = vadd.f32 %v3734_v7, %v3658_v55  ;;  %v8017_v9 = vsub.f32 %v7912_v63, %v3627_v27  ;;  %5757 = vmatmul.mubr.bf16.vlgmr.msra.gmra.mrb[48].mxu0 %v3971_v45  ;;  %v3942_v38 = vmul.f32 0.01, %v7974_v51  ;;  %v3943_v54 = vmul.f32 0.01, %v7981_v3 }
 0x77a   : > { %v6120_v23 = vpop.eup %6119  ;;  %v3865_v36 = vrot.slane %v3816_v11, %v7828_v32  ;;  %v3748_v2 = vrot.slane %v3747_v8, 2  ;;  %v3752_v20 = vrot.slane %v3661_v1, 4  ;;  %vm3928_vm6 = vcmp.ge.f32.partialorder %v7970_v19, 0.0 }
 0x77b   : > { %v3814_v56 = vmul.f32 %v7809_v10, %v6120_v23  ;;  %v3736_v17 = vrot.slane %v3735_v5, 2  ;;  %v3659_v31 = vmul.f32 %v8017_v9, %v8017_v9  ;;  %v3958_v63 = vsel %vm3926_vm4, %v7974_v51, %v3942_v38 }
 0x77c   : > { %v3896_v16 = vmul.f32 %v3865_v36, %v7923_v4  ;;  %v3749_v21 = vadd.f32 %v3748_v2, %v3747_v8  ;;  %v3753_v47 = vadd.f32 %v3752_v20, %v3661_v1  ;;  %v3959_v42 = vsel %vm3927_vm5, %v7981_v3, %v3943_v54 }
 0x77d   : > { %v3857_v59 = vrot.slane %v3814_v56, %v7828_v32  ;;  %v3737_v26 = vadd.f32 %v3736_v17, %v3735_v5  ;;  %v3740_v22 = vrot.slane %v3659_v31, 4  ;;  %v3972_v0 = vpack.c.bf16 %v3959_v42, %v3958_v63 }
 0x77e   : > { %v6122_v46 = vpop.eup %6121  ;;  %v3916_v48 = vadd.f32 %v7839_v18, %v3896_v16  ;;  %v3750_v33 = vrot.slane %v3749_v21, 1  ;;  %v3754_v14 = vrot.slane %v3753_v47, 2  ;;  %vm3929_vm7 = vcmp.ge.f32.partialorder %v7978_v35, 0.0 }
 0x77f   : > { %v3894_v4 = vmul.f32 %v3857_v59, %v7936_v28  ;;  %v3817_v51 = vmul.f32 %v7809_v10, %v6122_v46  ;;  %v3738_v53 = vrot.slane %v3737_v26, 1  ;;  %v3741_v57 = vadd.f32 %v3740_v22, %v3659_v31  ;;  %5760 = vmatprep.mubr.bf16.mxu0 %v3972_v0 }
 0x780   : > { %v3751_v3 = vadd.f32 %v3750_v33, %v3749_v21  ;;  %v3755_v24 = vadd.f32 %v3754_v14, %v3753_v47  ;;  %v3944_v29 = vmul.f32 0.01, %v7970_v19  ;;  %v3945_v62 = vmul.f32 0.01, %v7978_v35 }
 0x781   : > { %v6124_v43 = vpop.eup %6123  ;;  %v3914_v12 = vadd.f32 %v7839_v18, %v3894_v4  ;;  %v3869_v13 = vrot.slane %v3817_v51, %v7828_v32  ;;  %v3739_v40 = vadd.f32 %v3738_v53, %v3737_v26  ;;  %v3742_v37 = vrot.slane %v3741_v57, 2 }
 0x782   : > { %v3815_v28 = vmul.f32 %v7809_v10, %v6124_v43  ;;  %v3772_v30 = vmul.f32 0.125, %v3751_v3  ;;  %v3756_v41 = vrot.slane %v3755_v24, 1  ;;  %v3960_v6 = vsel %vm3928_vm6, %v7970_v19, %v3944_v29 }
 0x783   : > { %v3897_v55 = vmul.f32 %v3869_v13, %v7949_v58  ;;  %v3770_v25 = vmul.f32 0.125, %v3739_v40  ;;  %v3743_v61 = vadd.f32 %v3742_v37, %v3741_v57  ;;  %v3961_v60 = vsel %vm3929_vm7, %v7978_v35, %v3945_v62 }
 0x784   : > { %v3861_v44 = vrot.slane %v3815_v28, %v7828_v32  ;;  %v3788_v45 = vadd.f32 1e-05, %v3772_v30  ;;  %v3757_v39 = vadd.f32 %v3756_v41, %v3755_v24  ;;  %v3973_v7 = vpack.c.bf16 %v3961_v60, %v3960_v6  ;;  %v5933_v30 = vld [vmem:[#allocation5 + $0x1c0] sm:$0xff]   ;;  %v5935_v41 = vld [vmem:[#allocation5 + $0x1d0] sm:$0xff]  }
 0x785   : > { %v3917_v27 = vadd.f32 %v7839_v18, %v3897_v55  ;;  %v3786_v11 = vadd.f32 1e-05, %v3770_v25  ;;  %v3744_v8 = vrot.slane %v3743_v61, 1  ;;  %v3946_v5 = vmul.f32 0.01, %v3914_v12  ;;  %5772 = vmatprep.subr.bf16.mxu1 %v5933_v30  ;;  %v5937_v6 = vld [vmem:[#allocation5 + $0x1e0] sm:$0xff]  }
 0x786   : > { %v3895_v1 = vmul.f32 %v3861_v44, %v7961_v50  ;;  %6125 = vrsqrt.f32 %v3788_v45  ;;  %v3773_v19 = vmul.f32 0.125, %v3757_v39  ;;  %5761 = vmatmul.mubr.bf16.gmra.mrb[52].mxu0 %v3973_v7  ;;  %vm3932_vm8 = vcmp.ge.f32.partialorder %v3916_v48, 0.0  ;;  %5773 = vmatpush3.bf16.msra.mxu1 %v5933_v30  ;;  %v5938_v55 = vld [vmem:[#allocation5 + $0x1e8] sm:$0xff]   ;;  %v5939_v25 = vld [vmem:[#allocation5 + $0x1f0] sm:$0xff]  }
 0x787   : > { %6127 = vrsqrt.f32 %v3786_v11  ;;  %v3745_v58 = vadd.f32 %v3744_v8, %v3743_v61  ;;  %vm3933_vm9 = vcmp.ge.f32.partialorder %v3917_v27, 0.0  ;;  %v3948_v54 = vmul.f32 0.01, %v3916_v48  ;;  %v5940_v61 = vld [vmem:[#allocation5 + $0x1f8] sm:$0xff]  }
 0x788   : > { %v3915_v35 = vadd.f32 %v7839_v18, %v3895_v1  ;;  %v3789_v38 = vadd.f32 1e-05, %v3773_v19  ;;  %vm3930_vm10 = vcmp.ge.f32.partialorder %v3914_v12, 0.0  ;;  %v3949_v36 = vmul.f32 0.01, %v3917_v27 }
 0x789   : > { %v3771_v23 = vmul.f32 0.125, %v3745_v58  ;;  %v3964_v50 = vsel %vm3932_vm8, %v3916_v48, %v3948_v54  ;;  %v3962_v17 = vsel %vm3930_vm10, %v3914_v12, %v3946_v5 }
 0x78a   : > { %6129 = vrsqrt.f32 %v3789_v38  ;;  %vm3931_vm11 = vcmp.ge.f32.partialorder %v3915_v35, 0.0  ;;  %v3947_v2 = vmul.f32 0.01, %v3915_v35  ;;  %v3965_v56 = vsel %vm3933_vm9, %v3917_v27, %v3949_v36 }
 0x78b   : > { %v3787_v20 = vadd.f32 1e-05, %v3771_v23  ;;  %v3975_v63 = vpack.c.bf16 %v3965_v56, %v3964_v50 }
 0x78c   : > { %v3963_v31 = vsel %vm3931_vm11, %v3915_v35, %v3947_v2 }
 0x78d   : > { %6131 = vrsqrt.f32 %v3787_v20  ;;  %v3974_v16 = vpack.c.bf16 %v3963_v31, %v3962_v17 }
 0x78f   : > { %5764 = vmatprep.mubr.bf16.mxu0 %v3974_v16 }
 0x790   : > { %v6126_v21 = vpop.eup %6125  ;;  %5765 = vmatmul.mubr.bf16.gmra.mrb[56].mxu0 %v3975_v63 }
 0x791   : > { %v6128_v47 = vpop.eup %6127  ;;  %v3820_v42 = vmul.f32 %v7809_v10, %v6126_v21 }
 0x792   : > { %v3818_v59 = vmul.f32 %v7809_v10, %v6128_v47 }
 0x793   : > { %v3881_v26 = vrot.slane %v3820_v42, %v7828_v32  ;;  %v8071_v42 = vsub.s32 6, %v6596_v49 }
 0x794   : > { %v6130_v22 = vpop.eup %6129  ;;  %v3873_v0 = vrot.slane %v3818_v59, %v7828_v32 }
 0x795   : > { %v3900_v46 = vmul.f32 %v3881_v26, %v7989_v15  ;;  %v3821_v48 = vmul.f32 %v7809_v10, %v6130_v22 }
 0x796   : > { %v3898_v33 = vmul.f32 %v3873_v0, %v7993_v34 }
 0x797   : > { %v6132_v14 = vpop.eup %6131  ;;  %v3920_v4 = vadd.f32 %v7839_v18, %v3900_v46  ;;  %v3885_v51 = vrot.slane %v3821_v48, %v7828_v32 }
 0x798   : > { %v3819_v53 = vmul.f32 %v7809_v10, %v6132_v14  ;;  %v3918_v3 = vadd.f32 %v7839_v18, %v3898_v33  ;;  %v8080_v14 = vld [vmem:[#allocation7 + $0x8] sm:$0xff] }
 0x799   : > { %v3901_v57 = vmul.f32 %v3885_v51, %v8007_v52  ;;  %v3952_v15 = vmul.f32 0.01, %v3920_v4  ;;  %vm3936_vm12 = vcmp.ge.f32.partialorder %v3920_v4, 0.0 }
 0x79a   : > { %v3877_v24 = vrot.slane %v3819_v53, %v7828_v32  ;;  %v3950_v12 = vmul.f32 0.01, %v3918_v3  ;;  %vm3934_vm14 = vcmp.ge.f32.partialorder %v3918_v3, 0.0 }
 0x79b   : > { %v3921_v29 = vadd.f32 %v7839_v18, %v3901_v57  ;;  %v3968_v13 = vsel %vm3936_vm12, %v3920_v4, %v3952_v15  ;;  %v8084_v4 = vrot.slane %v8080_v14, %v8071_v42 }
 0x79c   : > { %v3899_v62 = vmul.f32 %v3877_v24, %v8017_v9  ;;  %v3966_v37 = vsel %vm3934_vm14, %v3918_v3, %v3950_v12  ;;  %v5934_v9 = vld [vmem:[#allocation5 + $0x1c8] sm:$0xff]  }
 0x79d   : > { %vm3937_vm13 = vcmp.ge.f32.partialorder %v3921_v29, 0.0  ;;  %v3953_v34 = vmul.f32 0.01, %v3921_v29  ;;  %5774 = vmatprep.subr.bf16.mxu1 %v5934_v9 }
 0x79e   : > { %v3919_v43 = vadd.f32 %v7839_v18, %v3899_v62  ;;  %5775 = vmatpush3.bf16.msra.mxu1 %v5934_v9  ;;  %v5936_v18 = vld [vmem:[#allocation5 + $0x1d8] sm:$0xff]  }
 0x79f   : > { %v3969_v10 = vsel %vm3937_vm13, %v3921_v29, %v3953_v34  ;;  %5776 = vmatprep.subr.bf16.mxu1 %v5935_v41 }
 0x7a0   : > { %vm3935_vm15 = vcmp.ge.f32.partialorder %v3919_v43, 0.0  ;;  %v3951_v52 = vmul.f32 0.01, %v3919_v43  ;;  %v3977_v40 = vpack.c.bf16 %v3969_v10, %v3968_v13 }
 0x7a2   : > { %v3967_v28 = vsel %vm3935_vm15, %v3919_v43, %v3951_v52  ;;  %5777 = vmatpush3.bf16.msra.mxu1 %v5935_v41 }
 0x7a3   : > { %v3976_v32 = vpack.c.bf16 %v3967_v28, %v3966_v37  ;;  %5778 = vmatprep.subr.bf16.mxu1 %v5936_v18 }
 0x7a5   : > { %5768 = vmatprep.mubr.bf16.mxu0 %v3976_v32 }
 0x7a6   : > { %5769 = vmatmul.mubr.bf16.gmra.mrb[60].mxu0 %v3977_v40  ;;  %5779 = vmatpush3.bf16.msra.mxu1 %v5936_v18 }
 0x7a7   : > { %5780 = vmatprep.subr.bf16.mxu1 %v5937_v6 }
 0x7aa   : > { %5781 = vmatpush3.bf16.msra.mxu1 %v5937_v6 }
 0x7ab   : > { %5782 = vmatprep.subr.bf16.mxu1 %v5938_v55 }
 0x7ae   : > { %5783 = vmatpush3.bf16.msra.mxu1 %v5938_v55 }
 0x7af   : > { %5784 = vmatprep.subr.bf16.mxu1 %v5939_v25 }
 0x7b2   : > { %5785 = vmatpush3.bf16.msra.mxu1 %v5939_v25 }
 0x7b3   : > { %5786 = vmatprep.subr.bf16.mxu1 %v5940_v61 }
 0x7b6   : > { %5787 = vmatpush3.bf16.msra.mxu1 %v5940_v61 }
 0x84c   : > { %v5758_v60 = vpop.f32.mrb[48].mxu0 }
 0x84d   : > { %v4152_v44 = vrot.slane %v5758_v60, 4  ;;  %v4077_v45 = vpop.f32.mrb[49].mxu0 }
 0x84e   : > { %v4140_v39 = vrot.slane %v4077_v45, 4  ;;  %v5759_v7 = vpop.f32.mrb[50].mxu0 }
 0x84f   : > { %v4153_v27 = vadd.f32 %v5758_v60, %v4152_v44  ;;  %v4158_v11 = vrot.slane %v5759_v7, 4  ;;  %v4080_v8 = vpop.f32.mrb[51].mxu0 }
 0x850   : > { %v4141_v1 = vadd.f32 %v4140_v39, %v4077_v45  ;;  %v4146_v19 = vrot.slane %v4080_v8, 4 }
 0x851   : > { %v4154_v58 = vrot.slane %v4153_v27, 2  ;;  %v4159_v5 = vadd.f32 %v5759_v7, %v4158_v11 }
 0x852   : > { %v4142_v35 = vrot.slane %v4141_v1, 2  ;;  %v4147_v38 = vadd.f32 %v4146_v19, %v4080_v8 }
 0x853   : > { %v4155_v54 = vadd.f32 %v4154_v58, %v4153_v27  ;;  %v4160_v23 = vrot.slane %v4159_v5, 2 }
 0x854   : > { %v4143_v36 = vadd.f32 %v4142_v35, %v4141_v1  ;;  %v4148_v2 = vrot.slane %v4147_v38, 2 }
 0x855   : > { %v4156_v20 = vrot.slane %v4155_v54, 1  ;;  %v4161_v50 = vadd.f32 %v4160_v23, %v4159_v5 }
 0x856   : > { %v4144_v56 = vrot.slane %v4143_v36, 1  ;;  %v4149_v17 = vadd.f32 %v4148_v2, %v4147_v38 }
 0x857   : > { %v4157_v31 = vadd.f32 %v4156_v20, %v4155_v54  ;;  %v4162_v63 = vrot.slane %v4161_v50, 1 }
 0x858   : > { %v4145_v16 = vadd.f32 %v4144_v56, %v4143_v36  ;;  %v4150_v21 = vrot.slane %v4149_v17, 1 }
 0x859   : > { %v4238_v47 = vmul.f32 0.125, %v4157_v31  ;;  %v4163_v59 = vadd.f32 %v4162_v63, %v4161_v50  ;;  %v8073_v26 = vpop.f32.mrb[52].mxu0 }
 0x85a   : > { %v4236_v22 = vmul.f32 0.125, %v4145_v16  ;;  %v4151_v0 = vadd.f32 %v4150_v21, %v4149_v17  ;;  %v4176_v46 = vrot.slane %v8073_v26, 4  ;;  %v8076_v48 = vpop.f32.mrb[53].mxu0 }
 0x85b   : > { %v8078_v33 = vsub.f32 %v5758_v60, %v4238_v47  ;;  %v4239_v51 = vmul.f32 0.125, %v4163_v59  ;;  %v4164_v53 = vrot.slane %v8076_v48, 4  ;;  %v8087_v57 = vpop.f32.mrb[54].mxu0 }
 0x85c   : > { %v8089_v3 = vsub.f32 %v4077_v45, %v4236_v22  ;;  %v4237_v24 = vmul.f32 0.125, %v4151_v0  ;;  %v4177_v29 = vadd.f32 %v8073_v26, %v4176_v46  ;;  %v4182_v15 = vrot.slane %v8087_v57, 4  ;;  %v8093_v62 = vpop.f32.mrb[55].mxu0 }
 0x85d   : > { %v4270_v34 = vmul.f32 %v8078_v33, %v8078_v33  ;;  %v8097_v43 = vsub.f32 %v5759_v7, %v4239_v51  ;;  %v4165_v12 = vadd.f32 %v4164_v53, %v8076_v48  ;;  %v4170_v13 = vrot.slane %v8093_v62, 4 }
 0x85e   : > { %v4268_v10 = vmul.f32 %v8089_v3, %v8089_v3  ;;  %v8103_v52 = vsub.f32 %v4080_v8, %v4237_v24  ;;  %v4178_v40 = vrot.slane %v4177_v29, 2  ;;  %v4183_v37 = vadd.f32 %v8087_v57, %v4182_v15 }
 0x85f   : > { %v4296_v28 = vrot.slane %v4270_v34, 4  ;;  %v4271_v32 = vmul.f32 %v8097_v43, %v8097_v43  ;;  %v4166_v30 = vrot.slane %v4165_v12, 2  ;;  %v4171_v9 = vadd.f32 %v4170_v13, %v8093_v62 }
 0x860   : > { %v4284_v41 = vrot.slane %v4268_v10, 4  ;;  %v4269_v18 = vmul.f32 %v8103_v52, %v8103_v52  ;;  %v4179_v6 = vadd.f32 %v4178_v40, %v4177_v29  ;;  %v4184_v55 = vrot.slane %v4183_v37, 2 }
 0x861   : > { %v4297_v25 = vadd.f32 %v4296_v28, %v4270_v34  ;;  %v4302_v61 = vrot.slane %v4271_v32, 4  ;;  %v4167_v60 = vadd.f32 %v4166_v30, %v4165_v12  ;;  %v4172_v44 = vrot.slane %v4171_v9, 2 }
 0x862   : > { %v4285_v45 = vadd.f32 %v4284_v41, %v4268_v10  ;;  %v4290_v39 = vrot.slane %v4269_v18, 4  ;;  %v4180_v7 = vrot.slane %v4179_v6, 1  ;;  %v4185_v27 = vadd.f32 %v4184_v55, %v4183_v37 }
 0x863   : > { %v4298_v11 = vrot.slane %v4297_v25, 2  ;;  %v4303_v8 = vadd.f32 %v4302_v61, %v4271_v32  ;;  %v4168_v1 = vrot.slane %v4167_v60, 1  ;;  %v4173_v19 = vadd.f32 %v4172_v44, %v4171_v9  ;;  %v8111_v58 = vpop.f32.mrb[56].mxu0 }
 0x864   : > { %v4286_v5 = vrot.slane %v4285_v45, 2  ;;  %v4291_v35 = vadd.f32 %v4290_v39, %v4269_v18  ;;  %v4181_v38 = vadd.f32 %v4180_v7, %v4179_v6  ;;  %v4186_v54 = vrot.slane %v4185_v27, 1  ;;  %v8113_v23 = vpop.f32.mrb[57].mxu0 }
 0x865   : > { %v4299_v36 = vadd.f32 %v4298_v11, %v4297_v25  ;;  %v4304_v2 = vrot.slane %v4303_v8, 2  ;;  %v4169_v20 = vadd.f32 %v4168_v1, %v4167_v60  ;;  %v4174_v50 = vrot.slane %v4173_v19, 1  ;;  %v8115_v56 = vpop.f32.mrb[58].mxu0 }
 0x866   : > { %v4287_v17 = vadd.f32 %v4286_v5, %v4285_v45  ;;  %v4292_v31 = vrot.slane %v4291_v35, 2  ;;  %v4242_v63 = vmul.f32 0.125, %v4181_v38  ;;  %v4187_v16 = vadd.f32 %v4186_v54, %v4185_v27  ;;  %v8117_v21 = vpop.f32.mrb[59].mxu0 }
 0x867   : > { %v4300_v47 = vrot.slane %v4299_v36, 1  ;;  %v4305_v59 = vadd.f32 %v4304_v2, %v4303_v8  ;;  %v4240_v22 = vmul.f32 0.125, %v4169_v20  ;;  %v4175_v0 = vadd.f32 %v4174_v50, %v4173_v19 }
 0x868   : > { %v4288_v46 = vrot.slane %v4287_v17, 1  ;;  %v4293_v51 = vadd.f32 %v4292_v31, %v4291_v35  ;;  %v8120_v53 = vsub.f32 %v8073_v26, %v4242_v63  ;;  %v4243_v24 = vmul.f32 0.125, %v4187_v16 }
 0x869   : > { %v4301_v29 = vadd.f32 %v4300_v47, %v4299_v36  ;;  %v4306_v15 = vrot.slane %v4305_v59, 1  ;;  %v8123_v34 = vsub.f32 %v8076_v48, %v4240_v22  ;;  %v4241_v12 = vmul.f32 0.125, %v4175_v0 }
 0x86a   : > { %v4289_v13 = vadd.f32 %v4288_v46, %v4287_v17  ;;  %v4294_v10 = vrot.slane %v4293_v51, 1  ;;  %v4274_v40 = vmul.f32 %v8120_v53, %v8120_v53  ;;  %v8128_v37 = vsub.f32 %v8087_v57, %v4243_v24 }
 0x86b   : > { %v4382_v28 = vmul.f32 0.125, %v4301_v29  ;;  %v4307_v32 = vadd.f32 %v4306_v15, %v4305_v59  ;;  %v4272_v26 = vmul.f32 %v8123_v34, %v8123_v34  ;;  %v8133_v30 = vsub.f32 %v8093_v62, %v4241_v12 }
 0x86c   : > { %v4380_v9 = vmul.f32 0.125, %v4289_v13  ;;  %v4295_v48 = vadd.f32 %v4294_v10, %v4293_v51  ;;  %v4320_v41 = vrot.slane %v4274_v40, 4  ;;  %v4275_v18 = vmul.f32 %v8128_v37, %v8128_v37 }
 0x86d   : > { %v4398_v6 = vadd.f32 1e-05, %v4382_v28  ;;  %v4383_v55 = vmul.f32 0.125, %v4307_v32  ;;  %v4308_v25 = vrot.slane %v4272_v26, 4  ;;  %v4273_v57 = vmul.f32 %v8133_v30, %v8133_v30 }
 0x86e   : > { %v4396_v61 = vadd.f32 1e-05, %v4380_v9  ;;  %v4381_v60 = vmul.f32 0.125, %v4295_v48  ;;  %v4321_v44 = vadd.f32 %v4320_v41, %v4274_v40  ;;  %v4326_v45 = vrot.slane %v4275_v18, 4 }
 0x86f   : > { %6133 = vrsqrt.f32 %v4398_v6  ;;  %v4399_v39 = vadd.f32 1e-05, %v4383_v55  ;;  %v4309_v62 = vadd.f32 %v4308_v25, %v4272_v26  ;;  %v4314_v7 = vrot.slane %v4273_v57, 4 }
 0x870   : > { %6135 = vrsqrt.f32 %v4396_v61  ;;  %v4397_v27 = vadd.f32 1e-05, %v4381_v60  ;;  %v4322_v11 = vrot.slane %v4321_v44, 2  ;;  %v4327_v8 = vadd.f32 %v4326_v45, %v4275_v18 }
 0x871   : > { %6137 = vrsqrt.f32 %v4399_v39  ;;  %v4310_v1 = vrot.slane %v4309_v62, 2  ;;  %v4315_v19 = vadd.f32 %v4314_v7, %v4273_v57  ;;  %v4200_v5 = vrot.slane %v8111_v58, 4  ;;  %v8149_v57 = vld [vmem:[#allocation7] sm:$0xff] }
 0x872   : > { %6139 = vrsqrt.f32 %v4397_v27  ;;  %v4323_v35 = vadd.f32 %v4322_v11, %v4321_v44  ;;  %v4328_v38 = vrot.slane %v4327_v8, 2  ;;  %v4188_v54 = vrot.slane %v8113_v23, 4 }
 0x873   : > { %v4311_v36 = vadd.f32 %v4310_v1, %v4309_v62  ;;  %v4316_v2 = vrot.slane %v4315_v19, 2  ;;  %v4201_v20 = vadd.f32 %v8111_v58, %v4200_v5  ;;  %v4206_v50 = vrot.slane %v8115_v56, 4 }
 0x874   : > { %v4324_v17 = vrot.slane %v4323_v35, 1  ;;  %v4329_v31 = vadd.f32 %v4328_v38, %v4327_v8  ;;  %v4189_v63 = vadd.f32 %v4188_v54, %v8113_v23  ;;  %v4194_v16 = vrot.slane %v8117_v21, 4 }
 0x875   : > { %v4312_v47 = vrot.slane %v4311_v36, 1  ;;  %v4317_v59 = vadd.f32 %v4316_v2, %v4315_v19  ;;  %v4202_v22 = vrot.slane %v4201_v20, 2  ;;  %v4207_v0 = vadd.f32 %v8115_v56, %v4206_v50 }
 0x876   : > { %v4325_v46 = vadd.f32 %v4324_v17, %v4323_v35  ;;  %v4330_v51 = vrot.slane %v4329_v31, 1  ;;  %v4190_v24 = vrot.slane %v4189_v63, 2  ;;  %v4195_v29 = vadd.f32 %v4194_v16, %v8117_v21 }
 0x877   : > { %v4313_v15 = vadd.f32 %v4312_v47, %v4311_v36  ;;  %v4318_v12 = vrot.slane %v4317_v59, 1  ;;  %v4203_v13 = vadd.f32 %v4202_v22, %v4201_v20  ;;  %v4208_v10 = vrot.slane %v4207_v0, 2 }
 0x878   : > { %v4386_v40 = vmul.f32 0.125, %v4325_v46  ;;  %v4331_v28 = vadd.f32 %v4330_v51, %v4329_v31  ;;  %v4191_v32 = vadd.f32 %v4190_v24, %v4189_v63  ;;  %v4196_v26 = vrot.slane %v4195_v29, 2 }
 0x879   : > { %v6134_v9 = vpop.eup %6133  ;;  %v4384_v48 = vmul.f32 0.125, %v4313_v15  ;;  %v4319_v41 = vadd.f32 %v4318_v12, %v4317_v59  ;;  %v4204_v18 = vrot.slane %v4203_v13, 1  ;;  %v4209_v6 = vadd.f32 %v4208_v10, %v4207_v0  ;;  %v8147_v55 = vpop.f32.mrb[60].mxu0 }
 0x87a   : > { %v6136_v25 = vpop.eup %6135  ;;  %v4430_v61 = vmul.f32 %v8149_v57, %v6134_v9  ;;  %v4402_v60 = vadd.f32 1e-05, %v4386_v40  ;;  %v4387_v44 = vmul.f32 0.125, %v4331_v28  ;;  %v4192_v45 = vrot.slane %v4191_v32, 1  ;;  %v8152_v39 = vpop.f32.mrb[61].mxu0 }
 0x87b   : > { %v6138_v62 = vpop.eup %6137  ;;  %v4428_v7 = vmul.f32 %v8149_v57, %v6136_v25  ;;  %v4400_v27 = vadd.f32 1e-05, %v4384_v48  ;;  %v4385_v11 = vmul.f32 0.125, %v4319_v41  ;;  %v4205_v8 = vadd.f32 %v4204_v18, %v4203_v13  ;;  %v8155_v1 = vpop.f32.mrb[62].mxu0 }
 0x87c   : > { %v6140_v19 = vpop.eup %6139  ;;  %v4455_v5 = vrot.slane %v4430_v61, %v8071_v42  ;;  %v4431_v35 = vmul.f32 %v8149_v57, %v6138_v62  ;;  %6141 = vrsqrt.f32 %v4402_v60  ;;  %v4403_v38 = vadd.f32 1e-05, %v4387_v44  ;;  %v8159_v54 = vpop.f32.mrb[63].mxu0 }
 0x87d   : > { %v4447_v36 = vrot.slane %v4428_v7, %v8071_v42  ;;  %v4429_v2 = vmul.f32 %v8149_v57, %v6140_v19  ;;  %6143 = vrsqrt.f32 %v4400_v27  ;;  %v4401_v20 = vadd.f32 1e-05, %v4385_v11 }
 0x87e   : > { %v4510_v50 = vmul.f32 %v4455_v5, %v8078_v33  ;;  %v4459_v17 = vrot.slane %v4431_v35, %v8071_v42  ;;  %6145 = vrsqrt.f32 %v4403_v38  ;;  %v4246_v31 = vmul.f32 0.125, %v4205_v8 }
 0x87f   : > { %v4508_v63 = vmul.f32 %v4447_v36, %v8089_v3  ;;  %v4451_v16 = vrot.slane %v4429_v2, %v8071_v42  ;;  %6147 = vrsqrt.f32 %v4401_v20  ;;  %v4193_v47 = vadd.f32 %v4192_v45, %v4191_v32 }
 0x880   : > { %v4530_v59 = vadd.f32 %v8084_v4, %v4510_v50  ;;  %v4511_v22 = vmul.f32 %v4459_v17, %v8097_v43  ;;  %v8170_v0 = vsub.f32 %v8111_v58, %v4246_v31  ;;  %v4210_v46 = vrot.slane %v4209_v6, 1 }
 0x881   : > { %v8173_v33 = vadd.f32 %v8084_v4, %v4508_v63  ;;  %v4509_v51 = vmul.f32 %v4451_v16, %v8103_v52  ;;  %v4244_v24 = vmul.f32 0.125, %v4193_v47  ;;  %v4197_v15 = vadd.f32 %v4196_v26, %v4195_v29 }
 0x882   : > { %vm4546_vm0 = vcmp.ge.f32.partialorder %v4530_v59, 0.0  ;;  %v4562_v3 = vmul.f32 0.01, %v4530_v59  ;;  %v4531_v12 = vadd.f32 %v8084_v4, %v4511_v22  ;;  %v4278_v13 = vmul.f32 %v8170_v0, %v8170_v0 }
 0x883   : > { %v8180_v43 = vadd.f32 %v8084_v4, %v4509_v51  ;;  %v8183_v58 = vsub.f32 %v8113_v23, %v4244_v24  ;;  %v4211_v10 = vadd.f32 %v4210_v46, %v4209_v6  ;;  %v4198_v40 = vrot.slane %v4197_v15, 1 }
 0x884   : > { %v8185_v28 = vsel %vm4546_vm0, %v4530_v59, %v4562_v3  ;;  %vm4547_vm1 = vcmp.ge.f32.partialorder %v4531_v12, 0.0  ;;  %v4563_v52 = vmul.f32 0.01, %v4531_v12  ;;  %v4344_v29 = vrot.slane %v4278_v13, 4 }
 0x885   : > { %v4276_v32 = vmul.f32 %v8183_v58, %v8183_v58  ;;  %v4247_v26 = vmul.f32 0.125, %v4211_v10  ;;  %v4199_v9 = vadd.f32 %v4198_v40, %v4197_v15  ;;  %v4224_v48 = vrot.slane %v8147_v55, 4 }
 0x886   : > { %v6142_v41 = vpop.eup %6141  ;;  %v8190_v18 = vsel %vm4547_vm1, %v4531_v12, %v4563_v52  ;;  %v4345_v25 = vadd.f32 %v4344_v29, %v4278_v13  ;;  %v4212_v23 = vrot.slane %v8152_v39, 4  ;;  %v4230_v6 = vrot.slane %v8155_v1, 4 }
 0x887   : > { %v6144_v61 = vpop.eup %6143  ;;  %v4434_v60 = vmul.f32 %v8149_v57, %v6142_v41  ;;  %v4332_v44 = vrot.slane %v4276_v32, 4  ;;  %v8196_v45 = vsub.f32 %v8115_v56, %v4247_v26  ;;  %v4245_v62 = vmul.f32 0.125, %v4199_v9 }
 0x888   : > { %v6146_v7 = vpop.eup %6145  ;;  %v4432_v27 = vmul.f32 %v8149_v57, %v6144_v61  ;;  %v4346_v11 = vrot.slane %v4345_v25, 2  ;;  %v4225_v8 = vadd.f32 %v8147_v55, %v4224_v48  ;;  %v4213_v19 = vadd.f32 %v4212_v23, %v8152_v39 }
 0x889   : > { %v6148_v5 = vpop.eup %6147  ;;  %v4471_v35 = vrot.slane %v4434_v60, %v8071_v42  ;;  %v4435_v38 = vmul.f32 %v8149_v57, %v6146_v7  ;;  %v4333_v36 = vadd.f32 %v4332_v44, %v4276_v32  ;;  %v4279_v2 = vmul.f32 %v8196_v45, %v8196_v45 }
 0x88a   : > { %v4463_v56 = vrot.slane %v4432_v27, %v8071_v42  ;;  %v4433_v20 = vmul.f32 %v8149_v57, %v6148_v5  ;;  %v4347_v50 = vadd.f32 %v4346_v11, %v4345_v25  ;;  %v8208_v17 = vsub.f32 %v8117_v21, %v4245_v62 }
 0x88b   : > { %v4514_v31 = vmul.f32 %v4471_v35, %v8120_v53  ;;  %v4475_v63 = vrot.slane %v4435_v38, %v8071_v42  ;;  %v4334_v16 = vrot.slane %v4333_v36, 2  ;;  %v4350_v47 = vrot.slane %v4279_v2, 4 }
 0x88c   : > { %v4512_v59 = vmul.f32 %v4463_v56, %v8123_v34  ;;  %v4467_v22 = vrot.slane %v4433_v20, %v8071_v42  ;;  %v4348_v46 = vrot.slane %v4347_v50, 1  ;;  %v4277_v51 = vmul.f32 %v8208_v17, %v8208_v17 }
 0x88d   : > { %v8217_v24 = vadd.f32 %v8084_v4, %v4514_v31  ;;  %v4515_v21 = vmul.f32 %v4475_v63, %v8128_v37  ;;  %v4335_v15 = vadd.f32 %v4334_v16, %v4333_v36  ;;  %v4351_v3 = vadd.f32 %v4350_v47, %v4279_v2 }
 0x88e   : > { %v8221_v53 = vadd.f32 %v8084_v4, %v4512_v59  ;;  %v4513_v12 = vmul.f32 %v4467_v22, %v8133_v30  ;;  %v4349_v13 = vadd.f32 %v4348_v46, %v4347_v50  ;;  %v4338_v34 = vrot.slane %v4277_v51, 4 }
 0x88f   : > { %v8225_v10 = vadd.f32 %v8084_v4, %v4515_v21  ;;  %v4336_v40 = vrot.slane %v4335_v15, 1  ;;  %v4352_v52 = vrot.slane %v4351_v3, 2  ;;  %v4226_v29 = vrot.slane %v4225_v8, 2 }
 0x890   : > { %v8228_v32 = vadd.f32 %v8084_v4, %v4513_v12  ;;  %v4390_v26 = vmul.f32 0.125, %v4349_v13  ;;  %v4339_v37 = vadd.f32 %v4338_v34, %v4277_v51  ;;  %v4214_v9 = vrot.slane %v4213_v19, 2 }
 0x891   : > { %v4337_v48 = vadd.f32 %v4336_v40, %v4335_v15  ;;  %v4353_v41 = vadd.f32 %v4352_v52, %v4351_v3  ;;  %v4227_v25 = vadd.f32 %v4226_v29, %v4225_v8  ;;  %v4231_v23 = vadd.f32 %v8155_v1, %v4230_v6 }
 0x892   : > { %v4406_v30 = vadd.f32 1e-05, %v4390_v26  ;;  %v4340_v61 = vrot.slane %v4339_v37, 2  ;;  %v4215_v60 = vadd.f32 %v4214_v9, %v4213_v19  ;;  %v4218_v44 = vrot.slane %v8159_v54, 4 }
 0x893   : > { %v4388_v62 = vmul.f32 0.125, %v4337_v48  ;;  %v4354_v7 = vrot.slane %v4353_v41, 1  ;;  %v4228_v27 = vrot.slane %v4227_v25, 1  ;;  %v4232_v11 = vrot.slane %v4231_v23, 2 }
 0x894   : > { %6149 = vrsqrt.f32 %v4406_v30  ;;  %v4341_v5 = vadd.f32 %v4340_v61, %v4339_v37  ;;  %v4216_v35 = vrot.slane %v4215_v60, 1  ;;  %v4219_v38 = vadd.f32 %v4218_v44, %v8159_v54 }
 0x895   : > { %v4404_v36 = vadd.f32 1e-05, %v4388_v62  ;;  %v4355_v2 = vadd.f32 %v4354_v7, %v4353_v41  ;;  %v4229_v56 = vadd.f32 %v4228_v27, %v4227_v25  ;;  %v4233_v8 = vadd.f32 %v4232_v11, %v4231_v23 }
 0x896   : > { %v4342_v20 = vrot.slane %v4341_v5, 1  ;;  %v4217_v6 = vadd.f32 %v4216_v35, %v4215_v60  ;;  %v4220_v50 = vrot.slane %v4219_v38, 2  ;;  %vm4544_vm2 = vcmp.ge.f32.partialorder %v8173_v33, 0.0 }
 0x897   : > { %6151 = vrsqrt.f32 %v4404_v36  ;;  %v4391_v19 = vmul.f32 0.125, %v4355_v2  ;;  %v4250_v31 = vmul.f32 0.125, %v4229_v56  ;;  %v4234_v63 = vrot.slane %v4233_v8, 1 }
 0x898   : > { %v4343_v16 = vadd.f32 %v4342_v20, %v4341_v5  ;;  %v4248_v47 = vmul.f32 0.125, %v4217_v6  ;;  %v4221_v59 = vadd.f32 %v4220_v50, %v4219_v38  ;;  %vm4545_vm3 = vcmp.ge.f32.partialorder %v8180_v43, 0.0 }
 0x899   : > { %v4407_v22 = vadd.f32 1e-05, %v4391_v19  ;;  %v8236_v46 = vsub.f32 %v8147_v55, %v4250_v31  ;;  %v4235_v51 = vadd.f32 %v4234_v63, %v4233_v8  ;;  %v4560_v21 = vmul.f32 0.01, %v8173_v33 }
 0x89a   : > { %v4389_v15 = vmul.f32 0.125, %v4343_v16  ;;  %v8240_v3 = vsub.f32 %v8152_v39, %v4248_v47  ;;  %v4222_v12 = vrot.slane %v4221_v59, 1  ;;  %v4561_v13 = vmul.f32 0.01, %v8180_v43 }
 0x89b   : > { %6153 = vrsqrt.f32 %v4407_v22  ;;  %v4282_v34 = vmul.f32 %v8236_v46, %v8236_v46  ;;  %v4251_v40 = vmul.f32 0.125, %v4235_v51  ;;  %v4576_v55 = vsel %vm4544_vm2, %v8173_v33, %v4560_v21 }
 0x89c   : > { %v4405_v52 = vadd.f32 1e-05, %v4389_v15  ;;  %v4280_v29 = vmul.f32 %v8240_v3, %v8240_v3  ;;  %v4223_v26 = vadd.f32 %v4222_v12, %v4221_v59  ;;  %v4577_v39 = vsel %vm4545_vm3, %v8180_v43, %v4561_v13 }
 0x89d   : > { %v4368_v37 = vrot.slane %v4282_v34, 4  ;;  %v8254_v9 = vsub.f32 %v8155_v1, %v4251_v40  ;;  %v4592_v48 = vpack.c.bf16 %v4577_v39, %v4576_v55  ;;  %v4593_v41 = vpack.c.bf16 %v8190_v18, %v8185_v28 }
 0x89e   : > { %v6150_v25 = vpop.eup %6149  ;;  %6155 = vrsqrt.f32 %v4405_v52  ;;  %v4356_v33 = vrot.slane %v4280_v29, 4  ;;  %v4249_v23 = vmul.f32 0.125, %v4223_v26  ;;  %vm4548_vm4 = vcmp.ge.f32.partialorder %v8221_v53, 0.0 }
 0x89f   : > { %v4438_v30 = vmul.f32 %v8149_v57, %v6150_v25  ;;  %v4369_v61 = vadd.f32 %v4368_v37, %v4282_v34  ;;  %v4283_v43 = vmul.f32 %v8254_v9, %v8254_v9  ;;  %5788 = vmatprep.mubr.bf16.mxu1 %v4592_v48  ;;  %vm4549_vm5 = vcmp.ge.f32.partialorder %v8228_v32, 0.0 }
 0x8a0   : > { %v4357_v1 = vadd.f32 %v4356_v33, %v4280_v29  ;;  %v8264_v60 = vsub.f32 %v8159_v54, %v4249_v23  ;;  %5789 = vmatmul.mubr.bf16.vlgmr.msra.gmra.mrb[48].mxu1 %v4593_v41  ;;  %v4564_v28 = vmul.f32 0.01, %v8221_v53  ;;  %v4565_v18 = vmul.f32 0.01, %v8228_v32 }
 0x8a1   : > { %v6152_v44 = vpop.eup %6151  ;;  %v4487_v62 = vrot.slane %v4438_v30, %v8071_v42  ;;  %v4370_v7 = vrot.slane %v4369_v61, 2  ;;  %v4374_v27 = vrot.slane %v4283_v43, 4  ;;  %vm4550_vm6 = vcmp.ge.f32.partialorder %v8217_v24, 0.0 }
 0x8a2   : > { %v4436_v11 = vmul.f32 %v8149_v57, %v6152_v44  ;;  %v4358_v5 = vrot.slane %v4357_v1, 2  ;;  %v4281_v35 = vmul.f32 %v8264_v60, %v8264_v60  ;;  %v4580_v54 = vsel %vm4548_vm4, %v8221_v53, %v4564_v28 }
 0x8a3   : > { %v4518_v38 = vmul.f32 %v4487_v62, %v8170_v0  ;;  %v4371_v36 = vadd.f32 %v4370_v7, %v4369_v61  ;;  %v4375_v2 = vadd.f32 %v4374_v27, %v4283_v43  ;;  %v4581_v56 = vsel %vm4549_vm5, %v8228_v32, %v4565_v18 }
 0x8a4   : > { %v4479_v8 = vrot.slane %v4436_v11, %v8071_v42  ;;  %v4359_v20 = vadd.f32 %v4358_v5, %v4357_v1  ;;  %v4362_v6 = vrot.slane %v4281_v35, 4  ;;  %v4594_v50 = vpack.c.bf16 %v4581_v56, %v4580_v54 }
 0x8a5   : > { %v6154_v19 = vpop.eup %6153  ;;  %v4538_v31 = vadd.f32 %v8084_v4, %v4518_v38  ;;  %v4372_v63 = vrot.slane %v4371_v36, 1  ;;  %v4376_v16 = vrot.slane %v4375_v2, 2  ;;  %vm4551_vm7 = vcmp.ge.f32.partialorder %v8225_v10, 0.0 }
 0x8a6   : > { %v4516_v0 = vmul.f32 %v4479_v8, %v8183_v58  ;;  %v4439_v53 = vmul.f32 %v8149_v57, %v6154_v19  ;;  %v4360_v47 = vrot.slane %v4359_v20, 1  ;;  %v4363_v59 = vadd.f32 %v4362_v6, %v4281_v35  ;;  %5792 = vmatprep.mubr.bf16.mxu1 %v4594_v50 }
 0x8a7   : > { %v4373_v32 = vadd.f32 %v4372_v63, %v4371_v36  ;;  %v4377_v22 = vadd.f32 %v4376_v16, %v4375_v2  ;;  %v4566_v51 = vmul.f32 0.01, %v8217_v24  ;;  %v4567_v21 = vmul.f32 0.01, %v8225_v10 }
 0x8a8   : > { %v6156_v15 = vpop.eup %6155  ;;  %v4536_v12 = vadd.f32 %v8084_v4, %v4516_v0  ;;  %v4491_v13 = vrot.slane %v4439_v53, %v8071_v42  ;;  %v4361_v34 = vadd.f32 %v4360_v47, %v4359_v20  ;;  %v4364_v40 = vrot.slane %v4363_v59, 2 }
 0x8a9   : > { %v4437_v58 = vmul.f32 %v8149_v57, %v6156_v15  ;;  %v4394_v55 = vmul.f32 0.125, %v4373_v32  ;;  %v4378_v52 = vrot.slane %v4377_v22, 1  ;;  %v4582_v29 = vsel %vm4550_vm6, %v8217_v24, %v4566_v51 }
 0x8aa   : > { %v4519_v26 = vmul.f32 %v4491_v13, %v8196_v45  ;;  %v4392_v39 = vmul.f32 0.125, %v4361_v34  ;;  %v4365_v37 = vadd.f32 %v4364_v40, %v4363_v59  ;;  %v4583_v48 = vsel %vm4551_vm7, %v8225_v10, %v4567_v21 }
 0x8ab   : > { %v4483_v41 = vrot.slane %v4437_v58, %v8071_v42  ;;  %v4410_v25 = vadd.f32 1e-05, %v4394_v55  ;;  %v4379_v33 = vadd.f32 %v4378_v52, %v4377_v22  ;;  %v4595_v23 = vpack.c.bf16 %v4583_v48, %v4582_v29 }
 0x8ac   : > { %v4539_v30 = vadd.f32 %v8084_v4, %v4519_v26  ;;  %v4408_v61 = vadd.f32 1e-05, %v4392_v39  ;;  %v4366_v43 = vrot.slane %v4365_v37, 1  ;;  %v4568_v28 = vmul.f32 0.01, %v4536_v12 }
 0x8ad   : > { %v4517_v1 = vmul.f32 %v4483_v41, %v8208_v17  ;;  %6157 = vrsqrt.f32 %v4410_v25  ;;  %v4395_v24 = vmul.f32 0.125, %v4379_v33  ;;  %5793 = vmatmul.mubr.bf16.gmra.mrb[52].mxu1 %v4595_v23  ;;  %vm4554_vm8 = vcmp.ge.f32.partialorder %v4538_v31, 0.0 }
 0x8ae   : > { %6159 = vrsqrt.f32 %v4408_v61  ;;  %v4367_v45 = vadd.f32 %v4366_v43, %v4365_v37  ;;  %vm4555_vm9 = vcmp.ge.f32.partialorder %v4539_v30, 0.0  ;;  %v4570_v44 = vmul.f32 0.01, %v4538_v31 }
 0x8af   : > { %v4537_v10 = vadd.f32 %v8084_v4, %v4517_v1  ;;  %v4411_v18 = vadd.f32 1e-05, %v4395_v24  ;;  %vm4552_vm10 = vcmp.ge.f32.partialorder %v4536_v12, 0.0  ;;  %v4571_v7 = vmul.f32 0.01, %v4539_v30 }
 0x8b0   : > { %v4393_v62 = vmul.f32 0.125, %v4367_v45  ;;  %v4586_v17 = vsel %vm4554_vm8, %v4538_v31, %v4570_v44  ;;  %v4584_v35 = vsel %vm4552_vm10, %v4536_v12, %v4568_v28 }
 0x8b1   : > { %6161 = vrsqrt.f32 %v4411_v18  ;;  %vm4553_vm11 = vcmp.ge.f32.partialorder %v4537_v10, 0.0  ;;  %v4569_v27 = vmul.f32 0.01, %v4537_v10  ;;  %v4587_v5 = vsel %vm4555_vm9, %v4539_v30, %v4571_v7 }
 0x8b2   : > { %v4409_v11 = vadd.f32 1e-05, %v4393_v62  ;;  %v4597_v38 = vpack.c.bf16 %v4587_v5, %v4586_v17 }
 0x8b3   : > { %v4585_v54 = vsel %vm4553_vm11, %v4537_v10, %v4569_v27 }
 0x8b4   : > { %6163 = vrsqrt.f32 %v4409_v11  ;;  %v4596_v36 = vpack.c.bf16 %v4585_v54, %v4584_v35  ;;  %v8318_v35 = vsub.s32 7, %v6596_v49 }
 0x8b6   : > { %5796 = vmatprep.mubr.bf16.mxu1 %v4596_v36 }
 0x8b7   : > { %v6158_v2 = vpop.eup %6157  ;;  %5797 = vmatmul.mubr.bf16.gmra.mrb[56].mxu1 %v4597_v38 }
 0x8b8   : > { %v6160_v56 = vpop.eup %6159  ;;  %v4442_v8 = vmul.f32 %v8149_v57, %v6158_v2 }
 0x8b9   : > { %v4440_v20 = vmul.f32 %v8149_v57, %v6160_v56 }
 0x8ba   : > { %v4503_v6 = vrot.slane %v4442_v8, %v8071_v42 }
 0x8bb   : > { %v6162_v50 = vpop.eup %6161  ;;  %v4495_v19 = vrot.slane %v4440_v20, %v8071_v42 }
 0x8bc   : > { %v4522_v31 = vmul.f32 %v4503_v6, %v8236_v46  ;;  %v4443_v63 = vmul.f32 %v8149_v57, %v6162_v50  ;;  %v8329_v6 = vrot.slane %v8080_v14, %v8318_v35 }
 0x8bd   : > { %v4520_v16 = vmul.f32 %v4495_v19, %v8240_v3 }
 0x8be   : > { %v6164_v0 = vpop.eup %6163  ;;  %v4542_v53 = vadd.f32 %v8084_v4, %v4522_v31  ;;  %v4507_v47 = vrot.slane %v4443_v63, %v8071_v42 }
 0x8bf   : > { %v4441_v59 = vmul.f32 %v8149_v57, %v6164_v0  ;;  %v4540_v22 = vadd.f32 %v8084_v4, %v4520_v16 }
 0x8c0   : > { %v4523_v32 = vmul.f32 %v4507_v47, %v8254_v9  ;;  %v4574_v46 = vmul.f32 0.01, %v4542_v53  ;;  %vm4558_vm12 = vcmp.ge.f32.partialorder %v4542_v53, 0.0 }
 0x8c1   : > { %v4499_v51 = vrot.slane %v4441_v59, %v8071_v42  ;;  %v4572_v13 = vmul.f32 0.01, %v4540_v22  ;;  %vm4556_vm14 = vcmp.ge.f32.partialorder %v4540_v22, 0.0 }
 0x8c2   : > { %v4543_v21 = vadd.f32 %v8084_v4, %v4523_v32  ;;  %v4590_v34 = vsel %vm4558_vm12, %v4542_v53, %v4574_v46 }
 0x8c3   : > { %v4521_v15 = vmul.f32 %v4499_v51, %v8264_v60  ;;  %v4588_v55 = vsel %vm4556_vm14, %v4540_v22, %v4572_v13 }
 0x8c4   : > { %vm4559_vm13 = vcmp.ge.f32.partialorder %v4543_v21, 0.0  ;;  %v4575_v3 = vmul.f32 0.01, %v4543_v21 }
 0x8c5   : > { %v4541_v12 = vadd.f32 %v8084_v4, %v4521_v15 }
 0x8c6   : > { %v4591_v40 = vsel %vm4559_vm13, %v4543_v21, %v4575_v3 }
 0x8c7   : > { %vm4557_vm15 = vcmp.ge.f32.partialorder %v4541_v12, 0.0  ;;  %v4573_v9 = vmul.f32 0.01, %v4541_v12  ;;  %v4599_v58 = vpack.c.bf16 %v4591_v40, %v4590_v34 }
 0x8c9   : > { %v4589_v52 = vsel %vm4557_vm15, %v4541_v12, %v4573_v9 }
 0x8ca   : > { %v4598_v42 = vpack.c.bf16 %v4589_v52, %v4588_v55 }
 0x8cc   : > { %5800 = vmatprep.mubr.bf16.mxu1 %v4598_v42 }
 0x8cd   : > { %5801 = vmatmul.mubr.bf16.gmra.mrb[60].mxu1 %v4599_v58 }
 0x973   : > { %v5790_v29 = vpop.f32.mrb[48].mxu1 }
 0x974   : > { %v4774_v26 = vrot.slane %v5790_v29, 4  ;;  %v4699_v60 = vpop.f32.mrb[49].mxu1 }
 0x975   : > { %v4762_v39 = vrot.slane %v4699_v60, 4  ;;  %v5791_v37 = vpop.f32.mrb[50].mxu1 }
 0x976   : > { %v4775_v48 = vadd.f32 %v5790_v29, %v4774_v26  ;;  %v4780_v41 = vrot.slane %v5791_v37, 4  ;;  %v4702_v4 = vpop.f32.mrb[51].mxu1 }
 0x977   : > { %v4763_v25 = vadd.f32 %v4762_v39, %v4699_v60  ;;  %v4768_v33 = vrot.slane %v4702_v4, 4 }
 0x978   : > { %v4776_v23 = vrot.slane %v4775_v48, 2  ;;  %v4781_v30 = vadd.f32 %v5791_v37, %v4780_v41 }
 0x979   : > { %v4764_v61 = vrot.slane %v4763_v25, 2  ;;  %v4769_v43 = vadd.f32 %v4768_v33, %v4702_v4 }
 0x97a   : > { %v4777_v1 = vadd.f32 %v4776_v23, %v4775_v48  ;;  %v4782_v24 = vrot.slane %v4781_v30, 2 }
 0x97b   : > { %v4765_v45 = vadd.f32 %v4764_v61, %v4763_v25  ;;  %v4770_v28 = vrot.slane %v4769_v43, 2 }
 0x97c   : > { %v4778_v10 = vrot.slane %v4777_v1, 1  ;;  %v4783_v18 = vadd.f32 %v4782_v24, %v4781_v30 }
 0x97d   : > { %v4766_v44 = vrot.slane %v4765_v45, 1  ;;  %v4771_v62 = vadd.f32 %v4770_v28, %v4769_v43 }
 0x97e   : > { %v4779_v7 = vadd.f32 %v4778_v10, %v4777_v1  ;;  %v4784_v27 = vrot.slane %v4783_v18, 1 }
 0x97f   : > { %v4767_v11 = vadd.f32 %v4766_v44, %v4765_v45  ;;  %v4772_v17 = vrot.slane %v4771_v62, 1 }
 0x980   : > { %v4860_v5 = vmul.f32 0.125, %v4779_v7  ;;  %v4785_v54 = vadd.f32 %v4784_v27, %v4783_v18  ;;  %v8320_v38 = vpop.f32.mrb[52].mxu1 }
 0x981   : > { %v4858_v36 = vmul.f32 0.125, %v4767_v11  ;;  %v4773_v2 = vadd.f32 %v4772_v17, %v4771_v62  ;;  %v4798_v56 = vrot.slane %v8320_v38, 4  ;;  %v8323_v8 = vpop.f32.mrb[53].mxu1 }
 0x982   : > { %v8325_v20 = vsub.f32 %v5790_v29, %v4860_v5  ;;  %v4861_v50 = vmul.f32 0.125, %v4785_v54  ;;  %v4786_v19 = vrot.slane %v8323_v8, 4  ;;  %v8332_v49 = vpop.f32.mrb[54].mxu1 }
 0x983   : > { %v8334_v31 = vsub.f32 %v4699_v60, %v4858_v36  ;;  %v4859_v63 = vmul.f32 0.125, %v4773_v2  ;;  %v4799_v16 = vadd.f32 %v8320_v38, %v4798_v56  ;;  %v4804_v0 = vrot.slane %v8332_v49, 4  ;;  %v8338_v53 = vpop.f32.mrb[55].mxu1 }
 0x984   : > { %v4892_v47 = vmul.f32 %v8325_v20, %v8325_v20  ;;  %v8342_v59 = vsub.f32 %v5791_v37, %v4861_v50  ;;  %v4787_v14 = vadd.f32 %v4786_v19, %v8323_v8  ;;  %v4792_v32 = vrot.slane %v8338_v53, 4 }
 0x985   : > { %v4890_v22 = vmul.f32 %v8334_v31, %v8334_v31  ;;  %v8348_v51 = vsub.f32 %v4702_v4, %v4859_v63  ;;  %v4800_v21 = vrot.slane %v4799_v16, 2  ;;  %v4805_v46 = vadd.f32 %v8332_v49, %v4804_v0 }
 0x986   : > { %v4918_v15 = vrot.slane %v4892_v47, 4  ;;  %v4893_v3 = vmul.f32 %v8342_v59, %v8342_v59  ;;  %v4788_v12 = vrot.slane %v4787_v14, 2  ;;  %v4793_v13 = vadd.f32 %v4792_v32, %v8338_v53 }
 0x987   : > { %v4906_v34 = vrot.slane %v4890_v22, 4  ;;  %v4891_v40 = vmul.f32 %v8348_v51, %v8348_v51  ;;  %v4801_v9 = vadd.f32 %v4800_v21, %v4799_v16  ;;  %v4806_v58 = vrot.slane %v4805_v46, 2 }
 0x988   : > { %v4919_v55 = vadd.f32 %v4918_v15, %v4892_v47  ;;  %v4924_v52 = vrot.slane %v4893_v3, 4  ;;  %v4789_v42 = vadd.f32 %v4788_v12, %v4787_v14  ;;  %v4794_v29 = vrot.slane %v4793_v13, 2 }
 0x989   : > { %v4907_v26 = vadd.f32 %v4906_v34, %v4890_v22  ;;  %v4912_v60 = vrot.slane %v4891_v40, 4  ;;  %v4802_v39 = vrot.slane %v4801_v9, 1  ;;  %v4807_v37 = vadd.f32 %v4806_v58, %v4805_v46 }
 0x98a   : > { %v4920_v48 = vrot.slane %v4919_v55, 2  ;;  %v4925_v41 = vadd.f32 %v4924_v52, %v4893_v3  ;;  %v4790_v4 = vrot.slane %v4789_v42, 1  ;;  %v4795_v25 = vadd.f32 %v4794_v29, %v4793_v13  ;;  %v8356_v33 = vpop.f32.mrb[56].mxu1 }
 0x98b   : > { %v4908_v23 = vrot.slane %v4907_v26, 2  ;;  %v4913_v30 = vadd.f32 %v4912_v60, %v4891_v40  ;;  %v4803_v61 = vadd.f32 %v4802_v39, %v4801_v9  ;;  %v4808_v43 = vrot.slane %v4807_v37, 1  ;;  %v8358_v1 = vpop.f32.mrb[57].mxu1 }
 0x98c   : > { %v4921_v24 = vadd.f32 %v4920_v48, %v4919_v55  ;;  %v4926_v45 = vrot.slane %v4925_v41, 2  ;;  %v4791_v28 = vadd.f32 %v4790_v4, %v4789_v42  ;;  %v4796_v10 = vrot.slane %v4795_v25, 1  ;;  %v8360_v18 = vpop.f32.mrb[58].mxu1 }
 0x98d   : > { %v4909_v44 = vadd.f32 %v4908_v23, %v4907_v26  ;;  %v4914_v62 = vrot.slane %v4913_v30, 2  ;;  %v4864_v7 = vmul.f32 0.125, %v4803_v61  ;;  %v4809_v27 = vadd.f32 %v4808_v43, %v4807_v37  ;;  %v8362_v11 = vpop.f32.mrb[59].mxu1 }
 0x98e   : > { %v4922_v17 = vrot.slane %v4921_v24, 1  ;;  %v4927_v5 = vadd.f32 %v4926_v45, %v4925_v41  ;;  %v4862_v54 = vmul.f32 0.125, %v4791_v28  ;;  %v4797_v36 = vadd.f32 %v4796_v10, %v4795_v25 }
 0x98f   : > { %v4910_v2 = vrot.slane %v4909_v44, 1  ;;  %v4915_v56 = vadd.f32 %v4914_v62, %v4913_v30  ;;  %v8365_v50 = vsub.f32 %v8320_v38, %v4864_v7  ;;  %v4865_v19 = vmul.f32 0.125, %v4809_v27 }
 0x990   : > { %v4923_v63 = vadd.f32 %v4922_v17, %v4921_v24  ;;  %v4928_v16 = vrot.slane %v4927_v5, 1  ;;  %v8368_v0 = vsub.f32 %v8323_v8, %v4862_v54  ;;  %v4863_v47 = vmul.f32 0.125, %v4797_v36 }
 0x991   : > { %v4911_v14 = vadd.f32 %v4910_v2, %v4909_v44  ;;  %v4916_v32 = vrot.slane %v4915_v56, 1  ;;  %v4896_v22 = vmul.f32 %v8365_v50, %v8365_v50  ;;  %v8373_v21 = vsub.f32 %v8332_v49, %v4865_v19 }
 0x992   : > { %v5004_v46 = vmul.f32 0.125, %v4923_v63  ;;  %v4929_v15 = vadd.f32 %v4928_v16, %v4927_v5  ;;  %v4894_v38 = vmul.f32 %v8368_v0, %v8368_v0  ;;  %v8378_v3 = vsub.f32 %v8338_v53, %v4863_v47 }
 0x993   : > { %v5002_v12 = vmul.f32 0.125, %v4911_v14  ;;  %v4917_v8 = vadd.f32 %v4916_v32, %v4915_v56  ;;  %v4942_v13 = vrot.slane %v4896_v22, 4  ;;  %v4897_v34 = vmul.f32 %v8373_v21, %v8373_v21 }
 0x994   : > { %v5020_v40 = vadd.f32 1e-05, %v5004_v46  ;;  %v5005_v9 = vmul.f32 0.125, %v4929_v15  ;;  %v4930_v58 = vrot.slane %v4894_v38, 4  ;;  %v4895_v49 = vmul.f32 %v8378_v3, %v8378_v3 }
 0x995   : > { %v5018_v55 = vadd.f32 1e-05, %v5002_v12  ;;  %v5003_v52 = vmul.f32 0.125, %v4917_v8  ;;  %v4943_v42 = vadd.f32 %v4942_v13, %v4896_v22  ;;  %v4948_v29 = vrot.slane %v4897_v34, 4 }
 0x996   : > { %6165 = vrsqrt.f32 %v5020_v40  ;;  %v5021_v26 = vadd.f32 1e-05, %v5005_v9  ;;  %v4931_v53 = vadd.f32 %v4930_v58, %v4894_v38  ;;  %v4936_v60 = vrot.slane %v4895_v49, 4 }
 0x997   : > { %6167 = vrsqrt.f32 %v5018_v55  ;;  %v5019_v39 = vadd.f32 1e-05, %v5003_v52  ;;  %v4944_v37 = vrot.slane %v4943_v42, 2  ;;  %v4949_v48 = vadd.f32 %v4948_v29, %v4897_v34 }
 0x998   : > { %6169 = vrsqrt.f32 %v5021_v26  ;;  %v4932_v41 = vrot.slane %v4931_v53, 2  ;;  %v4937_v4 = vadd.f32 %v4936_v60, %v4895_v49  ;;  %v4822_v25 = vrot.slane %v8356_v33, 4 }
 0x999   : > { %6171 = vrsqrt.f32 %v5019_v39  ;;  %v4945_v23 = vadd.f32 %v4944_v37, %v4943_v42  ;;  %v4950_v30 = vrot.slane %v4949_v48, 2  ;;  %v4810_v61 = vrot.slane %v8358_v1, 4 }
 0x99a   : > { %v4933_v43 = vadd.f32 %v4932_v41, %v4931_v53  ;;  %v4938_v24 = vrot.slane %v4937_v4, 2  ;;  %v4823_v45 = vadd.f32 %v8356_v33, %v4822_v25  ;;  %v4828_v28 = vrot.slane %v8360_v18, 4 }
 0x99b   : > { %v4946_v10 = vrot.slane %v4945_v23, 1  ;;  %v4951_v44 = vadd.f32 %v4950_v30, %v4949_v48  ;;  %v4811_v62 = vadd.f32 %v4810_v61, %v8358_v1  ;;  %v4816_v7 = vrot.slane %v8362_v11, 4 }
 0x99c   : > { %v4934_v27 = vrot.slane %v4933_v43, 1  ;;  %v4939_v17 = vadd.f32 %v4938_v24, %v4937_v4  ;;  %v4824_v5 = vrot.slane %v4823_v45, 2  ;;  %v4829_v54 = vadd.f32 %v8360_v18, %v4828_v28 }
 0x99d   : > { %v4947_v36 = vadd.f32 %v4946_v10, %v4945_v23  ;;  %v4952_v2 = vrot.slane %v4951_v44, 1  ;;  %v4812_v56 = vrot.slane %v4811_v62, 2  ;;  %v4817_v19 = vadd.f32 %v4816_v7, %v8362_v11 }
 0x99e   : > { %v4935_v63 = vadd.f32 %v4934_v27, %v4933_v43  ;;  %v4940_v16 = vrot.slane %v4939_v17, 1  ;;  %v4825_v47 = vadd.f32 %v4824_v5, %v4823_v45  ;;  %v4830_v14 = vrot.slane %v4829_v54, 2 }
 0x99f   : > { %v5008_v32 = vmul.f32 0.125, %v4947_v36  ;;  %v4953_v22 = vadd.f32 %v4952_v2, %v4951_v44  ;;  %v4813_v46 = vadd.f32 %v4812_v56, %v4811_v62  ;;  %v4818_v15 = vrot.slane %v4817_v19, 2 }
 0x9a0   : > { %v6166_v38 = vpop.eup %6165  ;;  %v5006_v12 = vmul.f32 0.125, %v4935_v63  ;;  %v4941_v8 = vadd.f32 %v4940_v16, %v4939_v17  ;;  %v4826_v13 = vrot.slane %v4825_v47, 1  ;;  %v4831_v34 = vadd.f32 %v4830_v14, %v4829_v54  ;;  %v8392_v40 = vpop.f32.mrb[60].mxu1 }
 0x9a1   : > { %v6168_v9 = vpop.eup %6167  ;;  %v5052_v58 = vmul.f32 %v8149_v57, %v6166_v38  ;;  %v5024_v49 = vadd.f32 1e-05, %v5008_v32  ;;  %v5009_v55 = vmul.f32 0.125, %v4953_v22  ;;  %v4814_v52 = vrot.slane %v4813_v46, 1  ;;  %v8395_v42 = vpop.f32.mrb[61].mxu1 }
 0x9a2   : > { %v6170_v29 = vpop.eup %6169  ;;  %v5050_v26 = vmul.f32 %v8149_v57, %v6168_v9  ;;  %v5022_v53 = vadd.f32 1e-05, %v5006_v12  ;;  %v5007_v60 = vmul.f32 0.125, %v4941_v8  ;;  %v4827_v39 = vadd.f32 %v4826_v13, %v4825_v47  ;;  %v8398_v37 = vpop.f32.mrb[62].mxu1  ;;  %v8433_v13 = vld [vmem:[#allocation7] sm:$0xff] }
 0x9a3   : > { %v6172_v48 = vpop.eup %6171  ;;  %v5077_v41 = vrot.slane %v5052_v58, %v8318_v35  ;;  %v5053_v4 = vmul.f32 %v8149_v57, %v6170_v29  ;;  %6173 = vrsqrt.f32 %v5024_v49  ;;  %v5025_v25 = vadd.f32 1e-05, %v5009_v55  ;;  %v8402_v23 = vpop.f32.mrb[63].mxu1 }
 0x9a4   : > { %v5069_v30 = vrot.slane %v5050_v26, %v8318_v35  ;;  %v5051_v61 = vmul.f32 %v8149_v57, %v6172_v48  ;;  %6175 = vrsqrt.f32 %v5022_v53  ;;  %v5023_v43 = vadd.f32 1e-05, %v5007_v60 }
 0x9a5   : > { %v5132_v24 = vmul.f32 %v5077_v41, %v8325_v20  ;;  %v5081_v45 = vrot.slane %v5053_v4, %v8318_v35  ;;  %6177 = vrsqrt.f32 %v5025_v25  ;;  %v4868_v28 = vmul.f32 0.125, %v4827_v39 }
 0x9a6   : > { %v5130_v10 = vmul.f32 %v5069_v30, %v8334_v31  ;;  %v5073_v44 = vrot.slane %v5051_v61, %v8318_v35  ;;  %6179 = vrsqrt.f32 %v5023_v43  ;;  %v4815_v62 = vadd.f32 %v4814_v52, %v4813_v46 }
 0x9a7   : > { %v5152_v7 = vadd.f32 %v8329_v6, %v5132_v24  ;;  %v5133_v27 = vmul.f32 %v5081_v45, %v8342_v59  ;;  %v8413_v57 = vsub.f32 %v8356_v33, %v4868_v28  ;;  %v4832_v17 = vrot.slane %v4831_v34, 1 }
 0x9a8   : > { %v5150_v20 = vadd.f32 %v8329_v6, %v5130_v10  ;;  %v5131_v5 = vmul.f32 %v5073_v44, %v8348_v51  ;;  %v4866_v54 = vmul.f32 0.125, %v4815_v62  ;;  %v4819_v36 = vadd.f32 %v4818_v15, %v4817_v19 }
 0x9a9   : > { %vm5168_vm0 = vcmp.ge.f32.partialorder %v5152_v7, 0.0  ;;  %v5184_v31 = vmul.f32 0.01, %v5152_v7  ;;  %v5153_v2 = vadd.f32 %v8329_v6, %v5133_v27  ;;  %v4900_v56 = vmul.f32 %v8413_v57, %v8413_v57 }
 0x9aa   : > { %vm5166_vm1 = vcmp.ge.f32.partialorder %v5150_v20, 0.0  ;;  %v5182_v59 = vmul.f32 0.01, %v5150_v20  ;;  %v5151_v33 = vadd.f32 %v8329_v6, %v5131_v5  ;;  %v8422_v63 = vsub.f32 %v8358_v1, %v4866_v54 }
 0x9ab   : > { %v5200_v16 = vsel %vm5168_vm0, %v5152_v7, %v5184_v31  ;;  %vm5169_vm2 = vcmp.ge.f32.partialorder %v5153_v2, 0.0  ;;  %v5185_v47 = vmul.f32 0.01, %v5153_v2  ;;  %v4966_v51 = vrot.slane %v4900_v56, 4 }
 0x9ac   : > { %5216 = vst [vmem:[%s8426_s18 + $0x10] sm:$0xff] %v5200_v16  ;;  %v5198_v19 = vsel %vm5166_vm1, %v5150_v20, %v5182_v59  ;;  %vm5167_vm3 = vcmp.ge.f32.partialorder %v5151_v33, 0.0  ;;  %v5183_v14 = vmul.f32 0.01, %v5151_v33  ;;  %v4898_v32 = vmul.f32 %v8422_v63, %v8422_v63 }
 0x9ad   : > { %v6174_v1 = vpop.eup %6173  ;;  %5214 = vst [vmem:[%s8426_s18] sm:$0xff] %v5198_v19  ;;  %v5201_v22 = vsel %vm5169_vm2, %v5153_v2, %v5185_v47  ;;  %v4967_v46 = vadd.f32 %v4966_v51, %v4900_v56  ;;  %v4833_v15 = vadd.f32 %v4832_v17, %v4831_v34  ;;  %v4820_v38 = vrot.slane %v4819_v36, 1 }
 0x9ae   : > { %v6176_v12 = vpop.eup %6175  ;;  %5217 = vst [vmem:[%s8426_s18 + $0x18] sm:$0xff] %v5201_v22  ;;  %v5199_v8 = vsel %vm5167_vm3, %v5151_v33, %v5183_v14  ;;  %v5056_v9 = vmul.f32 %v8433_v13, %v6174_v1  ;;  %v4954_v58 = vrot.slane %v4898_v32, 4  ;;  %v4846_v49 = vrot.slane %v8392_v40, 4 }
 0x9af   : > { %v6178_v55 = vpop.eup %6177  ;;  %5215 = vst [vmem:[%s8426_s18 + $0x8] sm:$0xff] %v5199_v8  ;;  %v5054_v52 = vmul.f32 %v8433_v13, %v6176_v12  ;;  %v4968_v29 = vrot.slane %v4967_v46, 2  ;;  %v4869_v26 = vmul.f32 0.125, %v4833_v15  ;;  %v4821_v53 = vadd.f32 %v4820_v38, %v4819_v36 }
 0x9b0   : > { %v6180_v60 = vpop.eup %6179  ;;  %v5093_v34 = vrot.slane %v5056_v9, %v8318_v35  ;;  %v5057_v39 = vmul.f32 %v8433_v13, %v6178_v55  ;;  %v4955_v48 = vadd.f32 %v4954_v58, %v4898_v32  ;;  %v4847_v41 = vadd.f32 %v8392_v40, %v4846_v49 }
 0x9b1   : > { %v5085_v4 = vrot.slane %v5054_v52, %v8318_v35  ;;  %v5055_v25 = vmul.f32 %v8433_v13, %v6180_v60  ;;  %v4969_v30 = vadd.f32 %v4968_v29, %v4967_v46  ;;  %v8445_v61 = vsub.f32 %v8360_v18, %v4869_v26 }
 0x9b2   : > { %v5136_v43 = vmul.f32 %v5093_v34, %v8365_v50  ;;  %v5097_v24 = vrot.slane %v5057_v39, %v8318_v35  ;;  %v4956_v45 = vrot.slane %v4955_v48, 2  ;;  %v4867_v28 = vmul.f32 0.125, %v4821_v53 }
 0x9b3   : > { %v5134_v10 = vmul.f32 %v5085_v4, %v8368_v0  ;;  %v5089_v44 = vrot.slane %v5055_v25, %v8318_v35  ;;  %v4970_v62 = vrot.slane %v4969_v30, 1  ;;  %v4901_v7 = vmul.f32 %v8445_v61, %v8445_v61 }
 0x9b4   : > { %v5156_v27 = vadd.f32 %v8329_v6, %v5136_v43  ;;  %v5137_v17 = vmul.f32 %v5097_v24, %v8373_v21  ;;  %v4957_v18 = vadd.f32 %v4956_v45, %v4955_v48  ;;  %v8456_v20 = vsub.f32 %v8362_v11, %v4867_v28 }
 0x9b5   : > { %v5154_v50 = vadd.f32 %v8329_v6, %v5134_v10  ;;  %v5135_v5 = vmul.f32 %v5089_v44, %v8378_v3  ;;  %v4971_v0 = vadd.f32 %v4970_v62, %v4969_v30  ;;  %v4972_v54 = vrot.slane %v4901_v7, 4 }
 0x9b6   : > { %vm5172_vm4 = vcmp.ge.f32.partialorder %v5156_v27, 0.0  ;;  %v5188_v36 = vmul.f32 0.01, %v5156_v27  ;;  %v5157_v31 = vadd.f32 %v8329_v6, %v5137_v17  ;;  %v4958_v2 = vrot.slane %v4957_v18, 1 }
 0x9b7   : > { %vm5170_vm5 = vcmp.ge.f32.partialorder %v5154_v50, 0.0  ;;  %v5186_v56 = vmul.f32 0.01, %v5154_v50  ;;  %v5155_v21 = vadd.f32 %v8329_v6, %v5135_v5  ;;  %v5012_v11 = vmul.f32 0.125, %v4971_v0 }
 0x9b8   : > { %v5204_v59 = vsel %vm5172_vm4, %v5156_v27, %v5188_v36  ;;  %vm5173_vm6 = vcmp.ge.f32.partialorder %v5157_v31, 0.0  ;;  %v5189_v33 = vmul.f32 0.01, %v5157_v31  ;;  %v4959_v16 = vadd.f32 %v4958_v2, %v4957_v18 }
 0x9b9   : > { %5220 = vst [vmem:[%s8426_s18 + $0x30] sm:$0xff] %v5204_v59  ;;  %v5202_v3 = vsel %vm5170_vm5, %v5154_v50, %v5186_v56  ;;  %vm5171_vm7 = vcmp.ge.f32.partialorder %v5155_v21, 0.0  ;;  %v5187_v47 = vmul.f32 0.01, %v5155_v21  ;;  %v5028_v51 = vadd.f32 1e-05, %v5012_v11 }
 0x9ba   : > { %5218 = vst [vmem:[%s8426_s18 + $0x20] sm:$0xff] %v5202_v3  ;;  %v5205_v19 = vsel %vm5173_vm6, %v5157_v31, %v5189_v33  ;;  %v5010_v14 = vmul.f32 0.125, %v4959_v16  ;;  %v4973_v32 = vadd.f32 %v4972_v54, %v4901_v7  ;;  %v4899_v1 = vmul.f32 %v8456_v20, %v8456_v20 }
 0x9bb   : > { %5221 = vst [vmem:[%s8426_s18 + $0x38] sm:$0xff] %v5205_v19  ;;  %v5203_v22 = vsel %vm5171_vm7, %v5155_v21, %v5187_v47  ;;  %6181 = vrsqrt.f32 %v5028_v51  ;;  %v4848_v46 = vrot.slane %v4847_v41, 2  ;;  %v4834_v15 = vrot.slane %v8395_v42, 4 }
 0x9bc   : > { %5219 = vst [vmem:[%s8426_s18 + $0x28] sm:$0xff] %v5203_v22  ;;  %v5026_v38 = vadd.f32 1e-05, %v5010_v14  ;;  %v4974_v12 = vrot.slane %v4973_v32, 2  ;;  %v4960_v8 = vrot.slane %v4899_v1, 4  ;;  %v4852_v9 = vrot.slane %v8398_v37, 4 }
 0x9bd   : > { %v4849_v58 = vadd.f32 %v4848_v46, %v4847_v41  ;;  %v4835_v49 = vadd.f32 %v4834_v15, %v8395_v42  ;;  %v4840_v55 = vrot.slane %v8402_v23, 4 }
 0x9be   : > { %6183 = vrsqrt.f32 %v5026_v38  ;;  %v4975_v52 = vadd.f32 %v4974_v12, %v4973_v32  ;;  %v4961_v29 = vadd.f32 %v4960_v8, %v4899_v1  ;;  %v4853_v26 = vadd.f32 %v8398_v37, %v4852_v9 }
 0x9bf   : > { %v4850_v53 = vrot.slane %v4849_v58, 1  ;;  %v4836_v60 = vrot.slane %v4835_v49, 2  ;;  %v4841_v34 = vadd.f32 %v4840_v55, %v8402_v23 }
 0x9c0   : > { %v4976_v39 = vrot.slane %v4975_v52, 1  ;;  %v4962_v48 = vrot.slane %v4961_v29, 2  ;;  %v4854_v4 = vrot.slane %v4853_v26, 2 }
 0x9c1   : > { %v4851_v25 = vadd.f32 %v4850_v53, %v4849_v58  ;;  %v4837_v30 = vadd.f32 %v4836_v60, %v4835_v49  ;;  %v4842_v43 = vrot.slane %v4841_v34, 2 }
 0x9c2   : > { %v4977_v41 = vadd.f32 %v4976_v39, %v4975_v52  ;;  %v4963_v24 = vadd.f32 %v4962_v48, %v4961_v29  ;;  %v4855_v45 = vadd.f32 %v4854_v4, %v4853_v26 }
 0x9c3   : > { %v4872_v28 = vmul.f32 0.125, %v4851_v25  ;;  %v4838_v10 = vrot.slane %v4837_v30, 1  ;;  %v4843_v44 = vadd.f32 %v4842_v43, %v4841_v34 }
 0x9c4   : > { %v5013_v62 = vmul.f32 0.125, %v4977_v41  ;;  %v4964_v7 = vrot.slane %v4963_v24, 1  ;;  %v4856_v27 = vrot.slane %v4855_v45, 1 }
 0x9c5   : > { %v6182_v17 = vpop.eup %6181  ;;  %v8475_v18 = vsub.f32 %v8392_v40, %v4872_v28  ;;  %v4839_v50 = vadd.f32 %v4838_v10, %v4837_v30  ;;  %v4844_v5 = vrot.slane %v4843_v44, 1 }
 0x9c6   : > { %v5060_v0 = vmul.f32 %v8433_v13, %v6182_v17  ;;  %v5029_v54 = vadd.f32 1e-05, %v5013_v62  ;;  %v4965_v36 = vadd.f32 %v4964_v7, %v4963_v24  ;;  %v4857_v31 = vadd.f32 %v4856_v27, %v4855_v45 }
 0x9c7   : > { %v4904_v2 = vmul.f32 %v8475_v18, %v8475_v18  ;;  %v4870_v56 = vmul.f32 0.125, %v4839_v50  ;;  %v4845_v21 = vadd.f32 %v4844_v5, %v4843_v44 }
 0x9c8   : > { %v6184_v11 = vpop.eup %6183  ;;  %v5109_v59 = vrot.slane %v5060_v0, %v8318_v35  ;;  %6185 = vrsqrt.f32 %v5029_v54  ;;  %v5011_v33 = vmul.f32 0.125, %v4965_v36  ;;  %v4873_v16 = vmul.f32 0.125, %v4857_v31 }
 0x9c9   : > { %v5058_v40 = vmul.f32 %v8433_v13, %v6184_v11  ;;  %v4990_v3 = vrot.slane %v4904_v2, 4  ;;  %v8483_v47 = vsub.f32 %v8395_v42, %v4870_v56  ;;  %v4871_v51 = vmul.f32 0.125, %v4845_v21 }
 0x9ca   : > { %v5140_v19 = vmul.f32 %v5109_v59, %v8413_v57  ;;  %v5027_v14 = vadd.f32 1e-05, %v5011_v33  ;;  %v8487_v32 = vsub.f32 %v8398_v37, %v4873_v16 }
 0x9cb   : > { %v5101_v1 = vrot.slane %v5058_v40, %v8318_v35  ;;  %v4991_v22 = vadd.f32 %v4990_v3, %v4904_v2  ;;  %v4902_v46 = vmul.f32 %v8483_v47, %v8483_v47  ;;  %v8493_v15 = vsub.f32 %v8402_v23, %v4871_v51 }
 0x9cc   : > { %v5160_v38 = vadd.f32 %v8329_v6, %v5140_v19  ;;  %6187 = vrsqrt.f32 %v5027_v14  ;;  %v4905_v42 = vmul.f32 %v8487_v32, %v8487_v32 }
 0x9cd   : > { %v5138_v57 = vmul.f32 %v5101_v1, %v8422_v63  ;;  %v4992_v37 = vrot.slane %v4991_v22, 2  ;;  %v4978_v12 = vrot.slane %v4902_v46, 4  ;;  %v4903_v8 = vmul.f32 %v8493_v15, %v8493_v15 }
 0x9ce   : > { %vm5176_vm8 = vcmp.ge.f32.partialorder %v5160_v38, 0.0  ;;  %v5192_v9 = vmul.f32 0.01, %v5160_v38  ;;  %v4996_v58 = vrot.slane %v4905_v42, 4 }
 0x9cf   : > { %v5158_v23 = vadd.f32 %v8329_v6, %v5138_v57  ;;  %v4993_v49 = vadd.f32 %v4992_v37, %v4991_v22  ;;  %v4979_v55 = vadd.f32 %v4978_v12, %v4902_v46  ;;  %v4984_v52 = vrot.slane %v4903_v8, 4 }
 0x9d0   : > { %v5208_v29 = vsel %vm5176_vm8, %v5160_v38, %v5192_v9  ;;  %v4997_v26 = vadd.f32 %v4996_v58, %v4905_v42 }
 0x9d1   : > { %5224 = vst [vmem:[%s8426_s18 + $0x50] sm:$0xff] %v5208_v29  ;;  %vm5174_vm9 = vcmp.ge.f32.partialorder %v5158_v23, 0.0  ;;  %v5190_v53 = vmul.f32 0.01, %v5158_v23  ;;  %v4994_v63 = vrot.slane %v4993_v49, 1  ;;  %v4980_v60 = vrot.slane %v4979_v55, 2 }
 0x9d2   : > { %v6186_v34 = vpop.eup %6185  ;;  %v4998_v39 = vrot.slane %v4997_v26, 2  ;;  %v4985_v48 = vadd.f32 %v4984_v52, %v4903_v8 }
 0x9d3   : > { %v5206_v4 = vsel %vm5174_vm9, %v5158_v23, %v5190_v53  ;;  %v5061_v25 = vmul.f32 %v8433_v13, %v6186_v34  ;;  %v4995_v30 = vadd.f32 %v4994_v63, %v4993_v49  ;;  %v4981_v43 = vadd.f32 %v4980_v60, %v4979_v55 }
 0x9d4   : > { %5222 = vst [vmem:[%s8426_s18 + $0x40] sm:$0xff] %v5206_v4  ;;  %v4999_v41 = vadd.f32 %v4998_v39, %v4997_v26  ;;  %v4986_v24 = vrot.slane %v4985_v48, 2 }
 0x9d5   : > { %v5113_v45 = vrot.slane %v5061_v25, %v8318_v35  ;;  %v5016_v28 = vmul.f32 0.125, %v4995_v30  ;;  %v4982_v10 = vrot.slane %v4981_v43, 1 }
 0x9d6   : > { %v6188_v44 = vpop.eup %6187  ;;  %v5000_v62 = vrot.slane %v4999_v41, 1  ;;  %v4987_v7 = vadd.f32 %v4986_v24, %v4985_v48 }
 0x9d7   : > { %v5141_v27 = vmul.f32 %v5113_v45, %v8445_v61  ;;  %v5059_v17 = vmul.f32 %v8433_v13, %v6188_v44  ;;  %v5032_v50 = vadd.f32 1e-05, %v5016_v28  ;;  %v4983_v5 = vadd.f32 %v4982_v10, %v4981_v43 }
 0x9d8   : > { %v5001_v0 = vadd.f32 %v5000_v62, %v4999_v41  ;;  %v4988_v54 = vrot.slane %v4987_v7, 1 }
 0x9d9   : > { %v5161_v36 = vadd.f32 %v8329_v6, %v5141_v27  ;;  %v5105_v31 = vrot.slane %v5059_v17, %v8318_v35  ;;  %6189 = vrsqrt.f32 %v5032_v50  ;;  %v5014_v2 = vmul.f32 0.125, %v4983_v5 }
 0x9da   : > { %v5017_v56 = vmul.f32 0.125, %v5001_v0  ;;  %v4989_v21 = vadd.f32 %v4988_v54, %v4987_v7 }
 0x9db   : > { %vm5177_vm10 = vcmp.ge.f32.partialorder %v5161_v36, 0.0  ;;  %v5193_v11 = vmul.f32 0.01, %v5161_v36  ;;  %v5139_v61 = vmul.f32 %v5105_v31, %v8456_v20  ;;  %v5030_v59 = vadd.f32 1e-05, %v5014_v2 }
 0x9dc   : > { %v5033_v33 = vadd.f32 1e-05, %v5017_v56  ;;  %v5015_v16 = vmul.f32 0.125, %v4989_v21 }
 0x9dd   : > { %v5209_v40 = vsel %vm5177_vm10, %v5161_v36, %v5193_v11  ;;  %v5159_v3 = vadd.f32 %v8329_v6, %v5139_v61  ;;  %6191 = vrsqrt.f32 %v5030_v59 }
 0x9de   : > { %5225 = vst [vmem:[%s8426_s18 + $0x58] sm:$0xff] %v5209_v40  ;;  %6193 = vrsqrt.f32 %v5033_v33  ;;  %v5031_v51 = vadd.f32 1e-05, %v5015_v16 }
 0x9df   : > { %vm5175_vm11 = vcmp.ge.f32.partialorder %v5159_v3, 0.0  ;;  %v5191_v19 = vmul.f32 0.01, %v5159_v3 }
 0x9e0   : > { %6195 = vrsqrt.f32 %v5031_v51 }
 0x9e1   : > { %v5207_v14 = vsel %vm5175_vm11, %v5159_v3, %v5191_v19 }
 0x9e2   : > { %5223 = vst [vmem:[%s8426_s18 + $0x48] sm:$0xff] %v5207_v14 }
 0x9e3   : > { %v6190_v1 = vpop.eup %6189 }
 0x9e4   : > { %v5064_v22 = vmul.f32 %v8433_v13, %v6190_v1 }
 0x9e6   : > { %v5125_v20 = vrot.slane %v5064_v22, %v8318_v35 }
 0x9e7   : > { %v6192_v46 = vpop.eup %6191 }
 0x9e8   : > { %v6194_v38 = vpop.eup %6193  ;;  %v5144_v42 = vmul.f32 %v5125_v20, %v8475_v18  ;;  %v5062_v57 = vmul.f32 %v8433_v13, %v6192_v46 }
 0x9e9   : > { %v5065_v37 = vmul.f32 %v8433_v13, %v6194_v38 }
 0x9ea   : > { %v6196_v12 = vpop.eup %6195  ;;  %v5164_v8 = vadd.f32 %v8329_v6, %v5144_v42  ;;  %v5117_v9 = vrot.slane %v5062_v57, %v8318_v35 }
 0x9eb   : > { %v5129_v58 = vrot.slane %v5065_v37, %v8318_v35  ;;  %v5063_v23 = vmul.f32 %v8433_v13, %v6196_v12 }
 0x9ec   : > { %vm5180_vm12 = vcmp.ge.f32.partialorder %v5164_v8, 0.0  ;;  %v5196_v49 = vmul.f32 0.01, %v5164_v8  ;;  %v5142_v55 = vmul.f32 %v5117_v9, %v8483_v47 }
 0x9ed   : > { %v5145_v18 = vmul.f32 %v5129_v58, %v8487_v32  ;;  %v5121_v52 = vrot.slane %v5063_v23, %v8318_v35 }
 0x9ee   : > { %v5212_v29 = vsel %vm5180_vm12, %v5164_v8, %v5196_v49  ;;  %v5162_v26 = vadd.f32 %v8329_v6, %v5142_v55 }
 0x9ef   : > { %5228 = vst [vmem:[%s8426_s18 + $0x70] sm:$0xff] %v5212_v29  ;;  %v5165_v53 = vadd.f32 %v8329_v6, %v5145_v18  ;;  %v5143_v63 = vmul.f32 %v5121_v52, %v8493_v15 }
 0x9f0   : > { %vm5178_vm13 = vcmp.ge.f32.partialorder %v5162_v26, 0.0  ;;  %v5194_v13 = vmul.f32 0.01, %v5162_v26 }
 0x9f1   : > { %vm5181_vm14 = vcmp.ge.f32.partialorder %v5165_v53, 0.0  ;;  %v5197_v47 = vmul.f32 0.01, %v5165_v53  ;;  %v5163_v35 = vadd.f32 %v8329_v6, %v5143_v63 }
 0x9f2   : > { %v5210_v32 = vsel %vm5178_vm13, %v5162_v26, %v5194_v13 }
 0x9f3   : > { %5226 = vst [vmem:[%s8426_s18 + $0x60] sm:$0xff] %v5210_v32  ;;  %v5213_v60 = vsel %vm5181_vm14, %v5165_v53, %v5197_v47  ;;  %vm5179_vm15 = vcmp.ge.f32.partialorder %v5163_v35, 0.0  ;;  %v5195_v34 = vmul.f32 0.01, %v5163_v35 }
 0x9f4   : > { %5229 = vst [vmem:[%s8426_s18 + $0x78] sm:$0xff] %v5213_v60 }
 0x9f5   : > { %v5211_v15 = vsel %vm5179_vm15, %v5163_v35, %v5195_v34 }
 0x9f6   : > { %5227 = vst [vmem:[%s8426_s18 + $0x68] sm:$0xff] %v5211_v15 }
 0x9f7   : > { %6305 = shalt.err (!%p6302_p7)
}
 0x9f8   : > { %s6306_s10 = scalar_lea.hbm %s8537_s27, 2048  ;;  %s6310_s26 = scalar_lea.hbm %s8587_s3, 8192 }
 0x9f9   : > { %p6307_p9 = scmp.ne.s32.totalorder %s8537_s27, %s6306_s10  ;;  %p6311_p5 = scmp.lt.u32.totalorder %s8537_s27, %s8587_s3 }
 0x9fa   : > { %p6312_p10 = scmp.lt.u32.totalorder %s6310_s26, %s6306_s10  ;;  %p6314_p1 = scmp.lt.u32.totalorder %s6306_s10, %s8537_s27 }
 0x9fb   : > { %p6308_p12 = pnand %p6307_p9, %p6512_p6 }
 0x9fc   : > { %p6313_p11 = por %p6312_p10, %p6311_p5 }
 0x9fd   : > { %p6309_p0 = pneg %p6308_p12 }
 0x9fe   : > { %p6315_p2 = por %p6314_p1, %p6313_p11 }
 0xa00   : > { %p6316_p4 = pnand %p6315_p2, %p6309_p0 }
 0xa02   : > { %6319 = shalt.err (!%p6316_p4)
}
 0xa03   : > { %s6372_s28 = smov 128   ;;  %s6373_s18 = smov 8  }
 0xa04   : > { %5814 = dma.vmem_to_hbm [thread:$0]  (%p6512_p6), %s8539_s29, 2048, %s8537_s27, %s5231_s16, %s6372_s28, %s6372_s28, %s6373_s18  }
 0xa05 PF: > { %p5836_p8 = scmp.ge.s32.totalorder %s6362_s15, 2  ;;  %s5259_s20 = sand.u32 1, %s6350_s12  }
 0xa06   : > { %p8602_p13 = scmp.ne.s32.totalorder %s8592_s19, 0  ;;  %s5260_s30 = scalar_lea.sflag [#allocation4], %s5259_s20 }
 0xa08   : > { %p5828_p3 = pnand %p5836_p8, %p8602_p13 }
 0xa0a   : > { %6345 = dma.done.wait (!%p5828_p3), %s5260_s30, 2048  }
 0xa0b   : > { %6347 = vsyncadd (!%p5828_p3), %s5260_s30, 4294965248  ;;  %p17_p7 = scmp.ge.s32.totalorder %s6499_s6, 6   ;;  %s8603_s12 = smov %s6354_s13 }
 0xa0c   : > { %s8604_s13 = smov %s6358_s14  ;;  %s8605_s14 = smov %s6508_s9 }
 0xa0d   : > { %s8606_s15 = smov %s6499_s6  ;;  %19 = sbr.rel (!%p17_p7) target bundleno = 6 (0x6), region = 92 }
 0xa14   :  { %5265 = vsyncpa [#allocation3], 1 }
 0xa15   :  { %5267 = vsyncpa [#allocation3 + $0x1], 1 }
 0xa16   :  { %5268 = vsyncpa [#allocation6], 1 }
 0xa17   :  { %5269 = vsyncpa [#allocation4], 1 }
 0xa18   :  { %5271 = vsyncpa [#allocation4 + $0x1], 1 }

</bundles_post_ra>
